<compile_context>
chip_gen: v6e
topology: v6e:2x2x1
jax: 0.10.0
libtpu: 0.0.40
codegen_flags: <defaults>
</compile_context>

<pallas_src>
import functools
import jax
import jax.numpy as jnp
from jax.experimental import pallas as pl
from jax.experimental.pallas import tpu as pltpu

GROUPS = 32        # nn.GroupNorm(groups=32, dim)
EPS = 1e-5         # nn.GroupNorm default eps


# ----------------------------- Pallas kernel ---------------------------------
def _block_kernel(x_ref, gamma_ref, beta_ref, gmat_ref, wtaps_ref, bias_ref,
                  o_ref, hw0_ref, hw1_ref, hw2_ref):
    # x_ref : (bblk, H, W, Cin) f32      gamma/beta: (1, Cin) f32
    # gmat  : (Cin, Cin) f32 group-averaging matrix (reduce + broadcast in one)
    # wtaps : (9, Cin, Cout) bf16        bias: (1, Cout) f32
    # hw*_ref: VMEM (bblk, H+2, W, Cin) bf16 — width-shifted activations for
    #          kx = 0, 1, 2; rows 0 and H+1 are the zero conv halo.
    bblk, H, W, Cin = x_ref.shape
    Cout = o_ref.shape[-1]

    x = x_ref[...]                                        # f32

    # ---- GroupNorm statistics (per sample, per group) ----
    # One-pass E[x^2] - mean^2: fine at the demo tolerance for unit-scale inputs;
    # a two-pass (x - mean) variance would be safer for activations with large means.
    s1 = jnp.mean(jnp.mean(x, axis=1), axis=1)            # (bblk, Cin) spatial mean
    s2 = jnp.mean(jnp.mean(x * x, axis=1), axis=1)        # (bblk, Cin) spatial mean of x^2
    stats = jnp.concatenate([s1, s2], axis=0)             # (2*bblk, Cin)
    gstats = jnp.dot(stats, gmat_ref[...],
                     preferred_element_type=jnp.float32)  # group means, broadcast to channels
    mean = gstats[:bblk]                                  # (bblk, Cin)
    var = gstats[bblk:] - mean * mean
    inv = jax.lax.rsqrt(var + EPS)
    scale = inv * gamma_ref[...]                          # (bblk, Cin)
    shift = beta_ref[...] - mean * scale                  # (bblk, Cin)

    xn = x * scale[:, None, None, :] + shift[:, None, None, :]

    # ---- Swish: x * sigmoid(x)  (EUP exp + approx EUP reciprocal) ----
    h = xn * pl.reciprocal(1.0 + jnp.exp(-xn), approx=True)

    # ---- stage the three width-shifted (kx = 0,1,2) bf16 copies of h ----
    # hw[kx][:, r, x, :] == h_pad[:, r, x + kx, :]  (h_pad = zero-padded activations)
    zcol = jnp.zeros((bblk, H, 1, Cin), jnp.float32)
    h_l = jnp.concatenate([zcol, h[:, :, :W - 1, :]], axis=2)   # column x-1 (kx=0)
    h_r = jnp.concatenate([h[:, :, 1:, :], zcol], axis=2)       # column x+1 (kx=2)

    zrow = jnp.zeros((bblk, 1, W, Cin), jnp.bfloat16)
    for ref, val in ((hw0_ref, h_l), (hw1_ref, h), (hw2_ref, h_r)):
        ref[:, 0:1, :, :] = zrow                    # top conv halo row
        ref[:, H + 1:H + 2, :, :] = zrow            # bottom conv halo row
        ref[:, 1:H + 1, :, :] = val.astype(jnp.bfloat16)
    hw = (hw0_ref, hw1_ref, hw2_ref)

    # ---- 3x3 conv: 9 plane-aligned tap slices @ per-tap weights, register acc ----
    bias = bias_ref[...]                            # (1, Cout)
    MH = H                                          # image rows per MXU pass
    while bblk * MH * W > 128 and MH % 2 == 0:      # keep the f32 acc ~<= 16 vregs
        MH //= 2
    for h0 in range(0, H, MH):
        M = bblk * MH * W
        acc = None                                  # register / MRB accumulation
        for ky in range(3):
            for kx in range(3):
                patch = hw[kx][:, h0 + ky:h0 + ky + MH, :, :].reshape(M, Cin)
                contrib = jnp.dot(patch, wtaps_ref[ky * 3 + kx],
                                  preferred_element_type=jnp.float32)
                acc = contrib if acc is None else acc + contrib
        out = (acc + bias).reshape(bblk, MH, W, Cout)
        o_ref[:, h0:h0 + MH, :, :] = out.astype(o_ref.dtype)   # lane-dense, unmasked


# -------------------------- parameter preparation ----------------------------
def prepare_params(params, groups=GROUPS):
    """One-time (hoisted) reshaping of the PyTorch-layout parameters."""
    Cout, Cin, KH, KW = params["wconv"].shape
    assert (KH, KW) == (3, 3) and Cin % groups == 0
    gc = Cin // groups
    # Conv2d weight (Cout, Cin, 3, 3) -> per-tap (9, Cin, Cout), bf16 for the MXU.
    wtaps = jnp.transpose(params["wconv"], (2, 3, 1, 0)).reshape(KH * KW, Cin, Cout)
    gid = jnp.arange(Cin) // gc
    gmat = (gid[:, None] == gid[None, :]).astype(jnp.float32) / gc   # (Cin, Cin)
    return {
        "wtaps": wtaps.astype(jnp.bfloat16),
        "bconv": params["bconv"].reshape(1, Cout).astype(jnp.float32),
        "gamma": params["gamma"].reshape(1, Cin).astype(jnp.float32),
        "beta": params["beta"].reshape(1, Cin).astype(jnp.float32),
        "gmat": gmat,
    }


# --------------------------------- wrapper ------------------------------------
def _pick_bblk(B, H, W, Cin, Cout, vmem_budget=8 << 20, min_steps=4):
    """Largest batch block that fits the VMEM budget while keeping >= min_steps
    grid steps (pipelining / multi-core headroom) when the batch allows it."""
    per = (2 * H * W * Cin * 4            # x block, double-buffered
           + 2 * H * W * Cout * 4         # out block, double-buffered
           + 3 * (H + 2) * W * Cin * 2)   # width-shifted bf16 scratch
    cap = max(1, vmem_budget // per)
    best = 1
    for cand in range(1, B + 1):
        if B % cand != 0 or cand > cap:
            continue
        if cand == 1 or B // cand >= min_steps:
            best = cand
    return best


@functools.partial(jax.jit, static_argnames=("bblk",))
def block_forward_nhwc(x_nhwc, prepped, bblk=None):
    """Hot-path entry point: NHWC in, NHWC out (no layout transposes)."""
    B, H, W, C = x_nhwc.shape
    Cout = prepped["wtaps"].shape[-1]
    if bblk is None:
        bblk = _pick_bblk(B, H, W, C, Cout)
    assert B % bblk == 0

    # Explicit scoped-VMEM limit: blocks + scratch + params with generous headroom,
    # clamped to stay within v7x's 64 MiB physical VMEM.
    per = (2 * H * W * C * 4 + 2 * H * W * Cout * 4 + 3 * (H + 2) * W * C * 2) * bblk
    params_b = 2 * (C * C * 4 + 9 * C * Cout * 2 + (2 * C + Cout + 2) * 4)
    vmem_limit = int(min(64 << 20, max(per + params_b + (8 << 20), 16 << 20)))

    x = x_nhwc.astype(jnp.float32)

    out = pl.pallas_call(
        _block_kernel,
        out_shape=jax.ShapeDtypeStruct((B, H, W, Cout), jnp.float32),
        grid_spec=pltpu.PrefetchScalarGridSpec(
            num_scalar_prefetch=0,
            grid=(B // bblk,),
            in_specs=[
                pl.BlockSpec((bblk, H, W, C), lambda b: (b, 0, 0, 0)),   # x
                pl.BlockSpec((1, C), lambda b: (0, 0)),                  # gamma
                pl.BlockSpec((1, C), lambda b: (0, 0)),                  # beta
                pl.BlockSpec((C, C), lambda b: (0, 0)),                  # group-avg matrix
                pl.BlockSpec((9, C, Cout), lambda b: (0, 0, 0)),         # conv taps (bf16)
                pl.BlockSpec((1, Cout), lambda b: (0, 0)),               # conv bias
            ],
            out_specs=pl.BlockSpec((bblk, H, W, Cout), lambda b: (b, 0, 0, 0)),
            scratch_shapes=[
                pltpu.VMEM((bblk, H + 2, W, C), jnp.bfloat16),           # kx = 0 stage
                pltpu.VMEM((bblk, H + 2, W, C), jnp.bfloat16),           # kx = 1 stage
                pltpu.VMEM((bblk, H + 2, W, C), jnp.bfloat16),           # kx = 2 stage
            ],
        ),
        # NOTE(v7x): swap "parallel" for pltpu.CORE_PARALLEL (or an explicit
        # core_map) to force the batch axis across both TensorCores; "parallel"
        # is kept here for portability across single-core v5e/v6e parts.
        compiler_params=pltpu.CompilerParams(
            dimension_semantics=("parallel",),
            vmem_limit_bytes=vmem_limit),
    )(x, prepped["gamma"], prepped["beta"], prepped["gmat"],
      prepped["wtaps"], prepped["bconv"])
    return out


def block_forward(x_nchw, prepped):
    """PyTorch-layout convenience wrapper (adds two HBM transposes).  In a real
    UNet keep activations NHWC between blocks and call block_forward_nhwc."""
    x_nhwc = jnp.transpose(x_nchw, (0, 2, 3, 1))
    out = block_forward_nhwc(x_nhwc, prepped)
    return jnp.transpose(out, (0, 3, 1, 2))


# ------------------------- pure-JAX reference (f32) ---------------------------
def reference(x, params):
    B, C, H, W = x.shape
    G = GROUPS
    xg = x.reshape(B, G, C // G, H, W)
    mean = xg.mean(axis=(2, 3, 4), keepdims=True)
    var = xg.var(axis=(2, 3, 4), keepdims=True)
    xn = (xg - mean) / jnp.sqrt(var + EPS)
    xn = xn.reshape(B, C, H, W)
    xn = xn * params["gamma"][None, :, None, None] + params["beta"][None, :, None, None]
    h = xn * jax.nn.sigmoid(xn)
    out = jax.lax.conv_general_dilated(
        h, params["wconv"], window_strides=(1, 1), padding=((1, 1), (1, 1)),
        dimension_numbers=("NCHW", "OIHW", "NCHW"))
    return out + params["bconv"][None, :, None, None]


if __name__ == "__main__":
    B, Cin, Cout, H, W = 2, 128, 128, 16, 16                          # groups=32 -> 4 ch / group
    key = jax.random.PRNGKey(0)
    k1, k2, k3, k4, k5 = jax.random.split(key, 5)

    x = jax.random.normal(k1, (B, Cin, H, W), dtype=jnp.float32)
    params = {
        "gamma": 1.0 + 0.1 * jax.random.normal(k2, (Cin,), dtype=jnp.float32),   # GroupNorm weight
        "beta": 0.1 * jax.random.normal(k3, (Cin,), dtype=jnp.float32),          # GroupNorm bias
        "wconv": 0.05 * jax.random.normal(k4, (Cout, Cin, 3, 3), dtype=jnp.float32),  # Conv2d(C,Cout,3)
        "bconv": 0.05 * jax.random.normal(k5, (Cout,), dtype=jnp.float32),
    }

    prepped = prepare_params(params)            # hoisted, one-time parameter prep
    out = jax.block_until_ready(block_forward(x, prepped))
    ref = jax.block_until_ready(reference(x, params))

    assert out.shape == (B, Cout, H, W)
    # bf16 matmul operands (f32 accumulation) + approx sigmoid reciprocal
    # -> slightly relaxed tolerance (documented design choice).
    err = float(jnp.max(jnp.abs(out - ref)))
    assert jnp.allclose(out, ref, rtol=2e-2, atol=2e-2), err

    print("KERNEL_OK")
</pallas_src>

<mosaic_0001>
module attributes {stable_mosaic.version = 11 : i64} {
  func.func @_block_kernel(%arg0: i32, %arg1: memref<1x16x16x128xf32, #tpu.memory_space<vmem>>, %arg2: memref<1x128xf32, #tpu.memory_space<vmem>>, %arg3: memref<1x128xf32, #tpu.memory_space<vmem>>, %arg4: memref<128x128xf32, #tpu.memory_space<vmem>>, %arg5: memref<9x128x128xbf16, #tpu.memory_space<vmem>>, %arg6: memref<1x128xf32, #tpu.memory_space<vmem>>, %arg7: memref<1x16x16x128xf32, #tpu.memory_space<vmem>>, %arg8: memref<1x18x16x128xbf16, #tpu.memory_space<vmem>>, %arg9: memref<1x18x16x128xbf16, #tpu.memory_space<vmem>>, %arg10: memref<1x18x16x128xbf16, #tpu.memory_space<vmem>>) attributes {dimension_semantics = [#tpu.dimension_semantics<parallel>], iteration_bounds = array<i64: 2>, scalar_prefetch = 0 : i64, scratch_operands = 3 : i64, tpu.core_type = #tpu.core_type<tc>, window_params = [{transform_indices = @transform_0, window_bounds = array<i64: 1, 16, 16, 128>}, {pipeline_mode = #tpu.pipeline_mode<synchronous>, transform_indices = @transform_1, window_bounds = array<i64: 1, 128>}, {pipeline_mode = #tpu.pipeline_mode<synchronous>, transform_indices = @transform_2, window_bounds = array<i64: 1, 128>}, {pipeline_mode = #tpu.pipeline_mode<synchronous>, transform_indices = @transform_3, window_bounds = array<i64: 128, 128>}, {pipeline_mode = #tpu.pipeline_mode<synchronous>, transform_indices = @transform_4, window_bounds = array<i64: 9, 128, 128>}, {pipeline_mode = #tpu.pipeline_mode<synchronous>, transform_indices = @transform_5, window_bounds = array<i64: 1, 128>}, {transform_indices = @transform_6, window_bounds = array<i64: 1, 16, 16, 128>}]} {
    %c0 = arith.constant 0 : index
    %c0_0 = arith.constant 0 : index
    %c0_1 = arith.constant 0 : index
    %c0_2 = arith.constant 0 : index
    %0 = vector.load %arg1[%c0, %c0_0, %c0_1, %c0_2] : memref<1x16x16x128xf32, #tpu.memory_space<vmem>>, vector<1x16x16x128xf32>
    %cst = arith.constant dense<0.000000e+00> : vector<1x16x128xf32>
    %1 = vector.multi_reduction <add>, %0, %cst [1] : vector<1x16x16x128xf32> to vector<1x16x128xf32>
    %cst_3 = arith.constant 1.600000e+01 : f32
    %2 = vector.broadcast %cst_3 : f32 to vector<1x16x128xf32>
    %3 = arith.divf %1, %2 : vector<1x16x128xf32>
    %cst_4 = arith.constant dense<0.000000e+00> : vector<1x128xf32>
    %4 = vector.multi_reduction <add>, %3, %cst_4 [1] : vector<1x16x128xf32> to vector<1x128xf32>
    %cst_5 = arith.constant 1.600000e+01 : f32
    %5 = vector.broadcast %cst_5 : f32 to vector<1x128xf32>
    %6 = arith.divf %4, %5 : vector<1x128xf32>
    %7 = arith.mulf %0, %0 : vector<1x16x16x128xf32>
    %cst_6 = arith.constant dense<0.000000e+00> : vector<1x16x128xf32>
    %8 = vector.multi_reduction <add>, %7, %cst_6 [1] : vector<1x16x16x128xf32> to vector<1x16x128xf32>
    %cst_7 = arith.constant 1.600000e+01 : f32
    %9 = vector.broadcast %cst_7 : f32 to vector<1x16x128xf32>
    %10 = arith.divf %8, %9 : vector<1x16x128xf32>
    %cst_8 = arith.constant dense<0.000000e+00> : vector<1x128xf32>
    %11 = vector.multi_reduction <add>, %10, %cst_8 [1] : vector<1x16x128xf32> to vector<1x128xf32>
    %cst_9 = arith.constant 1.600000e+01 : f32
    %12 = vector.broadcast %cst_9 : f32 to vector<1x128xf32>
    %13 = arith.divf %11, %12 : vector<1x128xf32>
    %14 = tpu.concatenate %6, %13 in 0 : vector<1x128xf32>, vector<1x128xf32> -> vector<2x128xf32>
    %c0_10 = arith.constant 0 : index
    %c0_11 = arith.constant 0 : index
    %15 = vector.load %arg4[%c0_10, %c0_11] : memref<128x128xf32, #tpu.memory_space<vmem>>, vector<128x128xf32>
    %cst_12 = arith.constant dense<0.000000e+00> : vector<2x128xf32>
    %16 = tpu.matmul %14, %15, %cst_12 {dimension_numbers = #tpu.dot_dimension_numbers<[1], [0], [0], [1], [0, 0, 1, 1], [], []>} : vector<2x128xf32>, vector<128x128xf32>, vector<2x128xf32> -> vector<2x128xf32>
    %17 = vector.extract_strided_slice %16 {offsets = [0, 0], sizes = [1, 128], strides = [1, 1]} : vector<2x128xf32> to vector<1x128xf32>
    %18 = vector.extract_strided_slice %16 {offsets = [1, 0], sizes = [1, 128], strides = [1, 1]} : vector<2x128xf32> to vector<1x128xf32>
    %19 = arith.mulf %17, %17 : vector<1x128xf32>
    %20 = arith.subf %18, %19 : vector<1x128xf32>
    %cst_13 = arith.constant 9.99999974E-6 : f32
    %21 = vector.broadcast %cst_13 : f32 to vector<1x128xf32>
    %22 = arith.addf %20, %21 : vector<1x128xf32>
    %23 = math.rsqrt %22 : vector<1x128xf32>
    %c0_14 = arith.constant 0 : index
    %c0_15 = arith.constant 0 : index
    %24 = vector.load %arg2[%c0_14, %c0_15] : memref<1x128xf32, #tpu.memory_space<vmem>>, vector<1x128xf32>
    %25 = arith.mulf %23, %24 : vector<1x128xf32>
    %c0_16 = arith.constant 0 : index
    %c0_17 = arith.constant 0 : index
    %26 = vector.load %arg3[%c0_16, %c0_17] : memref<1x128xf32, #tpu.memory_space<vmem>>, vector<1x128xf32>
    %27 = arith.mulf %17, %25 : vector<1x128xf32>
    %28 = arith.subf %26, %27 : vector<1x128xf32>
    %29 = vector.shape_cast %25 : vector<1x128xf32> to vector<1x1x1x128xf32>
    %30 = vector.broadcast %29 : vector<1x1x1x128xf32> to vector<1x16x16x128xf32>
    %31 = arith.mulf %0, %30 : vector<1x16x16x128xf32>
    %32 = vector.shape_cast %28 : vector<1x128xf32> to vector<1x1x1x128xf32>
    %33 = vector.broadcast %32 : vector<1x1x1x128xf32> to vector<1x16x16x128xf32>
    %34 = arith.addf %31, %33 : vector<1x16x16x128xf32>
    %cst_18 = arith.constant 0.000000e+00 : f32
    %35 = vector.broadcast %cst_18 : f32 to vector<1x16x16x128xf32>
    %36 = arith.subf %35, %34 : vector<1x16x16x128xf32>
    %37 = math.exp %36 : vector<1x16x16x128xf32>
    %cst_19 = arith.constant 1.000000e+00 : f32
    %38 = vector.broadcast %cst_19 : f32 to vector<1x16x16x128xf32>
    %39 = arith.addf %38, %37 : vector<1x16x16x128xf32>
    %40 = tpu.reciprocal %39 {approx = true} : vector<1x16x16x128xf32> -> vector<1x16x16x128xf32>
    %41 = arith.mulf %34, %40 : vector<1x16x16x128xf32>
    %cst_20 = arith.constant 0.000000e+00 : f32
    %42 = vector.broadcast %cst_20 : f32 to vector<1x16x1x128xf32>
    %43 = vector.extract_strided_slice %41 {offsets = [0, 0, 0, 0], sizes = [1, 16, 15, 128], strides = [1, 1, 1, 1]} : vector<1x16x16x128xf32> to vector<1x16x15x128xf32>
    %44 = tpu.concatenate %42, %43 in 2 : vector<1x16x1x128xf32>, vector<1x16x15x128xf32> -> vector<1x16x16x128xf32>
    %45 = vector.extract_strided_slice %41 {offsets = [0, 0, 1, 0], sizes = [1, 16, 15, 128], strides = [1, 1, 1, 1]} : vector<1x16x16x128xf32> to vector<1x16x15x128xf32>
    %46 = tpu.concatenate %45, %42 in 2 : vector<1x16x15x128xf32>, vector<1x16x1x128xf32> -> vector<1x16x16x128xf32>
    %cst_21 = arith.constant 0.000000e+00 : bf16
    %47 = vector.broadcast %cst_21 : bf16 to vector<1x1x16x128xbf16>
    %c0_22 = arith.constant 0 : index
    %c0_23 = arith.constant 0 : index
    %c0_24 = arith.constant 0 : index
    %c0_25 = arith.constant 0 : index
    %48 = vector.load %arg8[%c0_22, %c0_23, %c0_24, %c0_25] : memref<1x18x16x128xbf16, #tpu.memory_space<vmem>>, vector<1x1x16x128xbf16>
    tpu.vector_store %arg8[%c0_22, %c0_23, %c0_24, %c0_25], %47 {strides = array<i32>} : memref<1x18x16x128xbf16, #tpu.memory_space<vmem>>, vector<1x1x16x128xbf16>,
    %c0_26 = arith.constant 0 : index
    %c17 = arith.constant 17 : index
    %c0_27 = arith.constant 0 : index
    %c0_28 = arith.constant 0 : index
    %49 = vector.load %arg8[%c0_26, %c17, %c0_27, %c0_28] : memref<1x18x16x128xbf16, #tpu.memory_space<vmem>>, vector<1x1x16x128xbf16>
    tpu.vector_store %arg8[%c0_26, %c17, %c0_27, %c0_28], %47 {strides = array<i32>} : memref<1x18x16x128xbf16, #tpu.memory_space<vmem>>, vector<1x1x16x128xbf16>,
    %50 = arith.truncf %44 : vector<1x16x16x128xf32> to vector<1x16x16x128xbf16>
    %c0_29 = arith.constant 0 : index
    %c1 = arith.constant 1 : index
    %c0_30 = arith.constant 0 : index
    %c0_31 = arith.constant 0 : index
    %51 = vector.load %arg8[%c0_29, %c1, %c0_30, %c0_31] : memref<1x18x16x128xbf16, #tpu.memory_space<vmem>>, vector<1x16x16x128xbf16>
    tpu.vector_store %arg8[%c0_29, %c1, %c0_30, %c0_31], %50 {strides = array<i32>} : memref<1x18x16x128xbf16, #tpu.memory_space<vmem>>, vector<1x16x16x128xbf16>,
    %c0_32 = arith.constant 0 : index
    %c0_33 = arith.constant 0 : index
    %c0_34 = arith.constant 0 : index
    %c0_35 = arith.constant 0 : index
    %52 = vector.load %arg9[%c0_32, %c0_33, %c0_34, %c0_35] : memref<1x18x16x128xbf16, #tpu.memory_space<vmem>>, vector<1x1x16x128xbf16>
    tpu.vector_store %arg9[%c0_32, %c0_33, %c0_34, %c0_35], %47 {strides = array<i32>} : memref<1x18x16x128xbf16, #tpu.memory_space<vmem>>, vector<1x1x16x128xbf16>,
    %c0_36 = arith.constant 0 : index
    %c17_37 = arith.constant 17 : index
    %c0_38 = arith.constant 0 : index
    %c0_39 = arith.constant 0 : index
    %53 = vector.load %arg9[%c0_36, %c17_37, %c0_38, %c0_39] : memref<1x18x16x128xbf16, #tpu.memory_space<vmem>>, vector<1x1x16x128xbf16>
    tpu.vector_store %arg9[%c0_36, %c17_37, %c0_38, %c0_39], %47 {strides = array<i32>} : memref<1x18x16x128xbf16, #tpu.memory_space<vmem>>, vector<1x1x16x128xbf16>,
    %54 = arith.truncf %41 : vector<1x16x16x128xf32> to vector<1x16x16x128xbf16>
    %c0_40 = arith.constant 0 : index
    %c1_41 = arith.constant 1 : index
    %c0_42 = arith.constant 0 : index
    %c0_43 = arith.constant 0 : index
    %55 = vector.load %arg9[%c0_40, %c1_41, %c0_42, %c0_43] : memref<1x18x16x128xbf16, #tpu.memory_space<vmem>>, vector<1x16x16x128xbf16>
    tpu.vector_store %arg9[%c0_40, %c1_41, %c0_42, %c0_43], %54 {strides = array<i32>} : memref<1x18x16x128xbf16, #tpu.memory_space<vmem>>, vector<1x16x16x128xbf16>,
    %c0_44 = arith.constant 0 : index
    %c0_45 = arith.constant 0 : index
    %c0_46 = arith.constant 0 : index
    %c0_47 = arith.constant 0 : index
    %56 = vector.load %arg10[%c0_44, %c0_45, %c0_46, %c0_47] : memref<1x18x16x128xbf16, #tpu.memory_space<vmem>>, vector<1x1x16x128xbf16>
    tpu.vector_store %arg10[%c0_44, %c0_45, %c0_46, %c0_47], %47 {strides = array<i32>} : memref<1x18x16x128xbf16, #tpu.memory_space<vmem>>, vector<1x1x16x128xbf16>,
    %c0_48 = arith.constant 0 : index
    %c17_49 = arith.constant 17 : index
    %c0_50 = arith.constant 0 : index
    %c0_51 = arith.constant 0 : index
    %57 = vector.load %arg10[%c0_48, %c17_49, %c0_50, %c0_51] : memref<1x18x16x128xbf16, #tpu.memory_space<vmem>>, vector<1x1x16x128xbf16>
    tpu.vector_store %arg10[%c0_48, %c17_49, %c0_50, %c0_51], %47 {strides = array<i32>} : memref<1x18x16x128xbf16, #tpu.memory_space<vmem>>, vector<1x1x16x128xbf16>,
    %58 = arith.truncf %46 : vector<1x16x16x128xf32> to vector<1x16x16x128xbf16>
    %c0_52 = arith.constant 0 : index
    %c1_53 = arith.constant 1 : index
    %c0_54 = arith.constant 0 : index
    %c0_55 = arith.constant 0 : index
    %59 = vector.load %arg10[%c0_52, %c1_53, %c0_54, %c0_55] : memref<1x18x16x128xbf16, #tpu.memory_space<vmem>>, vector<1x16x16x128xbf16>
    tpu.vector_store %arg10[%c0_52, %c1_53, %c0_54, %c0_55], %58 {strides = array<i32>} : memref<1x18x16x128xbf16, #tpu.memory_space<vmem>>, vector<1x16x16x128xbf16>,
    %c0_56 = arith.constant 0 : index
    %c0_57 = arith.constant 0 : index
    %60 = vector.load %arg6[%c0_56, %c0_57] : memref<1x128xf32, #tpu.memory_space<vmem>>, vector<1x128xf32>
    %c0_58 = arith.constant 0 : index
    %c0_59 = arith.constant 0 : index
    %c0_60 = arith.constant 0 : index
    %c0_61 = arith.constant 0 : index
    %61 = vector.load %arg8[%c0_58, %c0_59, %c0_60, %c0_61] : memref<1x18x16x128xbf16, #tpu.memory_space<vmem>>, vector<1x8x16x128xbf16>
    %62 = vector.shape_cast %61 : vector<1x8x16x128xbf16> to vector<128x128xbf16>
    %c0_62 = arith.constant 0 : index
    %c0_63 = arith.constant 0 : index
    %c0_64 = arith.constant 0 : index
    %63 = vector.load %arg5[%c0_62, %c0_63, %c0_64] : memref<9x128x128xbf16, #tpu.memory_space<vmem>>, vector<1x128x128xbf16>
    %64 = vector.shape_cast %63 : vector<1x128x128xbf16> to vector<128x128xbf16>
    %cst_65 = arith.constant dense<0.000000e+00> : vector<128x128xf32>
    %65 = tpu.matmul %62, %64, %cst_65 {dimension_numbers = #tpu.dot_dimension_numbers<[1], [0], [0], [1], [0, 0, 1, 1], [], []>} : vector<128x128xbf16>, vector<128x128xbf16>, vector<128x128xf32> -> vector<128x128xf32>
    %c0_66 = arith.constant 0 : index
    %c0_67 = arith.constant 0 : index
    %c0_68 = arith.constant 0 : index
    %c0_69 = arith.constant 0 : index
    %66 = vector.load %arg9[%c0_66, %c0_67, %c0_68, %c0_69] : memref<1x18x16x128xbf16, #tpu.memory_space<vmem>>, vector<1x8x16x128xbf16>
    %67 = vector.shape_cast %66 : vector<1x8x16x128xbf16> to vector<128x128xbf16>
    %c1_70 = arith.constant 1 : index
    %c0_71 = arith.constant 0 : index
    %c0_72 = arith.constant 0 : index
    %68 = vector.load %arg5[%c1_70, %c0_71, %c0_72] : memref<9x128x128xbf16, #tpu.memory_space<vmem>>, vector<1x128x128xbf16>
    %69 = vector.shape_cast %68 : vector<1x128x128xbf16> to vector<128x128xbf16>
    %cst_73 = arith.constant dense<0.000000e+00> : vector<128x128xf32>
    %70 = tpu.matmul %67, %69, %cst_73 {dimension_numbers = #tpu.dot_dimension_numbers<[1], [0], [0], [1], [0, 0, 1, 1], [], []>} : vector<128x128xbf16>, vector<128x128xbf16>, vector<128x128xf32> -> vector<128x128xf32>
    %71 = arith.addf %65, %70 : vector<128x128xf32>
    %c0_74 = arith.constant 0 : index
    %c0_75 = arith.constant 0 : index
    %c0_76 = arith.constant 0 : index
    %c0_77 = arith.constant 0 : index
    %72 = vector.load %arg10[%c0_74, %c0_75, %c0_76, %c0_77] : memref<1x18x16x128xbf16, #tpu.memory_space<vmem>>, vector<1x8x16x128xbf16>
    %73 = vector.shape_cast %72 : vector<1x8x16x128xbf16> to vector<128x128xbf16>
    %c2 = arith.constant 2 : index
    %c0_78 = arith.constant 0 : index
    %c0_79 = arith.constant 0 : index
    %74 = vector.load %arg5[%c2, %c0_78, %c0_79] : memref<9x128x128xbf16, #tpu.memory_space<vmem>>, vector<1x128x128xbf16>
    %75 = vector.shape_cast %74 : vector<1x128x128xbf16> to vector<128x128xbf16>
    %cst_80 = arith.constant dense<0.000000e+00> : vector<128x128xf32>
    %76 = tpu.matmul %73, %75, %cst_80 {dimension_numbers = #tpu.dot_dimension_numbers<[1], [0], [0], [1], [0, 0, 1, 1], [], []>} : vector<128x128xbf16>, vector<128x128xbf16>, vector<128x128xf32> -> vector<128x128xf32>
    %77 = arith.addf %71, %76 : vector<128x128xf32>
    %c0_81 = arith.constant 0 : index
    %c1_82 = arith.constant 1 : index
    %c0_83 = arith.constant 0 : index
    %c0_84 = arith.constant 0 : index
    %78 = vector.load %arg8[%c0_81, %c1_82, %c0_83, %c0_84] : memref<1x18x16x128xbf16, #tpu.memory_space<vmem>>, vector<1x8x16x128xbf16>
    %79 = vector.shape_cast %78 : vector<1x8x16x128xbf16> to vector<128x128xbf16>
    %c3 = arith.constant 3 : index
    %c0_85 = arith.constant 0 : index
    %c0_86 = arith.constant 0 : index
    %80 = vector.load %arg5[%c3, %c0_85, %c0_86] : memref<9x128x128xbf16, #tpu.memory_space<vmem>>, vector<1x128x128xbf16>
    %81 = vector.shape_cast %80 : vector<1x128x128xbf16> to vector<128x128xbf16>
    %cst_87 = arith.constant dense<0.000000e+00> : vector<128x128xf32>
    %82 = tpu.matmul %79, %81, %cst_87 {dimension_numbers = #tpu.dot_dimension_numbers<[1], [0], [0], [1], [0, 0, 1, 1], [], []>} : vector<128x128xbf16>, vector<128x128xbf16>, vector<128x128xf32> -> vector<128x128xf32>
    %83 = arith.addf %77, %82 : vector<128x128xf32>
    %c0_88 = arith.constant 0 : index
    %c1_89 = arith.constant 1 : index
    %c0_90 = arith.constant 0 : index
    %c0_91 = arith.constant 0 : index
    %84 = vector.load %arg9[%c0_88, %c1_89, %c0_90, %c0_91] : memref<1x18x16x128xbf16, #tpu.memory_space<vmem>>, vector<1x8x16x128xbf16>
    %85 = vector.shape_cast %84 : vector<1x8x16x128xbf16> to vector<128x128xbf16>
    %c4 = arith.constant 4 : index
    %c0_92 = arith.constant 0 : index
    %c0_93 = arith.constant 0 : index
    %86 = vector.load %arg5[%c4, %c0_92, %c0_93] : memref<9x128x128xbf16, #tpu.memory_space<vmem>>, vector<1x128x128xbf16>
    %87 = vector.shape_cast %86 : vector<1x128x128xbf16> to vector<128x128xbf16>
    %cst_94 = arith.constant dense<0.000000e+00> : vector<128x128xf32>
    %88 = tpu.matmul %85, %87, %cst_94 {dimension_numbers = #tpu.dot_dimension_numbers<[1], [0], [0], [1], [0, 0, 1, 1], [], []>} : vector<128x128xbf16>, vector<128x128xbf16>, vector<128x128xf32> -> vector<128x128xf32>
    %89 = arith.addf %83, %88 : vector<128x128xf32>
    %c0_95 = arith.constant 0 : index
    %c1_96 = arith.constant 1 : index
    %c0_97 = arith.constant 0 : index
    %c0_98 = arith.constant 0 : index
    %90 = vector.load %arg10[%c0_95, %c1_96, %c0_97, %c0_98] : memref<1x18x16x128xbf16, #tpu.memory_space<vmem>>, vector<1x8x16x128xbf16>
    %91 = vector.shape_cast %90 : vector<1x8x16x128xbf16> to vector<128x128xbf16>
    %c5 = arith.constant 5 : index
    %c0_99 = arith.constant 0 : index
    %c0_100 = arith.constant 0 : index
    %92 = vector.load %arg5[%c5, %c0_99, %c0_100] : memref<9x128x128xbf16, #tpu.memory_space<vmem>>, vector<1x128x128xbf16>
    %93 = vector.shape_cast %92 : vector<1x128x128xbf16> to vector<128x128xbf16>
    %cst_101 = arith.constant dense<0.000000e+00> : vector<128x128xf32>
    %94 = tpu.matmul %91, %93, %cst_101 {dimension_numbers = #tpu.dot_dimension_numbers<[1], [0], [0], [1], [0, 0, 1, 1], [], []>} : vector<128x128xbf16>, vector<128x128xbf16>, vector<128x128xf32> -> vector<128x128xf32>
    %95 = arith.addf %89, %94 : vector<128x128xf32>
    %c0_102 = arith.constant 0 : index
    %c2_103 = arith.constant 2 : index
    %c0_104 = arith.constant 0 : index
    %c0_105 = arith.constant 0 : index
    %96 = vector.load %arg8[%c0_102, %c2_103, %c0_104, %c0_105] : memref<1x18x16x128xbf16, #tpu.memory_space<vmem>>, vector<1x8x16x128xbf16>
    %97 = vector.shape_cast %96 : vector<1x8x16x128xbf16> to vector<128x128xbf16>
    %c6 = arith.constant 6 : index
    %c0_106 = arith.constant 0 : index
    %c0_107 = arith.constant 0 : index
    %98 = vector.load %arg5[%c6, %c0_106, %c0_107] : memref<9x128x128xbf16, #tpu.memory_space<vmem>>, vector<1x128x128xbf16>
    %99 = vector.shape_cast %98 : vector<1x128x128xbf16> to vector<128x128xbf16>
    %cst_108 = arith.constant dense<0.000000e+00> : vector<128x128xf32>
    %100 = tpu.matmul %97, %99, %cst_108 {dimension_numbers = #tpu.dot_dimension_numbers<[1], [0], [0], [1], [0, 0, 1, 1], [], []>} : vector<128x128xbf16>, vector<128x128xbf16>, vector<128x128xf32> -> vector<128x128xf32>
    %101 = arith.addf %95, %100 : vector<128x128xf32>
    %c0_109 = arith.constant 0 : index
    %c2_110 = arith.constant 2 : index
    %c0_111 = arith.constant 0 : index
    %c0_112 = arith.constant 0 : index
    %102 = vector.load %arg9[%c0_109, %c2_110, %c0_111, %c0_112] : memref<1x18x16x128xbf16, #tpu.memory_space<vmem>>, vector<1x8x16x128xbf16>
    %103 = vector.shape_cast %102 : vector<1x8x16x128xbf16> to vector<128x128xbf16>
    %c7 = arith.constant 7 : index
    %c0_113 = arith.constant 0 : index
    %c0_114 = arith.constant 0 : index
    %104 = vector.load %arg5[%c7, %c0_113, %c0_114] : memref<9x128x128xbf16, #tpu.memory_space<vmem>>, vector<1x128x128xbf16>
    %105 = vector.shape_cast %104 : vector<1x128x128xbf16> to vector<128x128xbf16>
    %cst_115 = arith.constant dense<0.000000e+00> : vector<128x128xf32>
    %106 = tpu.matmul %103, %105, %cst_115 {dimension_numbers = #tpu.dot_dimension_numbers<[1], [0], [0], [1], [0, 0, 1, 1], [], []>} : vector<128x128xbf16>, vector<128x128xbf16>, vector<128x128xf32> -> vector<128x128xf32>
    %107 = arith.addf %101, %106 : vector<128x128xf32>
    %c0_116 = arith.constant 0 : index
    %c2_117 = arith.constant 2 : index
    %c0_118 = arith.constant 0 : index
    %c0_119 = arith.constant 0 : index
    %108 = vector.load %arg10[%c0_116, %c2_117, %c0_118, %c0_119] : memref<1x18x16x128xbf16, #tpu.memory_space<vmem>>, vector<1x8x16x128xbf16>
    %109 = vector.shape_cast %108 : vector<1x8x16x128xbf16> to vector<128x128xbf16>
    %c8 = arith.constant 8 : index
    %c0_120 = arith.constant 0 : index
    %c0_121 = arith.constant 0 : index
    %110 = vector.load %arg5[%c8, %c0_120, %c0_121] : memref<9x128x128xbf16, #tpu.memory_space<vmem>>, vector<1x128x128xbf16>
    %111 = vector.shape_cast %110 : vector<1x128x128xbf16> to vector<128x128xbf16>
    %cst_122 = arith.constant dense<0.000000e+00> : vector<128x128xf32>
    %112 = tpu.matmul %109, %111, %cst_122 {dimension_numbers = #tpu.dot_dimension_numbers<[1], [0], [0], [1], [0, 0, 1, 1], [], []>} : vector<128x128xbf16>, vector<128x128xbf16>, vector<128x128xf32> -> vector<128x128xf32>
    %113 = arith.addf %107, %112 : vector<128x128xf32>
    %114 = vector.broadcast %60 : vector<1x128xf32> to vector<128x128xf32>
    %115 = arith.addf %113, %114 : vector<128x128xf32>
    %116 = vector.shape_cast %115 : vector<128x128xf32> to vector<1x8x16x128xf32>
    %c0_123 = arith.constant 0 : index
    %c0_124 = arith.constant 0 : index
    %c0_125 = arith.constant 0 : index
    %c0_126 = arith.constant 0 : index
    %117 = vector.load %arg7[%c0_123, %c0_124, %c0_125, %c0_126] : memref<1x16x16x128xf32, #tpu.memory_space<vmem>>, vector<1x8x16x128xf32>
    tpu.vector_store %arg7[%c0_123, %c0_124, %c0_125, %c0_126], %116 {strides = array<i32>} : memref<1x16x16x128xf32, #tpu.memory_space<vmem>>, vector<1x8x16x128xf32>,
    %c0_127 = arith.constant 0 : index
    %c8_128 = arith.constant 8 : index
    %c0_129 = arith.constant 0 : index
    %c0_130 = arith.constant 0 : index
    %118 = vector.load %arg8[%c0_127, %c8_128, %c0_129, %c0_130] : memref<1x18x16x128xbf16, #tpu.memory_space<vmem>>, vector<1x8x16x128xbf16>
    %119 = vector.shape_cast %118 : vector<1x8x16x128xbf16> to vector<128x128xbf16>
    %c0_131 = arith.constant 0 : index
    %c0_132 = arith.constant 0 : index
    %c0_133 = arith.constant 0 : index
    %120 = vector.load %arg5[%c0_131, %c0_132, %c0_133] : memref<9x128x128xbf16, #tpu.memory_space<vmem>>, vector<1x128x128xbf16>
    %121 = vector.shape_cast %120 : vector<1x128x128xbf16> to vector<128x128xbf16>
    %cst_134 = arith.constant dense<0.000000e+00> : vector<128x128xf32>
    %122 = tpu.matmul %119, %121, %cst_134 {dimension_numbers = #tpu.dot_dimension_numbers<[1], [0], [0], [1], [0, 0, 1, 1], [], []>} : vector<128x128xbf16>, vector<128x128xbf16>, vector<128x128xf32> -> vector<128x128xf32>
    %c0_135 = arith.constant 0 : index
    %c8_136 = arith.constant 8 : index
    %c0_137 = arith.constant 0 : index
    %c0_138 = arith.constant 0 : index
    %123 = vector.load %arg9[%c0_135, %c8_136, %c0_137, %c0_138] : memref<1x18x16x128xbf16, #tpu.memory_space<vmem>>, vector<1x8x16x128xbf16>
    %124 = vector.shape_cast %123 : vector<1x8x16x128xbf16> to vector<128x128xbf16>
    %c1_139 = arith.constant 1 : index
    %c0_140 = arith.constant 0 : index
    %c0_141 = arith.constant 0 : index
    %125 = vector.load %arg5[%c1_139, %c0_140, %c0_141] : memref<9x128x128xbf16, #tpu.memory_space<vmem>>, vector<1x128x128xbf16>
    %126 = vector.shape_cast %125 : vector<1x128x128xbf16> to vector<128x128xbf16>
    %cst_142 = arith.constant dense<0.000000e+00> : vector<128x128xf32>
    %127 = tpu.matmul %124, %126, %cst_142 {dimension_numbers = #tpu.dot_dimension_numbers<[1], [0], [0], [1], [0, 0, 1, 1], [], []>} : vector<128x128xbf16>, vector<128x128xbf16>, vector<128x128xf32> -> vector<128x128xf32>
    %128 = arith.addf %122, %127 : vector<128x128xf32>
    %c0_143 = arith.constant 0 : index
    %c8_144 = arith.constant 8 : index
    %c0_145 = arith.constant 0 : index
    %c0_146 = arith.constant 0 : index
    %129 = vector.load %arg10[%c0_143, %c8_144, %c0_145, %c0_146] : memref<1x18x16x128xbf16, #tpu.memory_space<vmem>>, vector<1x8x16x128xbf16>
    %130 = vector.shape_cast %129 : vector<1x8x16x128xbf16> to vector<128x128xbf16>
    %c2_147 = arith.constant 2 : index
    %c0_148 = arith.constant 0 : index
    %c0_149 = arith.constant 0 : index
    %131 = vector.load %arg5[%c2_147, %c0_148, %c0_149] : memref<9x128x128xbf16, #tpu.memory_space<vmem>>, vector<1x128x128xbf16>
    %132 = vector.shape_cast %131 : vector<1x128x128xbf16> to vector<128x128xbf16>
    %cst_150 = arith.constant dense<0.000000e+00> : vector<128x128xf32>
    %133 = tpu.matmul %130, %132, %cst_150 {dimension_numbers = #tpu.dot_dimension_numbers<[1], [0], [0], [1], [0, 0, 1, 1], [], []>} : vector<128x128xbf16>, vector<128x128xbf16>, vector<128x128xf32> -> vector<128x128xf32>
    %134 = arith.addf %128, %133 : vector<128x128xf32>
    %c0_151 = arith.constant 0 : index
    %c9 = arith.constant 9 : index
    %c0_152 = arith.constant 0 : index
    %c0_153 = arith.constant 0 : index
    %135 = vector.load %arg8[%c0_151, %c9, %c0_152, %c0_153] : memref<1x18x16x128xbf16, #tpu.memory_space<vmem>>, vector<1x8x16x128xbf16>
    %136 = vector.shape_cast %135 : vector<1x8x16x128xbf16> to vector<128x128xbf16>
    %c3_154 = arith.constant 3 : index
    %c0_155 = arith.constant 0 : index
    %c0_156 = arith.constant 0 : index
    %137 = vector.load %arg5[%c3_154, %c0_155, %c0_156] : memref<9x128x128xbf16, #tpu.memory_space<vmem>>, vector<1x128x128xbf16>
    %138 = vector.shape_cast %137 : vector<1x128x128xbf16> to vector<128x128xbf16>
    %cst_157 = arith.constant dense<0.000000e+00> : vector<128x128xf32>
    %139 = tpu.matmul %136, %138, %cst_157 {dimension_numbers = #tpu.dot_dimension_numbers<[1], [0], [0], [1], [0, 0, 1, 1], [], []>} : vector<128x128xbf16>, vector<128x128xbf16>, vector<128x128xf32> -> vector<128x128xf32>
    %140 = arith.addf %134, %139 : vector<128x128xf32>
    %c0_158 = arith.constant 0 : index
    %c9_159 = arith.constant 9 : index
    %c0_160 = arith.constant 0 : index
    %c0_161 = arith.constant 0 : index
    %141 = vector.load %arg9[%c0_158, %c9_159, %c0_160, %c0_161] : memref<1x18x16x128xbf16, #tpu.memory_space<vmem>>, vector<1x8x16x128xbf16>
    %142 = vector.shape_cast %141 : vector<1x8x16x128xbf16> to vector<128x128xbf16>
    %c4_162 = arith.constant 4 : index
    %c0_163 = arith.constant 0 : index
    %c0_164 = arith.constant 0 : index
    %143 = vector.load %arg5[%c4_162, %c0_163, %c0_164] : memref<9x128x128xbf16, #tpu.memory_space<vmem>>, vector<1x128x128xbf16>
    %144 = vector.shape_cast %143 : vector<1x128x128xbf16> to vector<128x128xbf16>
    %cst_165 = arith.constant dense<0.000000e+00> : vector<128x128xf32>
    %145 = tpu.matmul %142, %144, %cst_165 {dimension_numbers = #tpu.dot_dimension_numbers<[1], [0], [0], [1], [0, 0, 1, 1], [], []>} : vector<128x128xbf16>, vector<128x128xbf16>, vector<128x128xf32> -> vector<128x128xf32>
    %146 = arith.addf %140, %145 : vector<128x128xf32>
    %c0_166 = arith.constant 0 : index
    %c9_167 = arith.constant 9 : index
    %c0_168 = arith.constant 0 : index
    %c0_169 = arith.constant 0 : index
    %147 = vector.load %arg10[%c0_166, %c9_167, %c0_168, %c0_169] : memref<1x18x16x128xbf16, #tpu.memory_space<vmem>>, vector<1x8x16x128xbf16>
    %148 = vector.shape_cast %147 : vector<1x8x16x128xbf16> to vector<128x128xbf16>
    %c5_170 = arith.constant 5 : index
    %c0_171 = arith.constant 0 : index
    %c0_172 = arith.constant 0 : index
    %149 = vector.load %arg5[%c5_170, %c0_171, %c0_172] : memref<9x128x128xbf16, #tpu.memory_space<vmem>>, vector<1x128x128xbf16>
    %150 = vector.shape_cast %149 : vector<1x128x128xbf16> to vector<128x128xbf16>
    %cst_173 = arith.constant dense<0.000000e+00> : vector<128x128xf32>
    %151 = tpu.matmul %148, %150, %cst_173 {dimension_numbers = #tpu.dot_dimension_numbers<[1], [0], [0], [1], [0, 0, 1, 1], [], []>} : vector<128x128xbf16>, vector<128x128xbf16>, vector<128x128xf32> -> vector<128x128xf32>
    %152 = arith.addf %146, %151 : vector<128x128xf32>
    %c0_174 = arith.constant 0 : index
    %c10 = arith.constant 10 : index
    %c0_175 = arith.constant 0 : index
    %c0_176 = arith.constant 0 : index
    %153 = vector.load %arg8[%c0_174, %c10, %c0_175, %c0_176] : memref<1x18x16x128xbf16, #tpu.memory_space<vmem>>, vector<1x8x16x128xbf16>
    %154 = vector.shape_cast %153 : vector<1x8x16x128xbf16> to vector<128x128xbf16>
    %c6_177 = arith.constant 6 : index
    %c0_178 = arith.constant 0 : index
    %c0_179 = arith.constant 0 : index
    %155 = vector.load %arg5[%c6_177, %c0_178, %c0_179] : memref<9x128x128xbf16, #tpu.memory_space<vmem>>, vector<1x128x128xbf16>
    %156 = vector.shape_cast %155 : vector<1x128x128xbf16> to vector<128x128xbf16>
    %cst_180 = arith.constant dense<0.000000e+00> : vector<128x128xf32>
    %157 = tpu.matmul %154, %156, %cst_180 {dimension_numbers = #tpu.dot_dimension_numbers<[1], [0], [0], [1], [0, 0, 1, 1], [], []>} : vector<128x128xbf16>, vector<128x128xbf16>, vector<128x128xf32> -> vector<128x128xf32>
    %158 = arith.addf %152, %157 : vector<128x128xf32>
    %c0_181 = arith.constant 0 : index
    %c10_182 = arith.constant 10 : index
    %c0_183 = arith.constant 0 : index
    %c0_184 = arith.constant 0 : index
    %159 = vector.load %arg9[%c0_181, %c10_182, %c0_183, %c0_184] : memref<1x18x16x128xbf16, #tpu.memory_space<vmem>>, vector<1x8x16x128xbf16>
    %160 = vector.shape_cast %159 : vector<1x8x16x128xbf16> to vector<128x128xbf16>
    %c7_185 = arith.constant 7 : index
    %c0_186 = arith.constant 0 : index
    %c0_187 = arith.constant 0 : index
    %161 = vector.load %arg5[%c7_185, %c0_186, %c0_187] : memref<9x128x128xbf16, #tpu.memory_space<vmem>>, vector<1x128x128xbf16>
    %162 = vector.shape_cast %161 : vector<1x128x128xbf16> to vector<128x128xbf16>
    %cst_188 = arith.constant dense<0.000000e+00> : vector<128x128xf32>
    %163 = tpu.matmul %160, %162, %cst_188 {dimension_numbers = #tpu.dot_dimension_numbers<[1], [0], [0], [1], [0, 0, 1, 1], [], []>} : vector<128x128xbf16>, vector<128x128xbf16>, vector<128x128xf32> -> vector<128x128xf32>
    %164 = arith.addf %158, %163 : vector<128x128xf32>
    %c0_189 = arith.constant 0 : index
    %c10_190 = arith.constant 10 : index
    %c0_191 = arith.constant 0 : index
    %c0_192 = arith.constant 0 : index
    %165 = vector.load %arg10[%c0_189, %c10_190, %c0_191, %c0_192] : memref<1x18x16x128xbf16, #tpu.memory_space<vmem>>, vector<1x8x16x128xbf16>
    %166 = vector.shape_cast %165 : vector<1x8x16x128xbf16> to vector<128x128xbf16>
    %c8_193 = arith.constant 8 : index
    %c0_194 = arith.constant 0 : index
    %c0_195 = arith.constant 0 : index
    %167 = vector.load %arg5[%c8_193, %c0_194, %c0_195] : memref<9x128x128xbf16, #tpu.memory_space<vmem>>, vector<1x128x128xbf16>
    %168 = vector.shape_cast %167 : vector<1x128x128xbf16> to vector<128x128xbf16>
    %cst_196 = arith.constant dense<0.000000e+00> : vector<128x128xf32>
    %169 = tpu.matmul %166, %168, %cst_196 {dimension_numbers = #tpu.dot_dimension_numbers<[1], [0], [0], [1], [0, 0, 1, 1], [], []>} : vector<128x128xbf16>, vector<128x128xbf16>, vector<128x128xf32> -> vector<128x128xf32>
    %170 = arith.addf %164, %169 : vector<128x128xf32>
    %171 = vector.broadcast %60 : vector<1x128xf32> to vector<128x128xf32>
    %172 = arith.addf %170, %171 : vector<128x128xf32>
    %173 = vector.shape_cast %172 : vector<128x128xf32> to vector<1x8x16x128xf32>
    %c0_197 = arith.constant 0 : index
    %c8_198 = arith.constant 8 : index
    %c0_199 = arith.constant 0 : index
    %c0_200 = arith.constant 0 : index
    %174 = vector.load %arg7[%c0_197, %c8_198, %c0_199, %c0_200] : memref<1x16x16x128xf32, #tpu.memory_space<vmem>>, vector<1x8x16x128xf32>
    tpu.vector_store %arg7[%c0_197, %c8_198, %c0_199, %c0_200], %173 {strides = array<i32>} : memref<1x16x16x128xf32, #tpu.memory_space<vmem>>, vector<1x8x16x128xf32>,
    return
  }
  func.func @transform_0(%arg0: i32) -> (i32, i32, i32, i32) {
    %c0_i32 = arith.constant 0 : i32
    %c0_i32_0 = arith.constant 0 : i32
    %c0_i32_1 = arith.constant 0 : i32
    %c0_i32_2 = arith.constant 0 : i32
    return %arg0, %c0_i32, %c0_i32_0, %c0_i32_1 : i32, i32, i32, i32
  }
  func.func @transform_1(%arg0: i32) -> (i32, i32) {
    %c0_i32 = arith.constant 0 : i32
    %c0_i32_0 = arith.constant 0 : i32
    %c0_i32_1 = arith.constant 0 : i32
    return %c0_i32, %c0_i32_0 : i32, i32
  }
  func.func @transform_2(%arg0: i32) -> (i32, i32) {
    %c0_i32 = arith.constant 0 : i32
    %c0_i32_0 = arith.constant 0 : i32
    %c0_i32_1 = arith.constant 0 : i32
    return %c0_i32, %c0_i32_0 : i32, i32
  }
  func.func @transform_3(%arg0: i32) -> (i32, i32) {
    %c0_i32 = arith.constant 0 : i32
    %c0_i32_0 = arith.constant 0 : i32
    %c0_i32_1 = arith.constant 0 : i32
    return %c0_i32, %c0_i32_0 : i32, i32
  }
  func.func @transform_4(%arg0: i32) -> (i32, i32, i32) {
    %c0_i32 = arith.constant 0 : i32
    %c0_i32_0 = arith.constant 0 : i32
    %c0_i32_1 = arith.constant 0 : i32
    %c0_i32_2 = arith.constant 0 : i32
    return %c0_i32, %c0_i32_0, %c0_i32_1 : i32, i32, i32
  }
  func.func @transform_5(%arg0: i32) -> (i32, i32) {
    %c0_i32 = arith.constant 0 : i32
    %c0_i32_0 = arith.constant 0 : i32
    %c0_i32_1 = arith.constant 0 : i32
    return %c0_i32, %c0_i32_0 : i32, i32
  }
  func.func @transform_6(%arg0: i32) -> (i32, i32, i32, i32) {
    %c0_i32 = arith.constant 0 : i32
    %c0_i32_0 = arith.constant 0 : i32
    %c0_i32_1 = arith.constant 0 : i32
    %c0_i32_2 = arith.constant 0 : i32
    return %arg0, %c0_i32, %c0_i32_0, %c0_i32_1 : i32, i32, i32, i32
  }
}

</mosaic_0001>

<bundles_post_ra>
// kernel: block_forward_nhwc.1
= control target key start
LH: loop header
LB: loop body
LE: loop exit
PB: predicated region body
PF: predicated region fallthrough
CT: control target
= control target key end

     0   :  { %11 = vsyncpa [#allocation6], 0  ;;  %s9913_s0 = inlined_call_operand.hbm [shape: f32[2,16,16,128], index: 0, kind: input, shape index: {}]   ;;  %s9914_s1 = inlined_call_operand.vmem [shape: f32[1,128], index: 1, kind: input, shape index: {}]   ;;  %s9915_s2 = inlined_call_operand.vmem [shape: f32[1,128], index: 2, kind: input, shape index: {}]   ;;  %s9916_s3 = inlined_call_operand.hbm [shape: f32[128,128], index: 3, kind: input, shape index: {}]   ;;  %s9917_s4 = inlined_call_operand.hbm [shape: bf16[9,128,128], index: 4, kind: input, shape index: {}]   ;;  %s9918_s5 = inlined_call_operand.hbm [shape: f32[1,128], index: 5, kind: input, shape index: {}]   ;;  %s9919_s6 = inlined_call_operand.hbm [shape: f32[2,16,16,128], index: 6, kind: output, shape index: {}]  }
   0x1   :  { %13 = vsyncpa [#allocation6 + $0x1], 0 }
   0x2   :  { %14 = vsyncpa [#allocation9], 0 }
   0x3   :  { %15 = vsyncpa [#allocation12], 0 }
   0x4   :  { %16 = vsyncpa [#allocation7], 0 }
   0x5   :  { %18 = vsyncpa [#allocation7 + $0x1], 0  ;;  %s8528_s21 = smov 0   ;;  %s8530_s22 = smov 0  }
   0x6   :  { %s8532_s23 = smov 0   ;;  %s8534_s24 = smov 0  }
   0x7 LB: > { %s8549_s25 = sadd.s32 4294967295, %s8477_s24   ;;  %s6038_s26 = sadd.s32 4294967294, %s8477_s24   ;;  %s8477_s24 = sphi %s8534_s24, %s10027_s24   ;;  %s8473_s23 = sphi %s8532_s23, %s10026_s23   ;;  %s8469_s22 = sphi %s8530_s22, %s10025_s22   ;;  %s8465_s21 = sphi %s8528_s21, %s10024_s21  }
   0x8   : > { %p44_p0 = scmp.ne.s32.totalorder %s8469_s22, %s8465_s21  ;;  %p9920_p1 = scmp.eq.s32.totalorder %s8549_s25, 0 }
   0x9   : > { %p173_p2 = scmp.eq.s32.totalorder %s8549_s25, 1  ;;  %p179_p3 = scmp.eq.s32.totalorder %s6038_s26, 1 }
   0xa   : > { %p8558_p4 = por %p9920_p1, %p44_p0  ;;  %p6039_p5 = scmp.ge.s32.totalorder %s8477_s24, 1 }
   0xb   : > { %p8563_p6 = por %p179_p3, %p44_p0  ;;  %p186_p7 = scmp.lt.s32.totalorder %s8477_s24, 3 }
   0xc   : > { %s9935_s27 = scalar_select %p8558_p4, 1, 0 }
   0xd   : > { %s9936_s28 = scalar_select %p8563_p6, 1, 0 }
   0xe   : > { %p8568_p8 = pnand %p6039_p5, %p186_p7  ;;  %s8479_s30 = smov [#allocation8]  }
   0xf   : > { %s204_s7 = sshll.u32 %s8479_s30, 4  ;;  %s8480_s9 = smov [#allocation10]   ;;  %s205_s7 = int_to_ptr.vmem [resolvable:$true] %s204_s7 }
  0x10   : > { %s9937_s29 = scalar_select %p8568_p8, 1, 0 }
  0x11   : > { %p7791_p9 = pneg %p8568_p8  ;;  %s217_s10 = sshll.u32 %s8480_s9, 4  ;;  %s218_s10 = int_to_ptr.vmem [resolvable:$true] %s217_s10 }
  0x12   : > { %s8310_s11 = scalar_lea.vmem %s205_s7, 2048  ;;  %p8318_p5 = scmp.lt.s32.totalorder %s205_s7, %s205_s7 }
  0x13   : > { %p8577_p11 = pnand %p7791_p9, %p9920_p1  ;;  %p8311_p13 = scmp.ne.s32.totalorder %s205_s7, %s8310_s11 }
  0x14   : > { %p8319_p7 = scmp.lt.s32.totalorder %s8310_s11, %s8310_s11 }
  0x15   : > { %p8301_p12 = pneg %p8577_p11 }
  0x16   : > { %p8320_p10 = por %p8319_p7, %p8318_p5 }
  0x17   : > { %p8313_p0 = pnand %p8311_p13, %p8301_p12 }
  0x19   : > { %p8314_p3 = pneg %p8313_p0 }
  0x1b   : > { %p8321_p9 = pnand %p8320_p10, %p8314_p3 }
  0x1d   : > { %8324 = shalt.err (!%p8321_p9)
}
  0x1e   : > { %s9921_s12 = smov 128   ;;  %s9922_s13 = smov 8  }
  0x1f   : > { %7794 = dma.hbm_to_vmem [thread:$0]  (!%p8577_p11), %s9916_s3, 2048, %s205_s7, [#allocation9], %s9921_s12, %s9921_s12, %s9922_s13  }
  0x20   : > { %s8336_s16 = scalar_lea.vmem %s218_s10, 9216  ;;  %p8344_p10 = scmp.lt.s32.totalorder %s218_s10, %s218_s10 }
  0x21   : > { %p8337_p13 = scmp.ne.s32.totalorder %s218_s10, %s8336_s16  ;;  %p8345_p3 = scmp.lt.s32.totalorder %s8336_s16, %s8336_s16 }
  0x23   : > { %p8339_p0 = pnand %p8337_p13, %p8301_p12  ;;  %p8346_p7 = por %p8345_p3, %p8344_p10 }
  0x25   : > { %p8340_p5 = pneg %p8339_p0 }
  0x27   : > { %p8347_p9 = pnand %p8346_p7, %p8340_p5 }
  0x29   : > { %8350 = shalt.err (!%p8347_p9)
}
  0x2a   : > { %s8483_s17 = smov 64   ;;  %s8484_s18 = smov 4  }
  0x2b   : > { %7797 = dma.hbm_to_vmem [thread:$0]  (!%p8577_p11), %s9917_s4, 9216, %s218_s10, [#allocation9], %s8483_s17, %s8483_s17, %s8484_s18  }
  0x2c   : > { %s8485_s26 = smov [#allocation11]   ;;  %s8603_s7 = sadd.s32 1, %s8477_s24  }
  0x2d   : > { %s231_s30 = sshll.u32 %s8485_s26, 4  ;;  %s232_s30 = int_to_ptr.vmem [resolvable:$true] %s231_s30 }
  0x2e   : > { %s8362_s9 = scalar_lea.vmem %s232_s30, 16  ;;  %s8369_s11 = scalar_lea.vmem %s232_s30, 32 }
  0x2f   : > { %p8363_p13 = scmp.ne.s32.totalorder %s232_s30, %s8362_s9  ;;  %p8370_p10 = scmp.lt.s32.totalorder %s232_s30, %s232_s30 }
  0x30   : > { %p8371_p3 = scmp.lt.s32.totalorder %s8369_s11, %s8362_s9 }
  0x31   : > { %p8365_p0 = pnand %p8363_p13, %p8301_p12 }
  0x32   : > { %p8372_p7 = por %p8371_p3, %p8370_p10 }
  0x33   : > { %p8366_p5 = pneg %p8365_p0 }
  0x35   : > { %p8373_p9 = pnand %p8372_p7, %p8366_p5 }
  0x37   : > { %8376 = shalt.err (!%p8373_p9)
}
  0x38   : > { %7800 = dma.hbm_to_vmem [thread:$0]  (!%p8577_p11), %s9918_s5, 16, %s232_s30, [#allocation12]  }
  0x39   : > { %s28_s15 = ssub.s32 %s8477_s24, %s8603_s7  ;;  %s31_s16 = sadd.s32 1, %s8473_s23 }
  0x3a   : > { %p29_p12 = scmp.eq.s32.totalorder %s28_s15, 0  ;;  %p38_p13 = scmp.ne.s32.totalorder %s8473_s23, %s8469_s22 }
  0x3b   : > { %p39_p0 = scmp.eq.s32.totalorder %s8477_s24, 0  ;;  %p7812_p5 = scmp.lt.s32.totalorder %s8477_s24, 2 }
  0x3c   : > { %s8621_s8 = scalar_select %p29_p12, %s8473_s23, %s31_s16  }
  0x3d   : > { %p40_p10 = por %p39_p0, %p38_p13  ;;  %p8625_p3 = por %p173_p2, %p38_p13 }
  0x3e   : > { %s242_s18 = sand.u32 1, %s8473_s23   ;;  %s6460_s19 = sshll.u32 %s8477_s24, 12 }
  0x3f   : > { %s9939_s17 = scalar_select %p8625_p3, 1, 0 }
  0x40   : > { %s6044_s20 = sshll.u32 %s242_s18, 8  ;;  %s8634_s30 = scalar_lea.hbm %s9913_s0, %s6460_s19 }
  0x41   : > { %s246_s11 = scalar_lea.vmem [#allocation5], %s6044_s20  ;;  %p8636_p11 = pnand %p7812_p5, %p40_p10 }
  0x42   : > { %s253_s10 = sshll.u32 %s246_s11, 4  ;;  %s8642_s15 = scalar_lea.sflag [#allocation6], %s242_s18  ;;  %s8640_s10 = int_to_ptr.vmem [resolvable:$true] %s253_s10 }
  0x43   : > { %s8377_s16 = scalar_lea.hbm %s8634_s30, 4096  ;;  %p8379_p7 = pneg %p8636_p11 }
  0x44   : > { %p8378_p2 = scmp.ne.s32.totalorder %s8634_s30, %s8377_s16  ;;  %s8382_s20 = scalar_lea.hbm %s9913_s0, 8192 }
  0x45   : > { %p8383_p13 = scmp.lt.s32.totalorder %s8634_s30, %s9913_s0  ;;  %p8384_p0 = scmp.lt.s32.totalorder %s8382_s20, %s8377_s16 }
  0x46   : > { %p8380_p9 = pnand %p8379_p7, %p8378_p2 }
  0x47   : > { %p8385_p5 = por %p8384_p0, %p8383_p13 }
  0x48   : > { %p8381_p12 = pneg %p8380_p9 }
  0x4a   : > { %p8386_p10 = pnand %p8385_p5, %p8381_p12 }
  0x4c   : > { %8389 = shalt.err (!%p8386_p10)
}
  0x4d   : > { %s8390_s18 = scalar_lea.vmem %s8640_s10, 4096  ;;  %s8486_s12 = smov [#allocation5]  }
  0x4e   : > { %p8391_p1 = scmp.ne.s32.totalorder %s8640_s10, %s8390_s18  ;;  %s8395_s13 = sshll.u32 %s8486_s12, 4  ;;  %s8396_s13 = int_to_ptr.vmem [resolvable:$false] %s8395_s13 }
  0x4f   : > { %s8397_s19 = scalar_lea.vmem %s8396_s13, 8192  ;;  %p8398_p9 = scmp.lt.s32.totalorder %s8640_s10, %s8396_s13 }
  0x50   : > { %p8393_p6 = pnand %p8391_p1, %p8379_p7  ;;  %p8399_p3 = scmp.lt.s32.totalorder %s8397_s19, %s8390_s18 }
  0x52   : > { %p8394_p2 = pneg %p8393_p6  ;;  %p8400_p4 = por %p8399_p3, %p8398_p9 }
  0x54   : > { %p8401_p8 = pnand %p8400_p4, %p8394_p2 }
  0x56   : > { %8404 = shalt.err (!%p8401_p8)
}
  0x57   : > { %s9941_s16 = smov 8   ;;  %s9942_s26 = smov 128  }
  0x58   : > { %7804 = dma.hbm_to_vmem [thread:$0]  (!%p8636_p11), %s8634_s30, 4096, %s8640_s10, %s8642_s15, %s9942_s26, %s9942_s26, %s9941_s16  }
  0x59   : > { %p9943_p1 = scmp.ne.s32.totalorder %s9937_s29, 0 }
  0x5b   : > { %265 = sbr.rel (%p9943_p1) target bundleno = 1017 (0x3f9), region = 44 }
  0x60   : > { %s8669_s12 = sand.u32 1, %s8469_s22   ;;  %p9944_p4 = scmp.ne.s32.totalorder %s9935_s27, 0 }
  0x61   : > { %s6048_s13 = sshll.u32 %s8669_s12, 8  ;;  %s268_s20 = scalar_lea.sflag [#allocation6], %s8669_s12 }
  0x62   : > { %s8675_s14 = scalar_lea.vmem [#allocation5], %s6048_s13 }
  0x63   : > { %8448 = dma.done.wait (%p9944_p4), %s268_s20, 4096  }
  0x64   : > { %8450 = vsyncadd (%p9944_p4), %s268_s20, 4294963200  ;;  %p9945_p6 = scmp.eq.s32.totalorder %s8549_s25, 0 }
  0x66   : > { %8452 = dma.done.wait (%p9945_p6), [#allocation9], 11264   ;;  %p9946_p8 = pmov %p9945_p6 }
  0x67   : > { %p9947_p3 = pmov %p9945_p6 }
  0x68   : > { %8454 = vsyncadd (%p9946_p8), [#allocation9], 4294956032 }
  0x69   : > { %8456 = dma.done.wait (%p9947_p3), [#allocation12], 16   ;;  %p9948_p11 = pmov %p9947_p3 }
  0x6a   : > { %v8487_v0 = vmov 0.0   ;;  %vm8488_vm0 = vmmov 0   ;;  %v475_v1 = vld [vmem:[#allocation8 + $0x78] sm:$0xff]  ;;  %v474_v2 = vld [vmem:[#allocation8 + $0x70] sm:$0xff]  ;;  %v473_v3 = vld [vmem:[#allocation8 + $0x68] sm:$0xff]  ;;  %vm458_vm1 = vcmask 1040384  }
  0x6b   : > { %8458 = vsyncadd (%p9948_p11), [#allocation12], 4294967280  ;;  %7148 = vmatprep.subr.mxu0 %v8487_v0  ;;  %7180 = vmatprep.mubr.msk.f32.mxu0 %vm8488_vm0, %v8487_v0  ;;  %v472_v4 = vld [vmem:[#allocation8 + $0x60] sm:$0xff]  ;;  %v471_v5 = vld [vmem:[#allocation8 + $0x58] sm:$0xff]  ;;  %vm961_vm2 = vcmask 1046528   ;;  %s9560_s15 = scalar_lea.vmem [#allocation13], %s6048_s13 }
  0x6c   : > { %7149 = vmatpush3.msra.mxu0 %v475_v1  ;;  %v313_v6 = vld [vmem:[%s8675_s14] sm:$0xff]  ;;  %v314_v7 = vld [vmem:[%s8675_s14 + $0x8] sm:$0xff]  ;;  %v315_v8 = vld [vmem:[%s8675_s14 + $0x10] sm:$0xff]  ;;  %s6557_s9 = sshll.u32 %s8549_s25, 12  ;;  %s5936_s11 = sshll.u32 %s9560_s15, 4  ;;  %s9867_s11 = int_to_ptr.vmem [resolvable:$true] %s5936_s11 }
  0x6d   : > { %7150 = vmatprep.subr.mxu0 %v8487_v0  ;;  %v316_v9 = vld [vmem:[%s8675_s14 + $0x18] sm:$0xff]  ;;  %v345_v10 = vadd.f32 %v315_v8, %v313_v6  ;;  %v470_v12 = vld [vmem:[#allocation8 + $0x50] sm:$0xff]  ;;  %v317_v13 = vld [vmem:[%s8675_s14 + $0x20] sm:$0xff]  ;;  %v386_v25 = vmul.f32 %v313_v6, %v313_v6  ;;  %v387_v26 = vmul.f32 %v314_v7, %v314_v7  ;;  %v388_v29 = vmul.f32 %v315_v8, %v315_v8  ;;  %s9865_s16 = scalar_lea.hbm %s9919_s6, %s6557_s9  ;;  %s5923_s25 = scalar_lea.sflag [#allocation7], %s8669_s12 }
  0x6e   : > { %7151 = vmatpush3.msra.mxu0 %v474_v2  ;;  %v360_v11 = vadd.f32 %v316_v9, %v314_v7  ;;  %v318_v14 = vld [vmem:[%s8675_s14 + $0x28] sm:$0xff]  ;;  %v319_v18 = vld [vmem:[%s8675_s14 + $0x30] sm:$0xff]  ;;  %v320_v19 = vld [vmem:[%s8675_s14 + $0x38] sm:$0xff]  ;;  %v389_v30 = vmul.f32 %v316_v9, %v316_v9  ;;  %v390_v39 = vmul.f32 %v317_v13, %v317_v13  ;;  %s8405_s26 = scalar_lea.vmem %s9867_s11, 4096  ;;  %p10021_p12 = scmp.ne.s32.totalorder %s9939_s17, 0 }
  0x6f   : > { %7152 = vmatprep.subr.mxu0 %v8487_v0  ;;  %v346_v15 = vadd.f32 %v345_v10, %v317_v13  ;;  %v469_v17 = vld [vmem:[#allocation8 + $0x48] sm:$0xff]  ;;  %v468_v22 = vld [vmem:[#allocation8 + $0x40] sm:$0xff]  ;;  %v467_v31 = vld [vmem:[#allocation8 + $0x38] sm:$0xff]  ;;  %v391_v40 = vmul.f32 %v318_v14, %v318_v14  ;;  %v392_v44 = vmul.f32 %v319_v18, %v319_v18  ;;  %v393_v45 = vmul.f32 %v320_v19, %v320_v19  ;;  %p8406_p7 = scmp.ne.s32.totalorder %s9867_s11, %s8405_s26  ;;  %s8490_s13 = smov [#allocation13]  }
  0x70   : > { %7153 = vmatpush3.msra.mxu0 %v473_v3  ;;  %v361_v16 = vadd.f32 %v360_v11, %v318_v14  ;;  %v321_v23 = vld [vmem:[%s8675_s14 + $0x40] sm:$0xff]  ;;  %v322_v24 = vld [vmem:[%s8675_s14 + $0x48] sm:$0xff]  ;;  %v323_v32 = vld [vmem:[%s8675_s14 + $0x50] sm:$0xff]  ;;  %v418_v48 = vadd.f32 %v388_v29, %v386_v25  ;;  %v433_v49 = vadd.f32 %v389_v30, %v387_v26  ;;  %s8409_s20 = sshll.u32 %s8490_s13, 4  ;;  %s8410_s20 = int_to_ptr.vmem [resolvable:$false] %s8409_s20 }
  0x71   : > { %7154 = vmatprep.subr.mxu0 %v8487_v0  ;;  %v347_v20 = vadd.f32 %v346_v15, %v319_v18  ;;  %v324_v33 = vld [vmem:[%s8675_s14 + $0x58] sm:$0xff]  ;;  %v466_v34 = vld [vmem:[#allocation8 + $0x30] sm:$0xff]  ;;  %v325_v35 = vld [vmem:[%s8675_s14 + $0x60] sm:$0xff]  ;;  %v394_v53 = vmul.f32 %v321_v23, %v321_v23  ;;  %v395_v54 = vmul.f32 %v322_v24, %v322_v24  ;;  %v396_v62 = vmul.f32 %v323_v32, %v323_v32  ;;  %p8407_p13 = pnand %p8406_p7, %p10021_p12  ;;  %p8412_p5 = scmp.lt.s32.totalorder %s9867_s11, %s8410_s20 }
  0x72   : > { %7155 = vmatpush3.msra.mxu0 %v472_v4  ;;  %v362_v21 = vadd.f32 %v361_v16, %v320_v19  ;;  %v326_v36 = vld [vmem:[%s8675_s14 + $0x68] sm:$0xff]  ;;  %v327_v42 = vld [vmem:[%s8675_s14 + $0x70] sm:$0xff]  ;;  %v328_v43 = vld [vmem:[%s8675_s14 + $0x78] sm:$0xff]  ;;  %v419_v57 = vadd.f32 %v418_v48, %v390_v39  ;;  %v434_v58 = vadd.f32 %v433_v49, %v391_v40  ;;  %v397_v63 = vmul.f32 %v324_v33, %v324_v33 }
  0x73   : > { %7156 = vmatprep.subr.mxu0 %v8487_v0  ;;  %v348_v27 = vadd.f32 %v347_v20, %v321_v23  ;;  %v465_v41 = vld [vmem:[#allocation8 + $0x28] sm:$0xff]  ;;  %v464_v50 = vld [vmem:[#allocation8 + $0x20] sm:$0xff]  ;;  %v463_v59 = vld [vmem:[#allocation8 + $0x18] sm:$0xff]  ;;  %v398_v8 = vmul.f32 %v325_v35, %v325_v35  ;;  %v399_v9 = vmul.f32 %v326_v36, %v326_v36  ;;  %v401_v18 = vmul.f32 %v328_v43, %v328_v43  ;;  %p8408_p0 = pneg %p8407_p13 }
  0x74   : > { %7157 = vmatpush3.msra.mxu0 %v471_v5  ;;  %v363_v28 = vadd.f32 %v362_v21, %v322_v24  ;;  %v329_v51 = vld [vmem:[%s8675_s14 + $0x80] sm:$0xff]  ;;  %v330_v52 = vld [vmem:[%s8675_s14 + $0x88] sm:$0xff]  ;;  %v8720_v60 = vld [vmem:[%s8675_s14 + $0x90] sm:$0xff]  ;;  %v420_v3 = vadd.f32 %v419_v57, %v392_v44  ;;  %v435_v4 = vadd.f32 %v434_v58, %v393_v45 }
  0x75   : > { %7158 = vmatprep.subr.mxu0 %v8487_v0  ;;  %v349_v37 = vadd.f32 %v348_v27, %v323_v32  ;;  %v8723_v61 = vld [vmem:[%s8675_s14 + $0x98] sm:$0xff]  ;;  %v462_v5 = vld [vmem:[#allocation8 + $0x10] sm:$0xff]  ;;  %v8727_v6 = vld [vmem:[%s8675_s14 + $0xa0] sm:$0xff]  ;;  %v402_v26 = vmul.f32 %v329_v51, %v329_v51  ;;  %v403_v27 = vmul.f32 %v330_v52, %v330_v52 }
  0x76   : > { %7159 = vmatpush3.msra.mxu0 %v470_v12  ;;  %v364_v38 = vadd.f32 %v363_v28, %v324_v33  ;;  %v8730_v7 = vld [vmem:[%s8675_s14 + $0xa8] sm:$0xff]  ;;  %v421_v12 = vadd.f32 %v420_v3, %v394_v53  ;;  %v436_v13 = vadd.f32 %v435_v4, %v395_v54  ;;  %v8736_v15 = vld [vmem:[%s8675_s14 + $0xb0] sm:$0xff]  ;;  %v8739_v16 = vld [vmem:[%s8675_s14 + $0xb8] sm:$0xff] }
  0x77   : > { %7160 = vmatprep.subr.mxu0 %v8487_v0  ;;  %v350_v46 = vadd.f32 %v349_v37, %v325_v35  ;;  %v461_v14 = vld [vmem:[#allocation8 + $0x8] sm:$0xff]  ;;  %v460_v23 = vld [vmem:[#allocation8] sm:$0xff]  ;;  %v8754_v32 = vld [vmem:[%s8675_s14 + $0xd0] sm:$0xff]  ;;  %v405_v35 = vmul.f32 %v8723_v61, %v8723_v61  ;;  %v408_v49 = vmul.f32 %v8736_v15, %v8736_v15 }
  0x78   : > { %7161 = vmatpush3.msra.mxu0 %v469_v17  ;;  %v365_v47 = vadd.f32 %v364_v38, %v326_v36  ;;  %v400_v17 = vmul.f32 %v327_v42, %v327_v42  ;;  %v422_v21 = vadd.f32 %v421_v12, %v396_v62  ;;  %v8745_v24 = vld [vmem:[%s8675_s14 + $0xc0] sm:$0xff]  ;;  %v8748_v25 = vld [vmem:[%s8675_s14 + $0xc8] sm:$0xff]  ;;  %v8757_v33 = vld [vmem:[%s8675_s14 + $0xd8] sm:$0xff] }
  0x79   : > { %7162 = vmatprep.subr.mxu0 %v8487_v0  ;;  %v351_v55 = vadd.f32 %v350_v46, %v327_v42  ;;  %v8767_v40 = vld [vmem:[%s8675_s14 + $0xe0] sm:$0xff]  ;;  %v406_v42 = vmul.f32 %v8727_v6, %v8727_v6  ;;  %v8779_v48 = vld [vmem:[%s8675_s14 + $0xf0] sm:$0xff] }
  0x7a   : > { %7163 = vmatpush3.msra.mxu0 %v468_v22  ;;  %v366_v56 = vadd.f32 %v365_v47, %v328_v43  ;;  %v437_v22 = vadd.f32 %v436_v13, %v397_v63  ;;  %v423_v30 = vadd.f32 %v422_v21, %v398_v8  ;;  %v407_v43 = vmul.f32 %v8730_v7, %v8730_v7 }
  0x7b   : > { %7164 = vmatprep.subr.mxu0 %v8487_v0  ;;  %v352_v1 = vadd.f32 %v351_v55, %v329_v51  ;;  %v410_v55 = vmul.f32 %v8745_v24, %v8745_v24  ;;  %v412_v63 = vmul.f32 %v8754_v32, %v8754_v32  ;;  %v414_v8 = vmul.f32 %v8767_v40, %v8767_v40 }
  0x7c   : > { %7165 = vmatpush3.msra.mxu0 %v467_v31  ;;  %v367_v2 = vadd.f32 %v366_v56, %v330_v52  ;;  %v438_v31 = vadd.f32 %v437_v22, %v399_v9  ;;  %v424_v38 = vadd.f32 %v423_v30, %v400_v17  ;;  %v411_v56 = vmul.f32 %v8748_v25, %v8748_v25 }
  0x7d   : > { %7166 = vmatprep.subr.mxu0 %v8487_v0  ;;  %v353_v10 = vadd.f32 %v352_v1, %v8720_v60  ;;  %v413_v1 = vmul.f32 %v8757_v33, %v8757_v33  ;;  %v416_v13 = vmul.f32 %v8779_v48, %v8779_v48 }
  0x7e   : > { %7167 = vmatpush3.msra.mxu0 %v466_v34  ;;  %v368_v11 = vadd.f32 %v367_v2, %v8723_v61  ;;  %v404_v34 = vmul.f32 %v8720_v60, %v8720_v60  ;;  %v439_v39 = vadd.f32 %v438_v31, %v401_v18  ;;  %v425_v46 = vadd.f32 %v424_v38, %v402_v26 }
  0x7f   : > { %7168 = vmatprep.subr.mxu0 %v8487_v0  ;;  %v354_v19 = vadd.f32 %v353_v10, %v8727_v6 }
  0x80   : > { %7169 = vmatpush3.msra.mxu0 %v465_v41  ;;  %v369_v20 = vadd.f32 %v368_v11, %v8730_v7  ;;  %v8770_v41 = vld [vmem:[%s8675_s14 + $0xe8] sm:$0xff]  ;;  %v440_v47 = vadd.f32 %v439_v39, %v403_v27  ;;  %v426_v53 = vadd.f32 %v425_v46, %v404_v34 }
  0x81   : > { %7170 = vmatprep.subr.mxu0 %v8487_v0  ;;  %v355_v28 = vadd.f32 %v354_v19, %v8736_v15  ;;  %v415_v10 = vmul.f32 %v8770_v41, %v8770_v41 }
  0x82   : > { %7171 = vmatpush3.msra.mxu0 %v464_v50  ;;  %v370_v29 = vadd.f32 %v369_v20, %v8739_v16  ;;  %v409_v50 = vmul.f32 %v8739_v16, %v8739_v16  ;;  %v441_v54 = vadd.f32 %v440_v47, %v405_v35  ;;  %v7861_v47 = vld [vmem:[#allocation10 + $0x78] sm:$0xff]  }
  0x83   : > { %7172 = vmatprep.subr.mxu0 %v8487_v0  ;;  %v356_v36 = vadd.f32 %v355_v28, %v8745_v24  ;;  %7183 = vmatprep.subr.bf16.mxu1 %v7861_v47 }
  0x84   : > { %7173 = vmatpush3.msra.mxu0 %v463_v59  ;;  %v371_v37 = vadd.f32 %v370_v29, %v8748_v25  ;;  %v427_v59 = vadd.f32 %v426_v53, %v406_v42  ;;  %v442_v62 = vadd.f32 %v441_v54, %v407_v43  ;;  %7184 = vmatpush3.bf16.msra.mxu1 %v7861_v47  ;;  %v7867_v53 = vld [vmem:[#allocation10 + $0x28] sm:$0xff]   ;;  %v7866_v54 = vld [vmem:[#allocation10 + $0x60] sm:$0xff]  }
  0x85   : > { %7174 = vmatprep.subr.mxu0 %v8487_v0  ;;  %v357_v44 = vadd.f32 %v356_v36, %v8754_v32  ;;  %v8284_v47 = vld [vmem:[%s8675_s14 + $0x60] sm:$0xff] }
  0x86   : > { %7175 = vmatpush3.msra.mxu0 %v462_v5  ;;  %v372_v45 = vadd.f32 %v371_v37, %v8757_v33  ;;  %v428_v4 = vadd.f32 %v427_v59, %v408_v49  ;;  %v443_v5 = vadd.f32 %v442_v62, %v409_v50  ;;  %v7863_v49 = vld [vmem:[#allocation10 + $0x38] sm:$0xff]   ;;  %v7862_v50 = vld [vmem:[#allocation10 + $0x70] sm:$0xff]   ;;  %v7872_v62 = vld [vmem:[#allocation10 + $0x48] sm:$0xff]  }
  0x87   : > { %7176 = vmatprep.subr.mxu0 %v8487_v0  ;;  %v358_v51 = vadd.f32 %v357_v44, %v8767_v40  ;;  %7185 = vmatprep.subr.bf16.mxu1 %v7862_v50  ;;  %v7873_v59 = vld [vmem:[#allocation10 + $0x10] sm:$0xff]  }
  0x88   : > { %7177 = vmatpush3.msra.mxu0 %v461_v14  ;;  %v373_v52 = vadd.f32 %v372_v45, %v8770_v41  ;;  %v429_v11 = vadd.f32 %v428_v4, %v410_v55  ;;  %v444_v12 = vadd.f32 %v443_v5, %v411_v56  ;;  %7186 = vmatpush3.bf16.msra.mxu1 %v7862_v50  ;;  %v7869_v55 = vld [vmem:[#allocation10 + $0x20] sm:$0xff]   ;;  %v7868_v56 = vld [vmem:[#allocation10 + $0x58] sm:$0xff]   ;;  %v8285_v50 = vld [vmem:[%s8675_s14 + $0x68] sm:$0xff] }
  0x89   : > { %7178 = vmatprep.subr.mxu0 %v8487_v0  ;;  %v8782_v0 = vld [vmem:[%s8675_s14 + $0xf8] sm:$0xff]  ;;  %v359_v57 = vadd.f32 %v358_v51, %v8779_v48  ;;  %v7865_v51 = vld [vmem:[#allocation10 + $0x30] sm:$0xff]  }
  0x8a   : > { %7179 = vmatpush3.msra.mxu0 %v460_v23  ;;  %v374_v58 = vadd.f32 %v373_v52, %v8782_v0  ;;  %v417_v17 = vmul.f32 %v8782_v0, %v8782_v0  ;;  %v430_v18 = vadd.f32 %v429_v11, %v412_v63  ;;  %v445_v19 = vadd.f32 %v444_v12, %v413_v1  ;;  %v7864_v52 = vld [vmem:[#allocation10 + $0x68] sm:$0xff]   ;;  %v7874_v1 = vld [vmem:[#allocation10 + $0x40] sm:$0xff]   ;;  %v7878_v4 = vld [vmem:[#allocation10 + $0xb8] sm:$0xff]  }
  0x8b   : > { %v376_v2 = vmul.f32 0.0625, %v359_v57  ;;  %7215 = vmatprep.subr.bf16.mxu0 %v7863_v49  ;;  %7187 = vmatprep.subr.bf16.mxu1 %v7864_v52  ;;  %v7871_v57 = vld [vmem:[#allocation10 + $0x18] sm:$0xff]   ;;  %v8489_v63 = vmov 0  }
  0x8c   : > { %v377_v3 = vmul.f32 0.0625, %v374_v58  ;;  %v431_v21 = vadd.f32 %v430_v18, %v414_v8  ;;  %v446_v22 = vadd.f32 %v445_v19, %v415_v10  ;;  %7188 = vmatpush3.bf16.msra.mxu1 %v7864_v52  ;;  %v7870_v58 = vld [vmem:[#allocation10 + $0x50] sm:$0xff]   ;;  %1224 = vst [vmem:[#allocation3] sm:$0xf] %v8489_v63  ;;  %1225 = vst [vmem:[#allocation3 + $0x4] sm:$0xf] %v8489_v63 }
  0x8d   : > { %7189 = vmatprep.subr.bf16.mxu1 %v7866_v54  ;;  %1058 = vst [vmem:[#allocation2] sm:$0xf] %v8489_v63  ;;  %1059 = vst [vmem:[#allocation2 + $0x4] sm:$0xf] %v8489_v63  ;;  %v8286_v52 = vld [vmem:[%s8675_s14 + $0x70] sm:$0xff] }
  0x8e   : > { %v378_v9 = vadd.f32 %v377_v3, %v376_v2  ;;  %v432_v26 = vadd.f32 %v431_v21, %v416_v13  ;;  %v447_v27 = vadd.f32 %v446_v22, %v417_v17  ;;  %1061 = vst [vmem:[#allocation2 + $0x88] sm:$0xf] %v8489_v63  ;;  %1062 = vst [vmem:[#allocation2 + $0x8c] sm:$0xf] %v8489_v63  ;;  %v7875_v2 = vld [vmem:[#allocation10 + $0x8] sm:$0xff]   ;;  %v7877_v3 = vld [vmem:[#allocation10] sm:$0xff]  }
  0x8f   : > { %1227 = vst [vmem:[#allocation3 + $0x88] sm:$0xf] %v8489_v63  ;;  %1228 = vst [vmem:[#allocation3 + $0x8c] sm:$0xf] %v8489_v63  ;;  %v6053_v17 = vld [vmem:[%s9914_s1] ss:$0 sm:$0xff] }
  0x90   : > { %v379_v14 = vrot.slane %v378_v9, 4  ;;  %v448_v29 = vmul.f32 0.0625, %v432_v26  ;;  %v449_v30 = vmul.f32 0.0625, %v447_v27  ;;  %7190 = vmatpush3.bf16.msra.mxu1 %v7866_v54  ;;  %1390 = vst [vmem:[#allocation4] sm:$0xf] %v8489_v63  ;;  %v8287_v54 = vld [vmem:[%s8675_s14 + $0x78] sm:$0xff] }
  0x91   : > { %7191 = vmatprep.subr.bf16.mxu1 %v7868_v56  ;;  %1391 = vst [vmem:[#allocation4 + $0x4] sm:$0xf] %v8489_v63  ;;  %1393 = vst [vmem:[#allocation4 + $0x88] sm:$0xf] %v8489_v63  ;;  %v561_v26 = vld [vmem:[%s9915_s2] sm:$0x1] }
  0x92   : > { %v380_v20 = vadd.f32 %v379_v14, %v378_v9  ;;  %v450_v31 = vadd.f32 %v449_v30, %v448_v29  ;;  %1394 = vst [vmem:[#allocation4 + $0x8c] sm:$0xf] %v8489_v63  ;;  %v567_v14 = vlaneseq }
  0x93   : > { %v7876_v5 = vld [vmem:[#allocation3] sm:$0xff]  }
  0x94   : > { %v381_v23 = vrot.slane %v380_v20, 2  ;;  %v451_v35 = vrot.slane %v450_v31, 4  ;;  %7192 = vmatpush3.bf16.msra.mxu1 %v7868_v56  ;;  %7199 = vmatprep.mubr.bf16.mxu1 %v7876_v5  ;;  %v7881_v18 = vld [vmem:[#allocation2] sm:$0xff]   ;;  %v568_v22 = vshrl.u32 %v567_v14, 7  ;;  %v8288_v56 = vld [vmem:[%s8675_s14 + $0x80] sm:$0xff] }
  0x95   : > { %7193 = vmatprep.subr.bf16.mxu1 %v7870_v58 }
  0x96   : > { %v382_v28 = vadd.f32 %v381_v23, %v380_v20  ;;  %v452_v36 = vadd.f32 %v451_v35, %v450_v31  ;;  %v7884_v20 = vld [vmem:[#allocation10 + $0xf8] sm:$0xff]   ;;  %v606_v30 = vsub.s32 0, %v568_v22  ;;  %v8279_v35 = vld [vmem:[%s8675_s14 + $0x30] sm:$0xff] }
  0x98   : > { %v383_v34 = vrot.slane %v382_v28, 1  ;;  %v453_v38 = vrot.slane %v452_v36, 2  ;;  %7194 = vmatpush3.bf16.msra.mxu1 %v7870_v58  ;;  %v8289_v58 = vld [vmem:[%s8675_s14 + $0x88] sm:$0xff] }
  0x99   : > { %7195 = vmatprep.subr.bf16.mxu1 %v7872_v62 }
  0x9a   : > { %v384_v37 = vadd.f32 %v383_v34, %v382_v28  ;;  %v454_v39 = vadd.f32 %v453_v38, %v452_v36  ;;  %v569_v28 = vsub.s32 1, %v568_v22 }
  0x9c   : > { %v385_v42 = vmul.f32 0.0625, %v384_v37  ;;  %v455_v43 = vrot.slane %v454_v39, 1  ;;  %7196 = vmatpush3.bf16.msra.mxu1 %v7872_v62  ;;  %v8280_v37 = vld [vmem:[%s8675_s14 + $0x40] sm:$0xff] }
  0x9d   : > { %7197 = vmatprep.subr.bf16.mxu1 %v7874_v1 }
  0x9e   : > { %v456_v44 = vadd.f32 %v455_v43, %v454_v39  ;;  %v8281_v39 = vld [vmem:[%s8675_s14 + $0x48] sm:$0xff]  ;;  %v8282_v43 = vld [vmem:[%s8675_s14 + $0x50] sm:$0xff] }
  0xa0   : > { %v457_v45 = vmul.f32 0.0625, %v456_v44  ;;  %7198 = vmatpush3.bf16.msra.mxu1 %v7874_v1 }
  0xa1   : > { %7247 = vmatprep.subr.bf16.mxu1 %v7878_v4 }
  0xa2   : > { %v459_v46 = vsel %vm458_vm1, %v385_v42, %v457_v45  ;;  %v8283_v45 = vld [vmem:[%s8675_s14 + $0x58] sm:$0xff] }
  0xa3   : > { %7181 = vmatmul.mubr.f32.vlgmr.msra.gmra.mxu0 %v459_v46 }
  0xa4   : > { %7216 = vmatpush3.bf16.msra.mxu0 %v7863_v49  ;;  %7231 = vmatprep.mubr.bf16.mxu0 %v7881_v18 }
  0xa5   : > { %7217 = vmatprep.subr.bf16.mxu0 %v7865_v51 }
  0xa8   : > { %7218 = vmatpush3.bf16.msra.mxu0 %v7865_v51 }
  0xa9   : > { %7219 = vmatprep.subr.bf16.mxu0 %v7867_v53 }
  0xac   : > { %7220 = vmatpush3.bf16.msra.mxu0 %v7867_v53 }
  0xad   : > { %7221 = vmatprep.subr.bf16.mxu0 %v7869_v55 }
  0xb0   : > { %7222 = vmatpush3.bf16.msra.mxu0 %v7869_v55 }
  0xb1   : > { %7223 = vmatprep.subr.bf16.mxu0 %v7871_v57 }
  0xb4   : > { %7224 = vmatpush3.bf16.msra.mxu0 %v7871_v57 }
  0xb5   : > { %7225 = vmatprep.subr.bf16.mxu0 %v7873_v59 }
  0xb8   : > { %7226 = vmatpush3.bf16.msra.mxu0 %v7873_v59 }
  0xb9   : > { %7227 = vmatprep.subr.bf16.mxu0 %v7875_v2 }
  0xbc   : > { %7228 = vmatpush3.bf16.msra.mxu0 %v7875_v2 }
  0xbd   : > { %7229 = vmatprep.subr.bf16.mxu0 %v7877_v3 }
  0xc0   : > { %7230 = vmatpush3.bf16.msra.mxu0 %v7877_v3 }
  0xc1   : > { %7279 = vmatprep.subr.bf16.mxu0 %v7884_v20 }
 0x163   : > { %v542_v8 = vpop.f32.mrf.mxu0 }
 0x164   : > { %v546_v9 = vmul.f32 %v542_v8, %v542_v8 }
 0x165   : > { %v7182_v10 = vpop.f32.mrf.mxu0 }
 0x166   : > { %v548_v11 = vrot.slane %v546_v9, 7 }
 0x168   : > { %v550_v12 = vsub.f32 %v542_v8, %v548_v11 }
 0x16a   : > { %v551_v13 = vadd.f32 1e-05, %v550_v12 }
 0x16c   : > { %8149 = vrsqrt.f32 %v551_v13 }
 0x179   : > { %v8150_v19 = vpop.eup %8149 }
 0x17a   : > { %v560_v21 = vmul.f32 %v8150_v19, %v6053_v17 }
 0x17c   : > { %v563_v23 = vrot.slane %v560_v21, 1  ;;  %v8815_v31 = vrot.slane %v560_v21, %v569_v28 }
 0x17e   : > { %v565_v27 = vmul.f32 %v563_v23, %v542_v8  ;;  %v8821_v36 = vmul.f32 %v8279_v35, %v8815_v31  ;;  %v579_v38 = vmul.f32 %v8280_v37, %v8815_v31  ;;  %v580_v42 = vmul.f32 %v8281_v39, %v8815_v31 }
 0x17f   : > { %v581_v44 = vmul.f32 %v8282_v43, %v8815_v31  ;;  %v582_v46 = vmul.f32 %v8283_v45, %v8815_v31  ;;  %v583_v49 = vmul.f32 %v8284_v47, %v8815_v31  ;;  %v584_v51 = vmul.f32 %v8285_v50, %v8815_v31 }
 0x180   : > { %v566_v29 = vsub.f32 %v561_v26, %v565_v27  ;;  %v585_v53 = vmul.f32 %v8286_v52, %v8815_v31  ;;  %v586_v55 = vmul.f32 %v8287_v54, %v8815_v31  ;;  %v587_v57 = vmul.f32 %v8288_v56, %v8815_v31 }
 0x181   : > { %v588_v59 = vmul.f32 %v8289_v58, %v8815_v31  ;;  %v589_v62 = vmul.f32 %v8815_v31, %v8720_v60  ;;  %v590_v1 = vmul.f32 %v8815_v31, %v8723_v61  ;;  %v591_v5 = vmul.f32 %v8815_v31, %v8727_v6 }
 0x182   : > { %v8817_v34 = vrot.slane %v566_v29, %v606_v30  ;;  %v592_v60 = vmul.f32 %v8815_v31, %v8730_v7  ;;  %v593_v8 = vmul.f32 %v8815_v31, %v8736_v15  ;;  %v594_v9 = vmul.f32 %v8815_v31, %v8739_v16 }
 0x183   : > { %v595_v10 = vmul.f32 %v8815_v31, %v8745_v24  ;;  %v596_v11 = vmul.f32 %v8815_v31, %v8748_v25  ;;  %v597_v7 = vmul.f32 %v8815_v31, %v8754_v32  ;;  %v598_v24 = vmul.f32 %v8815_v31, %v8757_v33 }
 0x184   : > { %v8846_v63 = vadd.f32 %v8817_v34, %v579_v38  ;;  %v8851_v2 = vadd.f32 %v8817_v34, %v580_v42  ;;  %v8854_v3 = vadd.f32 %v8817_v34, %v581_v44  ;;  %v8857_v4 = vadd.f32 %v8817_v34, %v582_v46 }
 0x185   : > { %v8866_v61 = vadd.f32 %v8817_v34, %v583_v49  ;;  %v8875_v6 = vadd.f32 %v8817_v34, %v584_v51  ;;  %v8880_v15 = vadd.f32 %v8817_v34, %v585_v53  ;;  %v8883_v12 = vadd.f32 %v8817_v34, %v586_v55 }
 0x186   : > { %v649_v16 = vsub.f32 0.0, %v8846_v63  ;;  %v650_v13 = vsub.f32 0.0, %v8851_v2  ;;  %v651_v25 = vsub.f32 0.0, %v8854_v3  ;;  %v652_v14 = vsub.f32 0.0, %v8857_v4 }
 0x187   : > { %v599_v32 = vmul.f32 %v8815_v31, %v8767_v40  ;;  %v600_v17 = vmul.f32 %v8815_v31, %v8770_v41  ;;  %v8896_v18 = vadd.f32 %v8817_v34, %v587_v57  ;;  %v653_v19 = vsub.f32 0.0, %v8866_v61 }
 0x188   : > { %v601_v33 = vmul.f32 %v8815_v31, %v8779_v48  ;;  %v602_v20 = vmul.f32 %v8815_v31, %v8782_v0  ;;  %v8904_v21 = vadd.f32 %v8817_v34, %v588_v59  ;;  %v654_v22 = vsub.f32 0.0, %v8875_v6 }
 0x189   : > { %v8908_v40 = vadd.f32 %v8817_v34, %v589_v62  ;;  %v655_v41 = vsub.f32 0.0, %v8880_v15  ;;  %v656_v23 = vsub.f32 0.0, %v8883_v12  ;;  %v689_v26 = vmul.f32 1.442695, %v649_v16 }
 0x18a   : > { %v8913_v27 = vadd.f32 %v8817_v34, %v590_v1  ;;  %v691_v48 = vmul.f32 1.442695, %v650_v13  ;;  %v693_v28 = vmul.f32 1.442695, %v651_v25  ;;  %v695_v29 = vmul.f32 1.442695, %v652_v14 }
 0x18b   : > { %v8916_v0 = vadd.f32 %v8817_v34, %v591_v5  ;;  %v657_v30 = vsub.f32 0.0, %v8896_v18  ;;  %8151 = vpow2.f32 %v689_v26  ;;  %v697_v35 = vmul.f32 1.442695, %v653_v19  ;;  %v8290_v14 = vld [vmem:[%s8675_s14 + $0x38] sm:$0xff] }
 0x18c   : > { %v8920_v37 = vadd.f32 %v8817_v34, %v592_v60  ;;  %v658_v38 = vsub.f32 0.0, %v8904_v21  ;;  %8153 = vpow2.f32 %v691_v48  ;;  %v699_v39 = vmul.f32 1.442695, %v654_v22 }
 0x18d   : > { %v8924_v42 = vadd.f32 %v8817_v34, %v593_v8  ;;  %v659_v43 = vsub.f32 0.0, %v8908_v40  ;;  %8155 = vpow2.f32 %v693_v28  ;;  %v701_v44 = vmul.f32 1.442695, %v655_v41 }
 0x18e   : > { %v8928_v45 = vadd.f32 %v8817_v34, %v594_v9  ;;  %v660_v46 = vsub.f32 0.0, %v8913_v27  ;;  %8157 = vpow2.f32 %v695_v29  ;;  %v703_v47 = vmul.f32 1.442695, %v656_v23 }
 0x18f   : > { %v8932_v49 = vadd.f32 %v8817_v34, %v595_v10  ;;  %v661_v50 = vsub.f32 0.0, %v8916_v0  ;;  %8159 = vpow2.f32 %v697_v35  ;;  %v705_v51 = vmul.f32 1.442695, %v657_v30 }
 0x190   : > { %v8936_v52 = vadd.f32 %v8817_v34, %v596_v11  ;;  %v662_v53 = vsub.f32 0.0, %v8920_v37  ;;  %8161 = vpow2.f32 %v699_v39  ;;  %v707_v54 = vmul.f32 1.442695, %v658_v38 }
 0x191   : > { %v8940_v55 = vadd.f32 %v8817_v34, %v597_v7  ;;  %v663_v56 = vsub.f32 0.0, %v8924_v42  ;;  %8163 = vpow2.f32 %v701_v44  ;;  %v709_v57 = vmul.f32 1.442695, %v659_v43 }
 0x192   : > { %v8944_v58 = vadd.f32 %v8817_v34, %v598_v24  ;;  %v664_v59 = vsub.f32 0.0, %v8928_v45  ;;  %8165 = vpow2.f32 %v703_v47  ;;  %v711_v62 = vmul.f32 1.442695, %v660_v46 }
 0x193   : > { %v8948_v1 = vadd.f32 %v8817_v34, %v599_v32  ;;  %v665_v5 = vsub.f32 0.0, %v8932_v49  ;;  %8167 = vpow2.f32 %v705_v51  ;;  %v713_v60 = vmul.f32 1.442695, %v661_v50 }
 0x194   : > { %v8952_v8 = vadd.f32 %v8817_v34, %v600_v17  ;;  %v666_v9 = vsub.f32 0.0, %v8936_v52  ;;  %8169 = vpow2.f32 %v707_v54  ;;  %v715_v10 = vmul.f32 1.442695, %v662_v53 }
 0x195   : > { %v8956_v11 = vadd.f32 %v8817_v34, %v601_v33  ;;  %v667_v7 = vsub.f32 0.0, %v8940_v55  ;;  %8171 = vpow2.f32 %v709_v57  ;;  %v717_v16 = vmul.f32 1.442695, %v663_v56 }
 0x196   : > { %v8960_v24 = vadd.f32 %v8817_v34, %v602_v20  ;;  %v668_v13 = vsub.f32 0.0, %v8944_v58  ;;  %8173 = vpow2.f32 %v711_v62  ;;  %v719_v25 = vmul.f32 1.442695, %v664_v59  ;;  %v8291_v59 = vld [vmem:[%s8675_s14 + $0x20] sm:$0xff] }
 0x197   : > { %v578_v32 = vmul.f32 %v8290_v14, %v8815_v31  ;;  %v669_v17 = vsub.f32 0.0, %v8948_v1  ;;  %8175 = vpow2.f32 %v713_v60  ;;  %v721_v19 = vmul.f32 1.442695, %v665_v5  ;;  %v8292_v60 = vld [vmem:[%s8675_s14] sm:$0xff] }
 0x198   : > { %v8152_v33 = vpop.eup %8151  ;;  %v670_v22 = vsub.f32 0.0, %v8952_v8  ;;  %8177 = vpow2.f32 %v715_v10  ;;  %v723_v41 = vmul.f32 1.442695, %v666_v9  ;;  %v8969_v20 = vadd.f32 %v8817_v34, %v8821_v36 }
 0x199   : > { %v8154_v23 = vpop.eup %8153  ;;  %v671_v26 = vsub.f32 0.0, %v8956_v11  ;;  %8179 = vpow2.f32 %v717_v16  ;;  %v725_v48 = vmul.f32 1.442695, %v667_v7  ;;  %v8973_v28 = vadd.f32 %v8817_v34, %v578_v32  ;;  %v8293_v7 = vld [vmem:[%s8675_s14 + $0x28] sm:$0xff] }
 0x19a   : > { %9949 = vst [vmem:[#allocation18_spill] sm:$0xff] %v8969_v20  ;;  %v8156_v29 = vpop.eup %8155  ;;  %v672_v30 = vsub.f32 0.0, %v8960_v24  ;;  %8181 = vpow2.f32 %v719_v25  ;;  %v727_v35 = vmul.f32 1.442695, %v668_v13  ;;  %v729_v39 = vmul.f32 1.442695, %v669_v17 }
 0x19b   : > { %9950 = vst [vmem:[#allocation19_spill] sm:$0xff] %v8973_v28  ;;  %v8158_v38 = vpop.eup %8157  ;;  %8183 = vpow2.f32 %v721_v19  ;;  %v731_v36 = vmul.f32 1.442695, %v670_v22  ;;  %v733_v46 = vmul.f32 1.442695, %v671_v26  ;;  %v745_v53 = vadd.f32 1.0, %v8152_v33 }
 0x19c   : > { %v8160_v43 = vpop.eup %8159  ;;  %8185 = vpow2.f32 %v723_v41  ;;  %v735_v50 = vmul.f32 1.442695, %v672_v30  ;;  %v746_v56 = vadd.f32 1.0, %v8154_v23  ;;  %v575_v62 = vmul.f32 %v8291_v59, %v8815_v31  ;;  %v8294_v25 = vld [vmem:[%s8675_s14 + $0x8] sm:$0xff]  ;;  %v8295_v33 = vld [vmem:[%s8675_s14 + $0x10] sm:$0xff] }
 0x19d   : > { %v8162_v44 = vpop.eup %8161  ;;  %8187 = vpow2.f32 %v725_v48  ;;  %v747_v5 = vadd.f32 1.0, %v8156_v29  ;;  %v571_v9 = vmul.f32 %v8292_v60, %v8815_v31  ;;  %v576_v16 = vmul.f32 %v8293_v7, %v8815_v31  ;;  %v8296_v48 = vld [vmem:[%s8675_s14 + $0x18] sm:$0xff]  ;;  %s8411_s14 = scalar_lea.vmem %s8410_s20, 8192 }
 0x19e   : > { %v8164_v47 = vpop.eup %8163  ;;  %8189 = vpow2.f32 %v727_v35  ;;  %v748_v13 = vadd.f32 1.0, %v8158_v38  ;;  %v572_v14 = vmul.f32 %v8294_v25, %v8815_v31  ;;  %v749_v17 = vadd.f32 1.0, %v8160_v43  ;;  %p8413_p10 = scmp.lt.s32.totalorder %s8411_s14, %s8405_s26 }
 0x19f   : > { %v8166_v51 = vpop.eup %8165  ;;  %8191 = vpow2.f32 %v729_v39  ;;  %v8985_v19 = vadd.f32 %v8817_v34, %v571_v9  ;;  %v573_v22 = vmul.f32 %v8295_v33, %v8815_v31  ;;  %v750_v23 = vadd.f32 1.0, %v8162_v44 }
 0x1a0   : > { %v8168_v54 = vpop.eup %8167  ;;  %8193 = vpow2.f32 %v731_v36  ;;  %v8990_v26 = vadd.f32 %v8817_v34, %v572_v14  ;;  %v574_v29 = vmul.f32 %v8296_v48, %v8815_v31  ;;  %v751_v35 = vadd.f32 1.0, %v8164_v47  ;;  %p8414_p2 = por %p8413_p10, %p8412_p5 }
 0x1a1   : > { %v8170_v57 = vpop.eup %8169  ;;  %8195 = vpow2.f32 %v733_v46  ;;  %v8995_v38 = vadd.f32 %v8817_v34, %v575_v62  ;;  %v8998_v39 = vadd.f32 %v8817_v34, %v576_v16  ;;  %v752_v36 = vadd.f32 1.0, %v8166_v51 }
 0x1a2   : > { %v8172_v10 = vpop.eup %8171  ;;  %8197 = vpow2.f32 %v735_v50  ;;  %9951 = vst [vmem:[#allocation20_spill] sm:$0xff] %v8990_v26  ;;  %v9001_v44 = vadd.f32 %v8817_v34, %v573_v22  ;;  %v9004_v46 = vadd.f32 %v8817_v34, %v574_v29  ;;  %v753_v31 = vadd.f32 1.0, %v8168_v54  ;;  %p8415_p9 = pnand %p8414_p2, %p8408_p0 }
 0x1a3   : > { %v8174_v32 = vpop.eup %8173  ;;  %8199 = vrcp.f32 %v745_v53  ;;  %9952 = vst [vmem:[#allocation21_spill] sm:$0xff] %v8995_v38  ;;  %9953 = vst [vmem:[#allocation22_spill] sm:$0xff] %v8998_v39  ;;  %v754_v53 = vadd.f32 1.0, %v8170_v57  ;;  %v642_v59 = vsub.f32 0.0, %v8990_v26  ;;  %v645_v51 = vsub.f32 0.0, %v8995_v38 }
 0x1a4   : > { %v8176_v41 = vpop.eup %8175  ;;  %8201 = vrcp.f32 %v746_v56  ;;  %9954 = vst [vmem:[#allocation23_spill] sm:$0xff] %v9001_v44  ;;  %9955 = vst [vmem:[#allocation24_spill] sm:$0xff] %v9004_v46  ;;  %v641_v56 = vsub.f32 0.0, %v8985_v19  ;;  %v646_v60 = vsub.f32 0.0, %v8998_v39  ;;  %v756_v34 = vadd.f32 1.0, %v8174_v32 }
 0x1a5   : > { %v8178_v30 = vpop.eup %8177  ;;  %8203 = vrcp.f32 %v747_v5  ;;  %v755_v5 = vadd.f32 1.0, %v8172_v10  ;;  %v643_v54 = vsub.f32 0.0, %v9001_v44  ;;  %v644_v7 = vsub.f32 0.0, %v9004_v46 }
 0x1a6   : > { %v8180_v43 = vpop.eup %8179  ;;  %8205 = vrcp.f32 %v748_v13  ;;  %v757_v16 = vadd.f32 1.0, %v8176_v41  ;;  %v647_v13 = vsub.f32 0.0, %v8969_v20  ;;  %v648_v25 = vsub.f32 0.0, %v8973_v28 }
 0x1a7   : > { %v8182_v50 = vpop.eup %8181  ;;  %8207 = vrcp.f32 %v749_v17  ;;  %v758_v14 = vadd.f32 1.0, %v8178_v30  ;;  %v9014_v17 = vmul.f32 1.442695, %v641_v56  ;;  %v9016_v33 = vmul.f32 1.442695, %v642_v59 }
 0x1a8   : > { %v8184_v47 = vpop.eup %8183  ;;  %8209 = vrcp.f32 %v750_v23  ;;  %v759_v22 = vadd.f32 1.0, %v8180_v43  ;;  %v9018_v23 = vmul.f32 1.442695, %v645_v51  ;;  %v9020_v48 = vmul.f32 1.442695, %v646_v60 }
 0x1a9   : > { %v8186_v62 = vpop.eup %8185  ;;  %8211 = vrcp.f32 %v751_v35  ;;  %v760_v29 = vadd.f32 1.0, %v8182_v50  ;;  %v9022_v35 = vmul.f32 1.442695, %v643_v54  ;;  %v9028_v56 = vmul.f32 1.442695, %v648_v25 }
 0x1aa   : > { %v8188_v9 = vpop.eup %8187  ;;  %8213 = vrcp.f32 %v752_v36  ;;  %v9024_v36 = vmul.f32 1.442695, %v644_v7  ;;  %v762_v59 = vadd.f32 1.0, %v8186_v62 }
 0x1ab   : > { %v8190_v57 = vpop.eup %8189  ;;  %8215 = vrcp.f32 %v753_v31  ;;  %v761_v31 = vadd.f32 1.0, %v8184_v47 }
 0x1ac   : > { %v8192_v10 = vpop.eup %8191  ;;  %8217 = vrcp.f32 %v754_v53  ;;  %v9026_v53 = vmul.f32 1.442695, %v647_v13  ;;  %v764_v51 = vadd.f32 1.0, %v8190_v57 }
 0x1ad   : > { %v8194_v32 = vpop.eup %8193  ;;  %8219 = vrcp.f32 %v755_v5  ;;  %v763_v5 = vadd.f32 1.0, %v8188_v9  ;;  %v765_v28 = vadd.f32 1.0, %v8192_v10 }
 0x1ae   : > { %v8196_v41 = vpop.eup %8195  ;;  %8221 = vrcp.f32 %v756_v34  ;;  %v766_v50 = vadd.f32 1.0, %v8194_v32 }
 0x1af   : > { %v8198_v30 = vpop.eup %8197  ;;  %8223 = vrcp.f32 %v757_v16  ;;  %v767_v7 = vadd.f32 1.0, %v8196_v41 }
 0x1b0   : > { %v8200_v43 = vpop.eup %8199  ;;  %8225 = vrcp.f32 %v758_v14  ;;  %v768_v47 = vadd.f32 1.0, %v8198_v30 }
 0x1b1   : > { %v8202_v60 = vpop.eup %8201  ;;  %8227 = vrcp.f32 %v759_v22  ;;  %v9031_v34 = vmul.f32 %v8200_v43, %v8846_v63 }
 0x1b2   : > { %v8204_v54 = vpop.eup %8203  ;;  %8229 = vrcp.f32 %v760_v29  ;;  %v9034_v16 = vmul.f32 %v8202_v60, %v8851_v2 }
 0x1b3   : > { %v8206_v13 = vpop.eup %8205  ;;  %8231 = vrcp.f32 %v761_v31  ;;  %v9037_v62 = vmul.f32 %v8204_v54, %v8854_v3  ;;  %v877_v9 = vrot.slane %v9031_v34, 7 }
 0x1b4   : > { %v8208_v25 = vpop.eup %8207  ;;  %8233 = vrcp.f32 %v762_v59  ;;  %v6661_v63 = vpack.c.bf16 %v9034_v16, %v9031_v34  ;;  %v9044_v10 = vmul.f32 %v8206_v13, %v8857_v4  ;;  %v878_v2 = vrot.slane %v9034_v16, 7 }
 0x1b5   : > { %v8210_v14 = vpop.eup %8209  ;;  %8235 = vrcp.f32 %v763_v5  ;;  %v9048_v32 = vmul.f32 %v8208_v25, %v8866_v61  ;;  %v949_v3 = vsel %vm458_vm1, 0.0, %v877_v9  ;;  %v880_v22 = vrot.slane %v9037_v62, 7 }
 0x1b6   : > { %v8212_v41 = vpop.eup %8211  ;;  %8237 = vrcp.f32 %v764_v51  ;;  %v9053_v29 = vmul.f32 %v8210_v14, %v8875_v6  ;;  %6816 = vst [vmem:[#allocation3 + $0x28] sm:$0xff] %v6661_v63   ;;  %v6666_v4 = vpack.c.bf16 %v9044_v10, %v9037_v62  ;;  %v879_v30 = vsel %vm458_vm1, %v877_v9, %v878_v2 }
 0x1b7   : > { %v8214_v31 = vpop.eup %8213  ;;  %8239 = vrcp.f32 %v765_v28  ;;  %v9059_v61 = vmul.f32 %v8212_v41, %v8880_v15  ;;  %v6581_v43 = vpack.c.bf16 %v879_v30, %v949_v3  ;;  %v881_v59 = vrot.slane %v9044_v10, 7 }
 0x1b8   : > { %v8216_v5 = vpop.eup %8215  ;;  %8241 = vrcp.f32 %v766_v50  ;;  %v9063_v51 = vmul.f32 %v8214_v31, %v8883_v12  ;;  %6817 = vst [vmem:[#allocation3 + $0x30] sm:$0xff] %v6666_v4   ;;  %v950_v6 = vsel %vm458_vm1, 0.0, %v880_v22  ;;  %v6671_v60 = vpack.c.bf16 %v9053_v29, %v9048_v32 }
 0x1b9   : > { %v8218_v54 = vpop.eup %8217  ;;  %8243 = vrcp.f32 %v767_v7  ;;  %v9069_v15 = vmul.f32 %v8216_v5, %v8896_v18  ;;  %6801 = vst [vmem:[#allocation2 + $0x28] sm:$0xff] %v6581_v43   ;;  %v882_v50 = vsel %vm458_vm1, %v880_v22, %v881_v59 }
 0x1ba   : > { %v8220_v13 = vpop.eup %8219  ;;  %8245 = vrcp.f32 %v768_v47  ;;  %v9074_v12 = vmul.f32 %v8218_v54, %v8904_v21  ;;  %v6586_v25 = vpack.c.bf16 %v882_v50, %v950_v6  ;;  %6818 = vst [vmem:[#allocation3 + $0x38] sm:$0xff] %v6671_v60  }
 0x1bb   : > { %v8222_v63 = vpop.eup %8221  ;;  %v9078_v7 = vmul.f32 %v8220_v13, %v8908_v40  ;;  %8247 = vpow2.f32 %v9014_v17 }
 0x1bc   : > { %v8224_v14 = vpop.eup %8223  ;;  %v9084_v47 = vmul.f32 %v8222_v63, %v8913_v27  ;;  %8249 = vpow2.f32 %v9016_v33  ;;  %6802 = vst [vmem:[#allocation2 + $0x30] sm:$0xff] %v6586_v25  }
 0x1bd   : > { %v8226_v22 = vpop.eup %8225  ;;  %v9090_v40 = vmul.f32 %v8224_v14, %v8916_v0  ;;  %8251 = vpow2.f32 %v9022_v35 }
 0x1be   : > { %v8228_v4 = vpop.eup %8227  ;;  %v9096_v27 = vmul.f32 %v8226_v22, %v8920_v37  ;;  %8253 = vpow2.f32 %v9024_v36 }
 0x1bf   : > { %v8230_v31 = vpop.eup %8229  ;;  %v9102_v0 = vmul.f32 %v8228_v4, %v8924_v42  ;;  %8255 = vpow2.f32 %v9018_v23 }
 0x1c0   : > { %v8232_v35 = vpop.eup %8231  ;;  %v9108_v37 = vmul.f32 %v8230_v31, %v8928_v45  ;;  %v6691_v36 = vpack.c.bf16 %v9096_v27, %v9090_v40  ;;  %8257 = vpow2.f32 %v9020_v48 }
 0x1c1   : > { %v8234_v60 = vpop.eup %8233  ;;  %v9115_v42 = vmul.f32 %v8232_v35, %v8932_v49  ;;  %v9927_v54 = vrot.slane %v9102_v0, 7  ;;  %8259 = vpow2.f32 %v9026_v53  ;;  %v980_v53 = vrot.slane %v9048_v32, 1 }
 0x1c2   : > { %v8236_v23 = vpop.eup %8235  ;;  %v9121_v45 = vmul.f32 %v8234_v60, %v8936_v52  ;;  %v9928_v25 = vrot.slane %v9108_v37, 1  ;;  %v6696_v63 = vpack.c.bf16 %v9108_v37, %v9102_v0  ;;  %6822 = vst [vmem:[#allocation3 + $0x58] sm:$0xff] %v6691_v36  }
 0x1c3   : > { %v8238_v49 = vpop.eup %8237  ;;  %v9128_v14 = vmul.f32 %v8236_v23, %v8940_v55  ;;  %v901_v22 = vrot.slane %v9115_v42, 7  ;;  %v9134_v48 = vsel %vm458_vm1, 0.0, %v9927_v54  ;;  %v998_v52 = vrot.slane %v9115_v42, 1 }
 0x1c4   : > { %v8240_v4 = vpop.eup %8239  ;;  %v9138_v31 = vmul.f32 %v8238_v49, %v8944_v58  ;;  %v902_v35 = vrot.slane %v9121_v45, 7  ;;  %v999_v36 = vrot.slane %v9121_v45, 1  ;;  %v9145_v55 = vsel %vm961_vm2, %v9928_v25, 0.0  ;;  %6823 = vst [vmem:[#allocation3 + $0x60] sm:$0xff] %v6696_v63  }
 0x1c5   : > { %v8242_v60 = vpop.eup %8241  ;;  %v829_v23 = vmul.f32 %v8240_v4, %v8948_v1  ;;  %v904_v50 = vrot.slane %v9128_v14, 7  ;;  %v957_v59 = vsel %vm458_vm1, 0.0, %v901_v22  ;;  %v1001_v58 = vrot.slane %v9128_v14, 1 }
 0x1c6   : > { %v8244_v49 = vpop.eup %8243  ;;  %v830_v6 = vmul.f32 %v8242_v60, %v8952_v8  ;;  %v903_v54 = vsel %vm458_vm1, %v901_v22, %v902_v35  ;;  %v905_v13 = vrot.slane %v9138_v31, 7  ;;  %v1000_v25 = vsel %vm961_vm2, %v998_v52, %v999_v36 }
 0x1c7   : > { %v8246_v43 = vpop.eup %8245  ;;  %v831_v63 = vmul.f32 %v8244_v49, %v8956_v11  ;;  %v907_v5 = vrot.slane %v829_v23, 7  ;;  %v958_v1 = vsel %vm458_vm1, 0.0, %v904_v50  ;;  %v1002_v4 = vrot.slane %v9138_v31, 1 }
 0x1c8   : > { %v8248_v18 = vpop.eup %8247  ;;  %v832_v17 = vmul.f32 %v8246_v43, %v8960_v24  ;;  %v906_v33 = vsel %vm458_vm1, %v904_v50, %v905_v13  ;;  %v908_v8 = vrot.slane %v830_v6, 7  ;;  %v1004_v60 = vrot.slane %v829_v23, 1 }
 0x1c9   : > { %v8250_v22 = vpop.eup %8249  ;;  %v910_v35 = vrot.slane %v831_v63, 7  ;;  %v959_v21 = vsel %vm458_vm1, 0.0, %v907_v5  ;;  %v1003_v52 = vsel %vm961_vm2, %v1001_v58, %v1002_v4  ;;  %v1005_v28 = vrot.slane %v830_v6, 1 }
 0x1ca   : > { %v8252_v11 = vpop.eup %8251  ;;  %v909_v49 = vsel %vm458_vm1, %v907_v5, %v908_v8  ;;  %v911_v41 = vrot.slane %v832_v17, 7  ;;  %v1007_v30 = vrot.slane %v831_v63, 1  ;;  %v1008_v9 = vrot.slane %v832_v17, 1 }
 0x1cb   : > { %v8254_v57 = vpop.eup %8253  ;;  %v960_v24 = vsel %vm458_vm1, 0.0, %v910_v35  ;;  %v1006_v43 = vsel %vm961_vm2, %v1004_v60, %v1005_v28  ;;  %v1054_v50 = vsel %vm961_vm2, %v999_v36, 0.0  ;;  %v1055_v13 = vsel %vm961_vm2, %v1002_v4, 0.0 }
 0x1cc   : > { %v8256_v2 = vpop.eup %8255  ;;  %v912_v3 = vsel %vm458_vm1, %v910_v35, %v911_v41  ;;  %v1009_v58 = vsel %vm961_vm2, %v1007_v30, %v1008_v9  ;;  %v1056_v20 = vsel %vm961_vm2, %v1005_v28, 0.0  ;;  %v1057_v5 = vsel %vm961_vm2, %v1008_v9, 0.0 }
 0x1cd   : > { %v6621_v8 = vpack.c.bf16 %v903_v54, %v957_v59  ;;  %v6626_v39 = vpack.c.bf16 %v906_v33, %v958_v1  ;;  %v6631_v38 = vpack.c.bf16 %v909_v49, %v959_v21  ;;  %v6636_v46 = vpack.c.bf16 %v912_v3, %v960_v24  ;;  %v8258_v44 = vpop.eup %8257 }
 0x1ce   : > { %v6701_v60 = vpack.c.bf16 %v9121_v45, %v9115_v42  ;;  %v6706_v36 = vpack.c.bf16 %v9138_v31, %v9128_v14  ;;  %v6711_v4 = vpack.c.bf16 %v830_v6, %v829_v23  ;;  %v6716_v26 = vpack.c.bf16 %v832_v17, %v831_v63 }
 0x1cf   : > { %6811 = vst [vmem:[#allocation2 + $0x78] sm:$0xff] %v6631_v38   ;;  %6812 = vst [vmem:[#allocation2 + $0x80] sm:$0xff] %v6636_v46   ;;  %v6781_v41 = vpack.c.bf16 %v1054_v50, %v1000_v25  ;;  %v6786_v30 = vpack.c.bf16 %v1055_v13, %v1003_v52  ;;  %v6791_v28 = vpack.c.bf16 %v1056_v20, %v1006_v43  ;;  %v737_v9 = vadd.f32 1.0, %v8248_v18 }
 0x1d0   : > { %v6796_v35 = vpack.c.bf16 %v1057_v5, %v1009_v58  ;;  %6809 = vst [vmem:[#allocation2 + $0x68] sm:$0xff] %v6621_v8   ;;  %6810 = vst [vmem:[#allocation2 + $0x70] sm:$0xff] %v6626_v39   ;;  %v738_v21 = vadd.f32 1.0, %v8250_v22  ;;  %v739_v3 = vadd.f32 1.0, %v8252_v11  ;;  %v740_v33 = vadd.f32 1.0, %v8254_v57 }
 0x1d1   : > { %6824 = vst [vmem:[#allocation3 + $0x68] sm:$0xff] %v6701_v60   ;;  %6825 = vst [vmem:[#allocation3 + $0x70] sm:$0xff] %v6706_v36   ;;  %v741_v38 = vadd.f32 1.0, %v8256_v2  ;;  %v742_v46 = vadd.f32 1.0, %v8258_v44  ;;  %v9956_v20 = vrot.slane %v9053_v29, 7  ;;  %v9957_v39 = vrot.slane %v9048_v32, 7 }
 0x1d2   : > { %6826 = vst [vmem:[#allocation3 + $0x78] sm:$0xff] %v6711_v4   ;;  %6827 = vst [vmem:[#allocation3 + $0x80] sm:$0xff] %v6716_v26   ;;  %8261 = vrcp.f32 %v737_v9  ;;  %v975_v57 = vrot.slane %v9034_v16, 1  ;;  %v977_v59 = vrot.slane %v9037_v62, 1  ;;  %v978_v44 = vrot.slane %v9044_v10, 1 }
 0x1d3   : > { %6841 = vst [vmem:[#allocation4 + $0x78] sm:$0xff] %v6791_v28   ;;  %6842 = vst [vmem:[#allocation4 + $0x80] sm:$0xff] %v6796_v35   ;;  %v885_v17 = vsel %vm458_vm1, %v9957_v39, %v9956_v20  ;;  %v9958_v26 = vmov %v9957_v39  ;;  %8263 = vrcp.f32 %v738_v21  ;;  %v9959_v6 = vrot.slane %v9031_v34, 1 }
 0x1d4   : > { %6839 = vst [vmem:[#allocation4 + $0x68] sm:$0xff] %v6781_v41   ;;  %6840 = vst [vmem:[#allocation4 + $0x70] sm:$0xff] %v6786_v30   ;;  %v951_v18 = vsel %vm458_vm1, 0.0, %v9958_v26  ;;  %8265 = vrcp.f32 %v739_v3  ;;  %v1046_v54 = vsel %vm961_vm2, %v975_v57, 0.0  ;;  %v981_v45 = vrot.slane %v9053_v29, 1  ;;  %v8260_v26 = vpop.eup %8259 }
 0x1d5   : > { %v6591_v2 = vpack.c.bf16 %v885_v17, %v951_v18  ;;  %v976_v42 = vsel %vm961_vm2, %v9959_v6, %v975_v57  ;;  %8267 = vrcp.f32 %v740_v33  ;;  %v979_v62 = vsel %vm961_vm2, %v977_v59, %v978_v44 }
 0x1d6   : > { %v6741_v16 = vpack.c.bf16 %v1046_v54, %v976_v42  ;;  %v1047_v25 = vsel %vm961_vm2, %v978_v44, 0.0  ;;  %8269 = vrcp.f32 %v741_v38  ;;  %v982_v32 = vsel %vm961_vm2, %v980_v53, %v981_v45 }
 0x1d7   : > { %6803 = vst [vmem:[#allocation2 + $0x38] sm:$0xff] %v6591_v2   ;;  %v6746_v10 = vpack.c.bf16 %v1047_v25, %v979_v62  ;;  %v1048_v14 = vsel %vm961_vm2, %v981_v45, 0.0  ;;  %8271 = vrcp.f32 %v742_v46  ;;  %v886_v31 = vrot.slane %v9059_v61, 7 }
 0x1d8   : > { %6831 = vst [vmem:[#allocation4 + $0x28] sm:$0xff] %v6741_v16   ;;  %v6751_v34 = vpack.c.bf16 %v1048_v14, %v982_v32  ;;  %v6676_v29 = vpack.c.bf16 %v9063_v51, %v9059_v61  ;;  %8273 = vpow2.f32 %v9028_v56  ;;  %v984_v23 = vrot.slane %v9063_v51, 1 }
 0x1d9   : > { %6832 = vst [vmem:[#allocation4 + $0x30] sm:$0xff] %v6746_v10   ;;  %v889_v63 = vrot.slane %v9069_v15, 7  ;;  %v6681_v1 = vpack.c.bf16 %v9074_v12, %v9069_v15  ;;  %v9960_v22 = vrot.slane %v9063_v51, 7  ;;  %v952_v11 = vsel %vm458_vm1, 0.0, %v886_v31 }
 0x1da   : > { %6833 = vst [vmem:[#allocation4 + $0x38] sm:$0xff] %v6751_v34   ;;  %6819 = vst [vmem:[#allocation3 + $0x40] sm:$0xff] %v6676_v29   ;;  %v6686_v49 = vpack.c.bf16 %v9084_v47, %v9078_v7  ;;  %v9961_v56 = vrot.slane %v9084_v47, 7  ;;  %v9962_v24 = vrot.slane %v9078_v7, 7  ;;  %v9963_v13 = vrot.slane %v9059_v61, 1 }
 0x1db   : > { %v888_v52 = vsel %vm458_vm1, %v886_v31, %v9960_v22  ;;  %v1049_v51 = vsel %vm961_vm2, %v984_v23, 0.0  ;;  %v9964_v5 = vrot.slane %v9074_v12, 7  ;;  %6820 = vst [vmem:[#allocation3 + $0x48] sm:$0xff] %v6681_v1   ;;  %v953_v36 = vsel %vm458_vm1, 0.0, %v889_v63  ;;  %v9981_v1 = vld [vmem:[#allocation23_spill] sm:$0xff] }
 0x1dc   : > { %v894_v43 = vsel %vm458_vm1, %v9962_v24, %v9961_v56  ;;  %v6596_v50 = vpack.c.bf16 %v888_v52, %v952_v11  ;;  %v985_v58 = vsel %vm961_vm2, %v9963_v13, %v984_v23  ;;  %6821 = vst [vmem:[#allocation3 + $0x50] sm:$0xff] %v6686_v49   ;;  %v987_v4 = vrot.slane %v9074_v12, 1  ;;  %v9980_v23 = vld [vmem:[#allocation20_spill] sm:$0xff]  ;;  %v9983_v13 = vld [vmem:[#allocation21_spill] sm:$0xff] }
 0x1dd   : > { %v891_v8 = vsel %vm458_vm1, %v889_v63, %v9964_v5  ;;  %v6756_v60 = vpack.c.bf16 %v1049_v51, %v985_v58  ;;  %v9965_v41 = vmov %v9962_v24  ;;  %v9966_v35 = vrot.slane %v9084_v47, 1  ;;  %v9982_v49 = vld [vmem:[#allocation24_spill] sm:$0xff] }
 0x1de   : > { %v954_v30 = vsel %vm458_vm1, 0.0, %v9965_v41  ;;  %6804 = vst [vmem:[#allocation2 + $0x40] sm:$0xff] %v6596_v50   ;;  %v6601_v61 = vpack.c.bf16 %v891_v8, %v953_v36  ;;  %v9967_v9 = vrot.slane %v9078_v7, 1  ;;  %v9969_v12 = vrot.slane %v9069_v15, 1 }
 0x1df   : > { %v6606_v28 = vpack.c.bf16 %v894_v43, %v954_v30  ;;  %v9968_v3 = vmov %v9966_v35  ;;  %6834 = vst [vmem:[#allocation4 + $0x40] sm:$0xff] %v6756_v60   ;;  %v1050_v46 = vsel %vm961_vm2, %v987_v4, 0.0  ;;  %v9970_v39 = vrot.slane %v9096_v27, 7  ;;  %v8262_v42 = vpop.eup %8261 }
 0x1e0   : > { %v991_v21 = vsel %vm961_vm2, %v9967_v9, %v9966_v35  ;;  %v1051_v33 = vsel %vm961_vm2, %v9968_v3, 0.0  ;;  %v988_v38 = vsel %vm961_vm2, %v9969_v12, %v987_v4  ;;  %v9971_v17 = vrot.slane %v9090_v40, 7  ;;  %6805 = vst [vmem:[#allocation2 + $0x48] sm:$0xff] %v6601_v61   ;;  %v8264_v32 = vpop.eup %8263  ;;  %v9984_v4 = vld [vmem:[#allocation22_spill] sm:$0xff] }
 0x1e1   : > { %v6766_v20 = vpack.c.bf16 %v1051_v33, %v991_v21  ;;  %v6761_v18 = vpack.c.bf16 %v1050_v46, %v988_v38  ;;  %6806 = vst [vmem:[#allocation2 + $0x50] sm:$0xff] %v6606_v28   ;;  %v9973_v15 = vrot.slane %v9108_v37, 7  ;;  %v9974_v59 = vrot.slane %v9102_v0, 7  ;;  %v8266_v29 = vpop.eup %8265 }
 0x1e2   : > { %v897_v7 = vsel %vm458_vm1, %v9971_v17, %v9970_v39  ;;  %v9972_v47 = vmov %v9971_v17  ;;  %v9975_v44 = vrot.slane %v9096_v27, 1  ;;  %v9976_v53 = vrot.slane %v9090_v40, 1 }
 0x1e3   : > { %v955_v57 = vsel %vm458_vm1, 0.0, %v9972_v47  ;;  %v900_v2 = vsel %vm458_vm1, %v9974_v59, %v9973_v15  ;;  %v743_v54 = vadd.f32 1.0, %v8260_v26  ;;  %6836 = vst [vmem:[#allocation4 + $0x50] sm:$0xff] %v6766_v20   ;;  %v9977_v62 = vrot.slane %v9108_v37, 1  ;;  %6835 = vst [vmem:[#allocation4 + $0x48] sm:$0xff] %v6761_v18   ;;  %v7883_v47 = vld [vmem:[#allocation10 + $0xb0] sm:$0xff]  }
 0x1e4   : > { %v994_v6 = vsel %vm961_vm2, %v9976_v53, %v9975_v44  ;;  %v6611_v45 = vpack.c.bf16 %v897_v7, %v955_v57  ;;  %v6616_v16 = vpack.c.bf16 %v900_v2, %v9134_v48  ;;  %v9978_v25 = vrot.slane %v9102_v0, 1  ;;  %v8268_v0 = vpop.eup %8267 }
 0x1e5   : > { %v801_v14 = vmul.f32 %v8262_v42, %v8985_v19  ;;  %v9979_v40 = vmov %v9975_v44  ;;  %v802_v63 = vmul.f32 %v8264_v32, %v9980_v23  ;;  %8275 = vrcp.f32 %v743_v54  ;;  %v8270_v19 = vpop.eup %8269 }
 0x1e6   : > { %v997_v10 = vsel %vm961_vm2, %v9978_v25, %v9977_v62  ;;  %v1052_v34 = vsel %vm961_vm2, %v9979_v40, 0.0  ;;  %6807 = vst [vmem:[#allocation2 + $0x58] sm:$0xff] %v6611_v45   ;;  %6808 = vst [vmem:[#allocation2 + $0x60] sm:$0xff] %v6616_v16   ;;  %v803_v22 = vmul.f32 %v8266_v29, %v9981_v1  ;;  %v804_v56 = vmul.f32 %v8268_v0, %v9982_v49  ;;  %v7886_v45 = vld [vmem:[#allocation10 + $0xa8] sm:$0xff]   ;;  %v8297_v16 = vld [vmem:[#allocation10 + $0xb8] sm:$0xff]  }
 0x1e7   : > { %v6776_v31 = vpack.c.bf16 %v9145_v55, %v997_v10  ;;  %v6771_v37 = vpack.c.bf16 %v1052_v34, %v994_v6  ;;  %v962_v48 = vrot.slane %v801_v14, 1  ;;  %v865_v52 = vrot.slane %v801_v14, 7  ;;  %v8272_v55 = vpop.eup %8271  ;;  %v7887_v25 = vld [vmem:[#allocation10 + $0xf0] sm:$0xff]   ;;  %v9985_v10 = vld [vmem:[#allocation18_spill] sm:$0xff]  ;;  %v8298_v40 = vld [vmem:[#allocation10 + $0xf8] sm:$0xff]  }
 0x1e8   : > { %v963_v11 = vrot.slane %v802_v63, 1  ;;  %v6641_v27 = vpack.c.bf16 %v802_v63, %v801_v14  ;;  %v866_v24 = vrot.slane %v802_v63, 7  ;;  %v868_v50 = vrot.slane %v803_v22, 7  ;;  %v8274_v5 = vpop.eup %8273  ;;  %v7891_v34 = vld [vmem:[#allocation10 + $0xa0] sm:$0xff]  }
 0x1e9   : > { %6838 = vst [vmem:[#allocation4 + $0x60] sm:$0xff] %v6776_v31   ;;  %6837 = vst [vmem:[#allocation4 + $0x58] sm:$0xff] %v6771_v37   ;;  %v945_v43 = vsel %vm458_vm1, 0.0, %v865_v52  ;;  %v805_v58 = vmul.f32 %v8270_v19, %v9983_v13  ;;  %v965_v51 = vrot.slane %v803_v22, 1  ;;  %v6646_v8 = vpack.c.bf16 %v804_v56, %v803_v22  ;;  %v7892_v31 = vld [vmem:[#allocation10 + $0xe8] sm:$0xff]   ;;  %v7895_v1 = vld [vmem:[#allocation10 + $0xe0] sm:$0xff]  }
 0x1ea   : > { %6642 = vst [vmem:[#allocation3 + $0x8] sm:$0xff] %v6641_v27   ;;  %v867_v60 = vsel %vm458_vm1, %v865_v52, %v866_v24  ;;  %v869_v36 = vrot.slane %v804_v56, 7  ;;  %v806_v41 = vmul.f32 %v8272_v55, %v9984_v4  ;;  %v946_v61 = vsel %vm458_vm1, 0.0, %v868_v50  ;;  %v9986_v37 = vld [vmem:[#allocation19_spill] sm:$0xff]  ;;  %v7900_v55 = vld [vmem:[#allocation10 + $0xd8] sm:$0xff]  }
 0x1eb   : > { %v6561_v30 = vpack.c.bf16 %v867_v60, %v945_v43  ;;  %v744_v28 = vadd.f32 1.0, %v8274_v5  ;;  %v871_v35 = vrot.slane %v805_v58, 7  ;;  %6813 = vst [vmem:[#allocation3 + $0x10] sm:$0xff] %v6646_v8   ;;  %v964_v33 = vsel %vm961_vm2, %v962_v48, %v963_v11  ;;  %v7894_v48 = vld [vmem:[#allocation10 + $0x98] sm:$0xff]   ;;  %v7899_v13 = vld [vmem:[#allocation10 + $0x90] sm:$0xff]   ;;  %v7896_v60 = vld [vmem:[#allocation3 + $0x28] sm:$0xff]  }
 0x1ec   : > { %v870_v9 = vsel %vm458_vm1, %v868_v50, %v869_v36  ;;  %v6651_v21 = vpack.c.bf16 %v806_v41, %v805_v58  ;;  %v872_v3 = vrot.slane %v806_v41, 7  ;;  %v1042_v46 = vsel %vm961_vm2, %v963_v11, 0.0  ;;  %v7903_v5 = vld [vmem:[#allocation10 + $0xd0] sm:$0xff]   ;;  %v7906_v36 = vld [vmem:[#allocation10 + $0x80] sm:$0xff]  }
 0x1ed   : > { %6562 = vst [vmem:[#allocation2 + $0x8] sm:$0xff] %v6561_v30   ;;  %v6566_v12 = vpack.c.bf16 %v870_v9, %v946_v61  ;;  %8277 = vrcp.f32 %v744_v28  ;;  %v947_v38 = vsel %vm458_vm1, 0.0, %v871_v35  ;;  %v6721_v39 = vpack.c.bf16 %v1042_v46, %v964_v33  ;;  %v7897_v4 = vld [vmem:[#allocation3 + $0x30] sm:$0xff]   ;;  %v7898_v61 = vld [vmem:[#allocation2 + $0x28] sm:$0xff]   ;;  %v7901_v28 = vld [vmem:[#allocation2 + $0x30] sm:$0xff]  }
 0x1ee   : > { %6814 = vst [vmem:[#allocation3 + $0x18] sm:$0xff] %v6651_v21   ;;  %v873_v20 = vsel %vm458_vm1, %v871_v35, %v872_v3  ;;  %v966_v17 = vrot.slane %v804_v56, 1  ;;  %v968_v7 = vrot.slane %v805_v58, 1  ;;  %v969_v18 = vrot.slane %v806_v41, 1  ;;  %v7907_v41 = vld [vmem:[#allocation10 + $0xc8] sm:$0xff]   ;;  %v7910_v35 = vld [vmem:[#allocation10 + $0xc0] sm:$0xff]  }
 0x1ef   : > { %6798 = vst [vmem:[#allocation2 + $0x10] sm:$0xff] %v6566_v12   ;;  %v6571_v26 = vpack.c.bf16 %v873_v20, %v947_v38  ;;  %6722 = vst [vmem:[#allocation4 + $0x8] sm:$0xff] %v6721_v39   ;;  %v7911_v9 = vld [vmem:[#allocation10 + $0x138] sm:$0xff]   ;;  %v7909_v21 = vld [vmem:[#allocation4] sm:$0xff]  }
 0x1f0   : > { %v967_v57 = vsel %vm961_vm2, %v965_v51, %v966_v17  ;;  %v1043_v15 = vsel %vm961_vm2, %v966_v17, 0.0  ;;  %v970_v44 = vsel %vm961_vm2, %v968_v7, %v969_v18  ;;  %v1044_v53 = vsel %vm961_vm2, %v969_v18, 0.0  ;;  %v7902_v51 = vld [vmem:[#allocation10 + $0x88] sm:$0xff]   ;;  %v7904_v3 = vld [vmem:[#allocation3 + $0x38] sm:$0xff]   ;;  %v7915_v46 = vld [vmem:[#allocation10 + $0x130] sm:$0xff]  }
 0x1f1   : > { %v7879_v59 = vld [vmem:[#allocation3 + $0x8] sm:$0xff]   ;;  %6799 = vst [vmem:[#allocation2 + $0x18] sm:$0xff] %v6571_v26   ;;  %v6726_v2 = vpack.c.bf16 %v1043_v15, %v967_v57  ;;  %v6731_v6 = vpack.c.bf16 %v1044_v53, %v970_v44  ;;  %v7916_v33 = vld [vmem:[#allocation10 + $0x178] sm:$0xff]   ;;  %v7919_v26 = vld [vmem:[#allocation10 + $0x170] sm:$0xff]  }
 0x1f2   : > { %v8276_v42 = vpop.eup %8275  ;;  %7200 = vmatmul.mubr.bf16.vlgmr.msra.gmra.mxu1 %v7879_v59  ;;  %v7880_v54 = vld [vmem:[#allocation3 + $0x10] sm:$0xff]   ;;  %v7905_v12 = vld [vmem:[#allocation2 + $0x38] sm:$0xff]   ;;  %v7927_v44 = vld [vmem:[#allocation10 + $0x160] sm:$0xff]  }
 0x1f3   : > { %6828 = vst [vmem:[#allocation4 + $0x10] sm:$0xff] %v6726_v2   ;;  %7248 = vmatpush3.bf16.msra.mxu1 %v8297_v16  ;;  %6829 = vst [vmem:[#allocation4 + $0x18] sm:$0xff] %v6731_v6   ;;  %7203 = vmatprep.mubr.bf16.mxu1 %v7880_v54  ;;  %v807_v32 = vmul.f32 %v8276_v42, %v9985_v10  ;;  %v7918_v17 = vld [vmem:[#allocation10 + $0x128] sm:$0xff]   ;;  %v7926_v2 = vld [vmem:[#allocation10 + $0x118] sm:$0xff]  }
 0x1f4   : > { %v7882_v62 = vld [vmem:[#allocation2 + $0x8] sm:$0xff]   ;;  %7249 = vmatprep.subr.bf16.mxu1 %v7883_v47  ;;  %v7924_v57 = vld [vmem:[#allocation10 + $0x168] sm:$0xff]   ;;  %v7931_v42 = vld [vmem:[#allocation10 + $0x110] sm:$0xff]  }
 0x1f5   : > { %7232 = vmatmul.mubr.bf16.vlgmr.msra.gmra.mxu0 %v7882_v62  ;;  %v7888_v29 = vld [vmem:[#allocation3 + $0x18] sm:$0xff]   ;;  %v874_v23 = vrot.slane %v807_v32, 7  ;;  %v971_v52 = vrot.slane %v807_v32, 1  ;;  %v7929_v16 = vld [vmem:[#allocation4 + $0x30] sm:$0xff]   ;;  %v7935_v62 = vld [vmem:[#allocation10 + $0x150] sm:$0xff]  }
 0x1f6   : > { %v7885_v14 = vld [vmem:[#allocation2 + $0x10] sm:$0xff]   ;;  %7280 = vmatpush3.bf16.msra.mxu0 %v8298_v40  ;;  %v7908_v38 = vld [vmem:[#allocation2 + $0x8] sm:$0xff]   ;;  %v7933_v10 = vld [vmem:[#allocation2 + $0x38] sm:$0xff]  }
 0x1f7   : > { %7235 = vmatprep.mubr.bf16.mxu0 %v7885_v14  ;;  %7250 = vmatpush3.bf16.msra.mxu1 %v7883_v47  ;;  %v948_v27 = vsel %vm458_vm1, 0.0, %v874_v23  ;;  %v7912_v20 = vld [vmem:[#allocation4 + $0x8] sm:$0xff]   ;;  %v7914_v7 = vld [vmem:[#allocation2 + $0x10] sm:$0xff]   ;;  %v7940_v40 = vld [vmem:[#allocation10 + $0x148] sm:$0xff]  }
 0x1f8   : > { %7251 = vmatprep.subr.bf16.mxu1 %v7886_v45  ;;  %7281 = vmatprep.subr.bf16.mxu0 %v7887_v25  ;;  %v7890_v22 = vld [vmem:[#allocation2 + $0x18] sm:$0xff]   ;;  %v7923_v47 = vld [vmem:[#allocation10 + $0x120] sm:$0xff]   ;;  %v7925_v6 = vld [vmem:[#allocation2 + $0x28] sm:$0xff]  }
 0x1f9   : > { %v7917_v18 = vld [vmem:[#allocation2 + $0x18] sm:$0xff]   ;;  %v7932_v54 = vld [vmem:[#allocation10 + $0x158] sm:$0xff]   ;;  %v7939_v14 = vld [vmem:[#allocation10 + $0x100] sm:$0xff]  }
 0x1fa   : > { %v8278_v63 = vpop.eup %8277  ;;  %7204 = vmatmul.mubr.bf16.gmra.mxu1 %v7888_v29  ;;  %7282 = vmatpush3.bf16.msra.mxu0 %v7887_v25  ;;  %v7913_v39 = vld [vmem:[#allocation4 + $0x10] sm:$0xff]   ;;  %v7920_v15 = vld [vmem:[#allocation4 + $0x18] sm:$0xff]  }
 0x1fb   : > { %v808_v0 = vmul.f32 %v8278_v63, %v9986_v37  ;;  %7252 = vmatpush3.bf16.msra.mxu1 %v7886_v45  ;;  %7283 = vmatprep.subr.bf16.mxu0 %v7892_v31  ;;  %v7928_v45 = vld [vmem:[#allocation4 + $0x28] sm:$0xff]   ;;  %v7930_v25 = vld [vmem:[#allocation2 + $0x30] sm:$0xff]  }
 0x1fc   : > { %7253 = vmatprep.subr.bf16.mxu1 %v7891_v34  ;;  %v7942_v29 = vld [vmem:[#allocation10 + $0x140] sm:$0xff]   ;;  %v7941_v63 = vld [vmem:[#allocation4 + $0x8] sm:$0xff]  }
 0x1fd   : > { %v6656_v19 = vpack.c.bf16 %v808_v0, %v807_v32  ;;  %v875_v11 = vrot.slane %v808_v0, 7  ;;  %7236 = vmatmul.mubr.bf16.gmra.mxu0 %v7890_v22  ;;  %v972_v49 = vrot.slane %v808_v0, 1  ;;  %v7934_v32 = vld [vmem:[#allocation10 + $0x108] sm:$0xff]   ;;  %v7943_v37 = vld [vmem:[#allocation10 + $0x1b8] sm:$0xff]   ;;  %v7947_v0 = vld [vmem:[#allocation10 + $0x1b0] sm:$0xff]  }
 0x1fe   : > { %7284 = vmatpush3.bf16.msra.mxu0 %v7892_v31  ;;  %v7937_v31 = vld [vmem:[#allocation3 + $0x8] sm:$0xff]   ;;  %v7945_v22 = vld [vmem:[#allocation3 + $0x18] sm:$0xff]  }
 0x1ff   : > { %6815 = vst [vmem:[#allocation3 + $0x20] sm:$0xff] %v6656_v19   ;;  %v876_v56 = vsel %vm458_vm1, %v874_v23, %v875_v11  ;;  %7254 = vmatpush3.bf16.msra.mxu1 %v7891_v34  ;;  %7285 = vmatprep.subr.bf16.mxu0 %v7895_v1  ;;  %v973_v43 = vsel %vm961_vm2, %v971_v52, %v972_v49  ;;  %v1045_v50 = vsel %vm961_vm2, %v972_v49, 0.0  ;;  %v7936_v34 = vld [vmem:[#allocation4 + $0x38] sm:$0xff]   ;;  %v7938_v23 = vld [vmem:[#allocation2 + $0x40] sm:$0xff]   ;;  %v7946_v52 = vld [vmem:[#allocation4 + $0x10] sm:$0xff]  }
 0x200   : > { %v6576_v24 = vpack.c.bf16 %v876_v56, %v948_v27  ;;  %7255 = vmatprep.subr.bf16.mxu1 %v7894_v48  ;;  %v6736_v58 = vpack.c.bf16 %v1045_v50, %v973_v43  ;;  %v7950_v19 = vld [vmem:[#allocation10 + $0x1a8] sm:$0xff]   ;;  %v7951_v11 = vld [vmem:[#allocation10 + $0x1f0] sm:$0xff]   ;;  %v7955_v49 = vld [vmem:[#allocation10 + $0x1a0] sm:$0xff]  }
 0x201   : > { %v7949_v27 = vld [vmem:[#allocation4 + $0x18] sm:$0xff]   ;;  %v7958_v43 = vld [vmem:[#allocation10 + $0x198] sm:$0xff]   ;;  %v7959_v50 = vld [vmem:[#allocation10 + $0x1e0] sm:$0xff]  }
 0x202   : > { %6800 = vst [vmem:[#allocation2 + $0x20] sm:$0xff] %v6576_v24   ;;  %7286 = vmatpush3.bf16.msra.mxu0 %v7895_v1  ;;  %6830 = vst [vmem:[#allocation4 + $0x20] sm:$0xff] %v6736_v58   ;;  %v7944_v1 = vld [vmem:[#allocation3 + $0x10] sm:$0xff]   ;;  %v7956_v24 = vld [vmem:[#allocation10 + $0x1e8] sm:$0xff]  }
 0x203   : > { %7256 = vmatpush3.bf16.msra.mxu1 %v7894_v48  ;;  %7287 = vmatprep.subr.bf16.mxu0 %v7900_v55  ;;  %v7948_v48 = vld [vmem:[#allocation10 + $0x1f8] sm:$0xff]  }
 0x204   : > { %7257 = vmatprep.subr.bf16.mxu1 %v7899_v13  ;;  %v7957_v58 = vld [vmem:[#allocation4 + $0x28] sm:$0xff]  }
 0x206   : > { %v7889_v8 = vld [vmem:[#allocation3 + $0x20] sm:$0xff]   ;;  %7288 = vmatpush3.bf16.msra.mxu0 %v7900_v55  ;;  %v7953_v55 = vld [vmem:[#allocation3 + $0x28] sm:$0xff]  }
 0x207   : > { %7207 = vmatprep.mubr.bf16.mxu1 %v7889_v8  ;;  %7258 = vmatpush3.bf16.msra.mxu1 %v7899_v13  ;;  %v7952_v56 = vld [vmem:[#allocation3 + $0x20] sm:$0xff]   ;;  %v7964_v8 = vld [vmem:[#allocation10 + $0x1d8] sm:$0xff]  }
 0x208   : > { %7208 = vmatmul.mubr.bf16.gmra.mxu1 %v7896_v60  ;;  %7259 = vmatprep.subr.bf16.mxu1 %v7902_v51  ;;  %v7961_v60 = vld [vmem:[#allocation3 + $0x38] sm:$0xff]  }
 0x209   : > { %v7893_v30 = vld [vmem:[#allocation2 + $0x20] sm:$0xff]   ;;  %7211 = vmatprep.mubr.bf16.mxu1 %v7897_v4  ;;  %7289 = vmatprep.subr.bf16.mxu0 %v7903_v5 }
 0x20a   : > { %7239 = vmatprep.mubr.bf16.mxu0 %v7893_v30  ;;  %7290 = vmatpush3.bf16.msra.mxu0 %v7903_v5  ;;  %v7921_v59 = vld [vmem:[#allocation4 + $0x20] sm:$0xff]   ;;  %v7965_v30 = vld [vmem:[#allocation4 + $0x38] sm:$0xff]  }
 0x20b   : > { %7240 = vmatmul.mubr.bf16.gmra.mxu0 %v7898_v61  ;;  %7260 = vmatpush3.bf16.msra.mxu1 %v7902_v51  ;;  %v7922_v53 = vld [vmem:[#allocation2 + $0x20] sm:$0xff]   ;;  %v7971_v61 = vld [vmem:[#allocation10 + $0x180] sm:$0xff]  }
 0x20c   : > { %7243 = vmatprep.mubr.bf16.mxu0 %v7901_v28  ;;  %7261 = vmatprep.subr.bf16.mxu1 %v7906_v36  ;;  %v7954_v13 = vld [vmem:[#allocation4 + $0x20] sm:$0xff]   ;;  %v7972_v28 = vld [vmem:[#allocation10 + $0x1c8] sm:$0xff]  }
 0x20d   : > { %7291 = vmatprep.subr.bf16.mxu0 %v7907_v41  ;;  %v7960_v51 = vld [vmem:[#allocation3 + $0x30] sm:$0xff]  }
 0x20e   : > { %7292 = vmatpush3.bf16.msra.mxu0 %v7907_v41  ;;  %v7963_v5 = vld [vmem:[#allocation10 + $0x190] sm:$0xff]   ;;  %v7962_v41 = vld [vmem:[#allocation4 + $0x30] sm:$0xff]  }
 0x20f   : > { %7262 = vmatpush3.bf16.msra.mxu1 %v7906_v36  ;;  %7293 = vmatprep.subr.bf16.mxu0 %v7910_v35  ;;  %v7966_v36 = vld [vmem:[#allocation10 + $0x188] sm:$0xff]   ;;  %v7967_v4 = vld [vmem:[#allocation10 + $0x1d0] sm:$0xff]  }
 0x210   : > { %7212 = vmatmul.mubr.bf16.gmra.mxu1 %v7904_v3  ;;  %7311 = vmatprep.subr.bf16.mxu1 %v7911_v9  ;;  %v7975_v3 = vld [vmem:[#allocation10 + $0x238] sm:$0xff]  }
 0x211   : > { %7263 = vmatprep.mubr.bf16.mxu1 %v7909_v21  ;;  %v7974_v21 = vld [vmem:[#allocation10 + $0x1c0] sm:$0xff]  }
 0x212   : > { %7294 = vmatpush3.bf16.msra.mxu0 %v7910_v35  ;;  %v7968_v35 = vld [vmem:[#allocation3 + $0x40] sm:$0xff]  }
 0x213   : > { %7244 = vmatmul.mubr.bf16.gmra.mxu0 %v7905_v12  ;;  %7343 = vmatprep.subr.bf16.mxu0 %v7916_v33  ;;  %v7973_v12 = vld [vmem:[#allocation3 + $0x10] sm:$0xff]  }
 0x214   : > { %7295 = vmatprep.mubr.bf16.mxu0 %v7908_v38  ;;  %v7979_v38 = vld [vmem:[#allocation10 + $0x230] sm:$0xff]  }
 0x218   : > { %7264 = vmatmul.mubr.bf16.vlgmr.msra.gmra.mxu1 %v7912_v20  ;;  %v7976_v20 = vld [vmem:[#allocation2 + $0x18] sm:$0xff]  }
 0x219   : > { %7312 = vmatpush3.bf16.msra.mxu1 %v7911_v9  ;;  %7267 = vmatprep.mubr.bf16.mxu1 %v7913_v39  ;;  %v7969_v9 = vld [vmem:[#allocation2 + $0x10] sm:$0xff]   ;;  %v7977_v39 = vld [vmem:[#allocation2 + $0x20] sm:$0xff]  }
 0x21a   : > { %7313 = vmatprep.subr.bf16.mxu1 %v7915_v46 }
 0x21b   : > { %7296 = vmatmul.mubr.bf16.vlgmr.msra.gmra.mxu0 %v7914_v7  ;;  %v7983_v7 = vld [vmem:[#allocation10 + $0x70] sm:$0xff]  }
 0x21c   : > { %7299 = vmatprep.mubr.bf16.mxu0 %v7917_v18  ;;  %7344 = vmatpush3.bf16.msra.mxu0 %v7916_v33  ;;  %v7970_v33 = vld [vmem:[#allocation4 + $0x40] sm:$0xff]   ;;  %v7981_v18 = vld [vmem:[#allocation3 + $0x20] sm:$0xff]  }
 0x21d   : > { %7314 = vmatpush3.bf16.msra.mxu1 %v7915_v46  ;;  %7345 = vmatprep.subr.bf16.mxu0 %v7919_v26  ;;  %v7980_v46 = vld [vmem:[#allocation10 + $0x78] sm:$0xff]  }
 0x21e   : > { %7315 = vmatprep.subr.bf16.mxu1 %v7918_v17 }
 0x220   : > { %7268 = vmatmul.mubr.bf16.gmra.mxu1 %v7920_v15  ;;  %7346 = vmatpush3.bf16.msra.mxu0 %v7919_v26  ;;  %v7978_v26 = vld [vmem:[#allocation3 + $0x18] sm:$0xff]   ;;  %v7988_v15 = vld [vmem:[#allocation10 + $0x68] sm:$0xff]  }
 0x221   : > { %7316 = vmatpush3.bf16.msra.mxu1 %v7918_v17  ;;  %7271 = vmatprep.mubr.bf16.mxu1 %v7921_v59  ;;  %v7982_v17 = vld [vmem:[#allocation10 + $0x228] sm:$0xff]   ;;  %v7985_v59 = vld [vmem:[#allocation2 + $0x30] sm:$0xff]  }
 0x222   : > { %7317 = vmatprep.subr.bf16.mxu1 %v7923_v47  ;;  %7347 = vmatprep.subr.bf16.mxu0 %v7924_v57 }
 0x223   : > { %7300 = vmatmul.mubr.bf16.gmra.mxu0 %v7922_v53  ;;  %v7991_v53 = vld [vmem:[#allocation10 + $0x60] sm:$0xff]  }
 0x224   : > { %7303 = vmatprep.mubr.bf16.mxu0 %v7925_v6  ;;  %7348 = vmatpush3.bf16.msra.mxu0 %v7924_v57  ;;  %v7987_v57 = vld [vmem:[#allocation10 + $0x220] sm:$0xff]   ;;  %v7990_v6 = vld [vmem:[#allocation10 + $0x218] sm:$0xff]  }
 0x225   : > { %7318 = vmatpush3.bf16.msra.mxu1 %v7923_v47  ;;  %7349 = vmatprep.subr.bf16.mxu0 %v7927_v44  ;;  %v7984_v47 = vld [vmem:[#allocation2 + $0x28] sm:$0xff]  }
 0x226   : > { %7319 = vmatprep.subr.bf16.mxu1 %v7926_v2 }
 0x228   : > { %7272 = vmatmul.mubr.bf16.gmra.mxu1 %v7928_v45  ;;  %7350 = vmatpush3.bf16.msra.mxu0 %v7927_v44  ;;  %v7989_v44 = vld [vmem:[#allocation3 + $0x30] sm:$0xff]   ;;  %v7996_v45 = vld [vmem:[#allocation10 + $0x58] sm:$0xff]  }
 0x229   : > { %7320 = vmatpush3.bf16.msra.mxu1 %v7926_v2  ;;  %7275 = vmatprep.mubr.bf16.mxu1 %v7929_v16  ;;  %v7986_v2 = vld [vmem:[#allocation3 + $0x28] sm:$0xff]   ;;  %v7993_v16 = vld [vmem:[#allocation2 + $0x40] sm:$0xff]  }
 0x22a   : > { %7321 = vmatprep.subr.bf16.mxu1 %v7931_v42  ;;  %7351 = vmatprep.subr.bf16.mxu0 %v7932_v54 }
 0x22b   : > { %7304 = vmatmul.mubr.bf16.gmra.mxu0 %v7930_v25  ;;  %v7997_v25 = vld [vmem:[#allocation3 + $0x40] sm:$0xff]  }
 0x22c   : > { %7307 = vmatprep.mubr.bf16.mxu0 %v7933_v10  ;;  %7352 = vmatpush3.bf16.msra.mxu0 %v7932_v54  ;;  %v7995_v54 = vld [vmem:[#allocation10 + $0x210] sm:$0xff]  }
 0x22d   : > { %7322 = vmatpush3.bf16.msra.mxu1 %v7931_v42  ;;  %7353 = vmatprep.subr.bf16.mxu0 %v7935_v62  ;;  %v7992_v42 = vld [vmem:[#allocation2 + $0x38] sm:$0xff]   ;;  %v7999_v10 = vld [vmem:[#allocation10 + $0x50] sm:$0xff]  }
 0x22e   : > { %7323 = vmatprep.subr.bf16.mxu1 %v7934_v32 }
 0x230   : > { %7276 = vmatmul.mubr.bf16.gmra.mxu1 %v7936_v34  ;;  %7354 = vmatpush3.bf16.msra.mxu0 %v7935_v62  ;;  %v7994_v62 = vld [vmem:[#allocation3 + $0x38] sm:$0xff]   ;;  %v8004_v34 = vld [vmem:[#allocation10 + $0x48] sm:$0xff]  }
 0x231   : > { %7324 = vmatpush3.bf16.msra.mxu1 %v7934_v32  ;;  %7327 = vmatprep.mubr.bf16.mxu1 %v7937_v31  ;;  %v7998_v32 = vld [vmem:[#allocation10 + $0x208] sm:$0xff]   ;;  %v8001_v31 = vld [vmem:[#allocation4 + $0x10] sm:$0xff]  }
 0x232   : > { %7325 = vmatprep.subr.bf16.mxu1 %v7939_v14  ;;  %7355 = vmatprep.subr.bf16.mxu0 %v7940_v40 }
 0x233   : > { %7308 = vmatmul.mubr.bf16.gmra.mxu0 %v7938_v23  ;;  %v8006_v23 = vld [vmem:[#allocation10 + $0x40] sm:$0xff]  }
 0x234   : > { %7356 = vmatpush3.bf16.msra.mxu0 %v7940_v40  ;;  %7359 = vmatprep.mubr.bf16.mxu0 %v7941_v63  ;;  %v8003_v40 = vld [vmem:[#allocation10 + $0x200] sm:$0xff]  }
 0x235   : > { %7326 = vmatpush3.bf16.msra.mxu1 %v7939_v14  ;;  %7357 = vmatprep.subr.bf16.mxu0 %v7942_v29  ;;  %v8000_v14 = vld [vmem:[#allocation2 + $0x48] sm:$0xff]   ;;  %v8005_v63 = vld [vmem:[#allocation3 + $0x40] sm:$0xff]  }
 0x236   : > { %7375 = vmatprep.subr.bf16.mxu1 %v7943_v37 }
 0x238   : > { %7328 = vmatmul.mubr.bf16.vlgmr.msra.gmra.mxu1 %v7944_v1  ;;  %7358 = vmatpush3.bf16.msra.mxu0 %v7942_v29  ;;  %v8002_v29 = vld [vmem:[#allocation3 + $0x48] sm:$0xff]   ;;  %v8012_v1 = vld [vmem:[#allocation10 + $0xb8] sm:$0xff]  }
 0x239   : > { %7376 = vmatpush3.bf16.msra.mxu1 %v7943_v37  ;;  %7331 = vmatprep.mubr.bf16.mxu1 %v7945_v22  ;;  %v8007_v37 = vld [vmem:[#allocation10 + $0x38] sm:$0xff]   ;;  %v8009_v22 = vld [vmem:[#allocation4 + $0x20] sm:$0xff]  }
 0x23a   : > { %7377 = vmatprep.subr.bf16.mxu1 %v7947_v0  ;;  %7407 = vmatprep.subr.bf16.mxu0 %v7948_v48 }
 0x23b   : > { %7360 = vmatmul.mubr.bf16.vlgmr.msra.gmra.mxu0 %v7946_v52  ;;  %v8010_v52 = vld [vmem:[#allocation3 + $0x48] sm:$0xff]  }
 0x23c   : > { %7363 = vmatprep.mubr.bf16.mxu0 %v7949_v27  ;;  %7408 = vmatpush3.bf16.msra.mxu0 %v7948_v48  ;;  %v8011_v48 = vld [vmem:[#allocation10 + $0x30] sm:$0xff]   ;;  %v8014_v27 = vld [vmem:[#allocation10 + $0x28] sm:$0xff]  }
 0x23d   : > { %7378 = vmatpush3.bf16.msra.mxu1 %v7947_v0  ;;  %7409 = vmatprep.subr.bf16.mxu0 %v7951_v11  ;;  %v8008_v0 = vld [vmem:[#allocation4 + $0x18] sm:$0xff]  }
 0x23e   : > { %7379 = vmatprep.subr.bf16.mxu1 %v7950_v19 }
 0x240   : > { %7332 = vmatmul.mubr.bf16.gmra.mxu1 %v7952_v56  ;;  %7410 = vmatpush3.bf16.msra.mxu0 %v7951_v11  ;;  %v8013_v11 = vld [vmem:[#allocation3 + $0x50] sm:$0xff]   ;;  %v8019_v56 = vld [vmem:[#allocation10 + $0x20] sm:$0xff]  }
 0x241   : > { %7380 = vmatpush3.bf16.msra.mxu1 %v7950_v19  ;;  %7335 = vmatprep.mubr.bf16.mxu1 %v7953_v55  ;;  %v8015_v19 = vld [vmem:[#allocation10 + $0xb0] sm:$0xff]   ;;  %v8017_v55 = vld [vmem:[#allocation4 + $0x30] sm:$0xff]  }
 0x242   : > { %7381 = vmatprep.subr.bf16.mxu1 %v7955_v49  ;;  %7411 = vmatprep.subr.bf16.mxu0 %v7956_v24 }
 0x243   : > { %7364 = vmatmul.mubr.bf16.gmra.mxu0 %v7954_v13  ;;  %v8021_v13 = vld [vmem:[#allocation3 + $0x60] sm:$0xff]  }
 0x244   : > { %7367 = vmatprep.mubr.bf16.mxu0 %v7957_v58  ;;  %7412 = vmatpush3.bf16.msra.mxu0 %v7956_v24  ;;  %v8020_v24 = vld [vmem:[#allocation10 + $0xa8] sm:$0xff]   ;;  %v8022_v58 = vld [vmem:[#allocation10 + $0x18] sm:$0xff]  }
 0x245   : > { %7382 = vmatpush3.bf16.msra.mxu1 %v7955_v49  ;;  %7413 = vmatprep.subr.bf16.mxu0 %v7959_v50  ;;  %v8016_v49 = vld [vmem:[#allocation4 + $0x28] sm:$0xff]  }
 0x246   : > { %7383 = vmatprep.subr.bf16.mxu1 %v7958_v43 }
 0x248   : > { %7336 = vmatmul.mubr.bf16.gmra.mxu1 %v7960_v51  ;;  %7414 = vmatpush3.bf16.msra.mxu0 %v7959_v50  ;;  %v8023_v50 = vld [vmem:[#allocation10 + $0xa0] sm:$0xff]   ;;  %v8024_v51 = vld [vmem:[#allocation4 + $0x38] sm:$0xff]  }
 0x249   : > { %7384 = vmatpush3.bf16.msra.mxu1 %v7958_v43  ;;  %7339 = vmatprep.mubr.bf16.mxu1 %v7961_v60  ;;  %v8018_v43 = vld [vmem:[#allocation3 + $0x58] sm:$0xff]   ;;  %v8025_v60 = vld [vmem:[#allocation4 + $0x40] sm:$0xff]  }
 0x24a   : > { %7385 = vmatprep.subr.bf16.mxu1 %v7963_v5  ;;  %7415 = vmatprep.subr.bf16.mxu0 %v7964_v8 }
 0x24b   : > { %7368 = vmatmul.mubr.bf16.gmra.mxu0 %v7962_v41  ;;  %v8029_v41 = vld [vmem:[#allocation3 + $0x70] sm:$0xff]  }
 0x24c   : > { %7371 = vmatprep.mubr.bf16.mxu0 %v7965_v30  ;;  %7416 = vmatpush3.bf16.msra.mxu0 %v7964_v8  ;;  %v8028_v8 = vld [vmem:[#allocation10 + $0x98] sm:$0xff]   ;;  %v8030_v30 = vld [vmem:[#allocation10 + $0x8] sm:$0xff]  }
 0x24d   : > { %7386 = vmatpush3.bf16.msra.mxu1 %v7963_v5  ;;  %7417 = vmatprep.subr.bf16.mxu0 %v7967_v4  ;;  %v8027_v5 = vld [vmem:[#allocation10 + $0x10] sm:$0xff]  }
 0x24e   : > { %7387 = vmatprep.subr.bf16.mxu1 %v7966_v36 }
 0x250   : > { %7340 = vmatmul.mubr.bf16.gmra.mxu1 %v7968_v35  ;;  %7418 = vmatpush3.bf16.msra.mxu0 %v7967_v4  ;;  %v8031_v4 = vld [vmem:[#allocation10 + $0x90] sm:$0xff]   ;;  %v8036_v35 = vld [vmem:[#allocation10 + $0x88] sm:$0xff]  }
 0x251   : > { %7388 = vmatpush3.bf16.msra.mxu1 %v7966_v36  ;;  %7391 = vmatprep.mubr.bf16.mxu1 %v7969_v9  ;;  %v8026_v36 = vld [vmem:[#allocation3 + $0x68] sm:$0xff]   ;;  %v8033_v9 = vld [vmem:[#allocation2 + $0x40] sm:$0xff]  }
 0x252   : > { %7389 = vmatprep.subr.bf16.mxu1 %v7971_v61  ;;  %7419 = vmatprep.subr.bf16.mxu0 %v7972_v28 }
 0x253   : > { %7372 = vmatmul.mubr.bf16.gmra.mxu0 %v7970_v33  ;;  %v8037_v33 = vld [vmem:[#allocation4 + $0x40] sm:$0xff]  }
 0x254   : > { %7420 = vmatpush3.bf16.msra.mxu0 %v7972_v28  ;;  %7423 = vmatprep.mubr.bf16.mxu0 %v7973_v12  ;;  %v8035_v28 = vld [vmem:[#allocation10] sm:$0xff]   ;;  %v8039_v12 = vld [vmem:[#allocation10 + $0xf8] sm:$0xff]  }
 0x255   : > { %7390 = vmatpush3.bf16.msra.mxu1 %v7971_v61  ;;  %7421 = vmatprep.subr.bf16.mxu0 %v7974_v21  ;;  %v8032_v61 = vld [vmem:[#allocation4 + $0x48] sm:$0xff]  }
 0x256   : > { %7439 = vmatprep.subr.bf16.mxu1 %v7975_v3 }
 0x258   : > { %7392 = vmatmul.mubr.bf16.vlgmr.msra.gmra.mxu1 %v7976_v20  ;;  %7422 = vmatpush3.bf16.msra.mxu0 %v7974_v21  ;;  %v8034_v21 = vld [vmem:[#allocation3 + $0x78] sm:$0xff]  }
 0x259   : > { %7440 = vmatpush3.bf16.msra.mxu1 %v7975_v3  ;;  %7395 = vmatprep.mubr.bf16.mxu1 %v7977_v39  ;;  %v8038_v3 = vld [vmem:[#allocation10 + $0x80] sm:$0xff]   ;;  %v8044_v20 = vld [vmem:[#allocation10 + $0x138] sm:$0xff]  }
 0x25a   : > { %7441 = vmatprep.subr.bf16.mxu1 %v7979_v38  ;;  %7471 = vmatprep.subr.bf16.mxu0 %v7980_v46  ;;  %v8041_v39 = vld [vmem:[#allocation2 + $0x50] sm:$0xff]  }
 0x25b   : > { %7424 = vmatmul.mubr.bf16.vlgmr.msra.gmra.mxu0 %v7978_v26  ;;  %v8045_v26 = vld [vmem:[#allocation4 + $0x50] sm:$0xff]  }
 0x25c   : > { %7427 = vmatprep.mubr.bf16.mxu0 %v7981_v18  ;;  %7472 = vmatpush3.bf16.msra.mxu0 %v7980_v46  ;;  %v8043_v46 = vld [vmem:[#allocation10 + $0xf0] sm:$0xff]   ;;  %v8046_v18 = vld [vmem:[#allocation10 + $0xe8] sm:$0xff]  }
 0x25d   : > { %7442 = vmatpush3.bf16.msra.mxu1 %v7979_v38  ;;  %7473 = vmatprep.subr.bf16.mxu0 %v7983_v7  ;;  %v8040_v38 = vld [vmem:[#allocation2 + $0x48] sm:$0xff]  }
 0x25e   : > { %7443 = vmatprep.subr.bf16.mxu1 %v7982_v17 }
 0x260   : > { %7396 = vmatmul.mubr.bf16.gmra.mxu1 %v7984_v47  ;;  %7474 = vmatpush3.bf16.msra.mxu0 %v7983_v7  ;;  %v8047_v7 = vld [vmem:[#allocation10 + $0x130] sm:$0xff]   ;;  %v8048_v47 = vld [vmem:[#allocation2 + $0x58] sm:$0xff]  }
 0x261   : > { %7444 = vmatpush3.bf16.msra.mxu1 %v7982_v17  ;;  %7399 = vmatprep.mubr.bf16.mxu1 %v7985_v59  ;;  %v8042_v17 = vld [vmem:[#allocation4 + $0x48] sm:$0xff]   ;;  %v8049_v59 = vld [vmem:[#allocation2 + $0x60] sm:$0xff]  }
 0x262   : > { %7445 = vmatprep.subr.bf16.mxu1 %v7987_v57  ;;  %7475 = vmatprep.subr.bf16.mxu0 %v7988_v15 }
 0x263   : > { %7428 = vmatmul.mubr.bf16.gmra.mxu0 %v7986_v2  ;;  %v8050_v2 = vld [vmem:[#allocation4 + $0x58] sm:$0xff]  }
 0x264   : > { %7431 = vmatprep.mubr.bf16.mxu0 %v7989_v44  ;;  %7476 = vmatpush3.bf16.msra.mxu0 %v7988_v15  ;;  %v8052_v15 = vld [vmem:[#allocation10 + $0x128] sm:$0xff]   ;;  %v8055_v44 = vld [vmem:[#allocation10 + $0x120] sm:$0xff]  }
 0x265   : > { %7446 = vmatpush3.bf16.msra.mxu1 %v7987_v57  ;;  %7477 = vmatprep.subr.bf16.mxu0 %v7991_v53  ;;  %v8051_v57 = vld [vmem:[#allocation10 + $0xe0] sm:$0xff]  }
 0x266   : > { %7447 = vmatprep.subr.bf16.mxu1 %v7990_v6 }
 0x268   : > { %7400 = vmatmul.mubr.bf16.gmra.mxu1 %v7992_v42  ;;  %7478 = vmatpush3.bf16.msra.mxu0 %v7991_v53  ;;  %v8053_v53 = vld [vmem:[#allocation4 + $0x60] sm:$0xff]   ;;  %v8056_v42 = vld [vmem:[#allocation2 + $0x68] sm:$0xff]  }
 0x269   : > { %7448 = vmatpush3.bf16.msra.mxu1 %v7990_v6  ;;  %7403 = vmatprep.mubr.bf16.mxu1 %v7993_v16  ;;  %v8054_v6 = vld [vmem:[#allocation10 + $0xd8] sm:$0xff]   ;;  %v8057_v16 = vld [vmem:[#allocation2 + $0x70] sm:$0xff]  }
 0x26a   : > { %7449 = vmatprep.subr.bf16.mxu1 %v7995_v54  ;;  %7479 = vmatprep.subr.bf16.mxu0 %v7996_v45 }
 0x26b   : > { %7432 = vmatmul.mubr.bf16.gmra.mxu0 %v7994_v62  ;;  %v8058_v62 = vld [vmem:[#allocation4 + $0x68] sm:$0xff]  }
 0x26c   : > { %7435 = vmatprep.mubr.bf16.mxu0 %v7997_v25  ;;  %7480 = vmatpush3.bf16.msra.mxu0 %v7996_v45  ;;  %v8060_v45 = vld [vmem:[#allocation10 + $0x118] sm:$0xff]   ;;  %v8063_v25 = vld [vmem:[#allocation10 + $0x110] sm:$0xff]  }
 0x26d   : > { %7450 = vmatpush3.bf16.msra.mxu1 %v7995_v54  ;;  %7481 = vmatprep.subr.bf16.mxu0 %v7999_v10  ;;  %v8059_v54 = vld [vmem:[#allocation10 + $0xd0] sm:$0xff]  }
 0x26e   : > { %7451 = vmatprep.subr.bf16.mxu1 %v7998_v32 }
 0x270   : > { %7404 = vmatmul.mubr.bf16.gmra.mxu1 %v8000_v14  ;;  %7482 = vmatpush3.bf16.msra.mxu0 %v7999_v10  ;;  %v8061_v10 = vld [vmem:[#allocation4 + $0x70] sm:$0xff]   ;;  %v8064_v14 = vld [vmem:[#allocation2 + $0x78] sm:$0xff]  }
 0x271   : > { %7452 = vmatpush3.bf16.msra.mxu1 %v7998_v32  ;;  %7455 = vmatprep.mubr.bf16.mxu1 %v8001_v31  ;;  %v8062_v32 = vld [vmem:[#allocation10 + $0xc8] sm:$0xff]   ;;  %v8065_v31 = vld [vmem:[#allocation2 + $0x48] sm:$0xff]  }
 0x272   : > { %7453 = vmatprep.subr.bf16.mxu1 %v8003_v40  ;;  %7483 = vmatprep.subr.bf16.mxu0 %v8004_v34 }
 0x273   : > { %7436 = vmatmul.mubr.bf16.gmra.mxu0 %v8002_v29  ;;  %v8066_v29 = vld [vmem:[#allocation4 + $0x78] sm:$0xff]  }
 0x274   : > { %7484 = vmatpush3.bf16.msra.mxu0 %v8004_v34  ;;  %7487 = vmatprep.mubr.bf16.mxu0 %v8005_v63  ;;  %v8068_v34 = vld [vmem:[#allocation10 + $0x108] sm:$0xff]  }
 0x275   : > { %7454 = vmatpush3.bf16.msra.mxu1 %v8003_v40  ;;  %7485 = vmatprep.subr.bf16.mxu0 %v8006_v23  ;;  %v8067_v40 = vld [vmem:[#allocation10 + $0xc0] sm:$0xff]   ;;  %v8069_v63 = vld [vmem:[#allocation3 + $0x48] sm:$0xff]  }
 0x276   : > { %7503 = vmatprep.subr.bf16.mxu1 %v8007_v37 }
 0x278   : > { %7456 = vmatmul.mubr.bf16.vlgmr.msra.gmra.mxu1 %v8008_v0  ;;  %7486 = vmatpush3.bf16.msra.mxu0 %v8006_v23  ;;  %v8070_v23 = vld [vmem:[#allocation10 + $0x100] sm:$0xff]  }
 0x279   : > { %7504 = vmatpush3.bf16.msra.mxu1 %v8007_v37  ;;  %7459 = vmatprep.mubr.bf16.mxu1 %v8009_v22  ;;  %v8071_v37 = vld [vmem:[#allocation10 + $0x178] sm:$0xff]   ;;  %v8072_v22 = vld [vmem:[#allocation2 + $0x50] sm:$0xff]  }
 0x27a   : > { %7505 = vmatprep.subr.bf16.mxu1 %v8011_v48  ;;  %7535 = vmatprep.subr.bf16.mxu0 %v8012_v1 }
 0x27b   : > { %7488 = vmatmul.mubr.bf16.vlgmr.msra.gmra.mxu0 %v8010_v52 }
 0x27c   : > { %7491 = vmatprep.mubr.bf16.mxu0 %v8013_v11  ;;  %7536 = vmatpush3.bf16.msra.mxu0 %v8012_v1  ;;  %v8076_v11 = vld [vmem:[#allocation10 + $0x1b8] sm:$0xff]  }
 0x27d   : > { %7506 = vmatpush3.bf16.msra.mxu1 %v8011_v48  ;;  %7537 = vmatprep.subr.bf16.mxu0 %v8015_v19 }
 0x27e   : > { %7507 = vmatprep.subr.bf16.mxu1 %v8014_v27 }
 0x280   : > { %7460 = vmatmul.mubr.bf16.gmra.mxu1 %v8016_v49  ;;  %7538 = vmatpush3.bf16.msra.mxu0 %v8015_v19  ;;  %v8075_v19 = vld [vmem:[#allocation10 + $0x170] sm:$0xff]   ;;  %v8073_v49 = vld [vmem:[#allocation2 + $0x58] sm:$0xff]  }
 0x281   : > { %7508 = vmatpush3.bf16.msra.mxu1 %v8014_v27  ;;  %7463 = vmatprep.mubr.bf16.mxu1 %v8017_v55 }
 0x282   : > { %7509 = vmatprep.subr.bf16.mxu1 %v8019_v56  ;;  %7539 = vmatprep.subr.bf16.mxu0 %v8020_v24 }
 0x283   : > { %7492 = vmatmul.mubr.bf16.gmra.mxu0 %v8018_v43  ;;  %v8074_v43 = vld [vmem:[#allocation3 + $0x50] sm:$0xff]  }
 0x284   : > { %7495 = vmatprep.mubr.bf16.mxu0 %v8021_v13  ;;  %7540 = vmatpush3.bf16.msra.mxu0 %v8020_v24  ;;  %v8079_v13 = vld [vmem:[#allocation10 + $0x1b0] sm:$0xff]  }
 0x285   : > { %7510 = vmatpush3.bf16.msra.mxu1 %v8019_v56  ;;  %7541 = vmatprep.subr.bf16.mxu0 %v8023_v50 }
 0x286   : > { %7511 = vmatprep.subr.bf16.mxu1 %v8022_v58 }
 0x288   : > { %7464 = vmatmul.mubr.bf16.gmra.mxu1 %v8024_v51  ;;  %7542 = vmatpush3.bf16.msra.mxu0 %v8023_v50 }
 0x289   : > { %7512 = vmatpush3.bf16.msra.mxu1 %v8022_v58  ;;  %7467 = vmatprep.mubr.bf16.mxu1 %v8025_v60  ;;  %v8077_v58 = vld [vmem:[#allocation3 + $0x58] sm:$0xff]  }
 0x28a   : > { %7513 = vmatprep.subr.bf16.mxu1 %v8027_v5  ;;  %7543 = vmatprep.subr.bf16.mxu0 %v8028_v8 }
 0x28b   : > { %7496 = vmatmul.mubr.bf16.gmra.mxu0 %v8026_v36 }
 0x28c   : > { %7499 = vmatprep.mubr.bf16.mxu0 %v8029_v41  ;;  %7544 = vmatpush3.bf16.msra.mxu0 %v8028_v8 }
 0x28d   : > { %7514 = vmatpush3.bf16.msra.mxu1 %v8027_v5  ;;  %7545 = vmatprep.subr.bf16.mxu0 %v8031_v4  ;;  %v8078_v5 = vld [vmem:[#allocation10 + $0x168] sm:$0xff]  }
 0x28e   : > { %7515 = vmatprep.subr.bf16.mxu1 %v8030_v30 }
 0x290   : > { %7468 = vmatmul.mubr.bf16.gmra.mxu1 %v8032_v61  ;;  %7546 = vmatpush3.bf16.msra.mxu0 %v8031_v4 }
 0x291   : > { %7516 = vmatpush3.bf16.msra.mxu1 %v8030_v30  ;;  %7519 = vmatprep.mubr.bf16.mxu1 %v8033_v9  ;;  %v8080_v30 = vld [vmem:[#allocation2 + $0x60] sm:$0xff]   ;;  %v8081_v9 = vld [vmem:[#allocation2 + $0x68] sm:$0xff]  }
 0x292   : > { %7517 = vmatprep.subr.bf16.mxu1 %v8035_v28  ;;  %7547 = vmatprep.subr.bf16.mxu0 %v8036_v35 }
 0x293   : > { %7500 = vmatmul.mubr.bf16.gmra.mxu0 %v8034_v21 }
 0x294   : > { %7548 = vmatpush3.bf16.msra.mxu0 %v8036_v35  ;;  %7551 = vmatprep.mubr.bf16.mxu0 %v8037_v33  ;;  %v8084_v35 = vld [vmem:[#allocation10 + $0x1a8] sm:$0xff]  }
 0x295   : > { %7518 = vmatpush3.bf16.msra.mxu1 %v8035_v28  ;;  %7549 = vmatprep.subr.bf16.mxu0 %v8038_v3  ;;  %v8083_v28 = vld [vmem:[#allocation10 + $0x160] sm:$0xff]  }
 0x296   : > { %7567 = vmatprep.subr.bf16.mxu1 %v8039_v12 }
 0x298   : > { %7520 = vmatmul.mubr.bf16.vlgmr.msra.gmra.mxu1 %v8040_v38  ;;  %7550 = vmatpush3.bf16.msra.mxu0 %v8038_v3 }
 0x299   : > { %7568 = vmatpush3.bf16.msra.mxu1 %v8039_v12  ;;  %7523 = vmatprep.mubr.bf16.mxu1 %v8041_v39  ;;  %v8082_v12 = vld [vmem:[#allocation3 + $0x60] sm:$0xff]  }
 0x29a   : > { %7569 = vmatprep.subr.bf16.mxu1 %v8043_v46  ;;  %7599 = vmatprep.subr.bf16.mxu0 %v8044_v20 }
 0x29b   : > { %7552 = vmatmul.mubr.bf16.vlgmr.msra.gmra.mxu0 %v8042_v17  ;;  %v8086_v17 = vld [vmem:[#allocation10 + $0x158] sm:$0xff]  }
 0x29c   : > { %7555 = vmatprep.mubr.bf16.mxu0 %v8045_v26  ;;  %7600 = vmatpush3.bf16.msra.mxu0 %v8044_v20  ;;  %v8085_v20 = vld [vmem:[#allocation3 + $0x68] sm:$0xff]  }
 0x29d   : > { %7570 = vmatpush3.bf16.msra.mxu1 %v8043_v46  ;;  %7601 = vmatprep.subr.bf16.mxu0 %v8047_v7  ;;  %v8087_v46 = vld [vmem:[#allocation10 + $0x1a0] sm:$0xff]  }
 0x29e   : > { %7571 = vmatprep.subr.bf16.mxu1 %v8046_v18 }
 0x2a0   : > { %7524 = vmatmul.mubr.bf16.gmra.mxu1 %v8048_v47  ;;  %7602 = vmatpush3.bf16.msra.mxu0 %v8047_v7  ;;  %v8088_v47 = vld [vmem:[#allocation2 + $0x70] sm:$0xff]  }
 0x2a1   : > { %7572 = vmatpush3.bf16.msra.mxu1 %v8046_v18  ;;  %7527 = vmatprep.mubr.bf16.mxu1 %v8049_v59  ;;  %v8089_v59 = vld [vmem:[#allocation2 + $0x78] sm:$0xff]  }
 0x2a2   : > { %7573 = vmatprep.subr.bf16.mxu1 %v8051_v57  ;;  %7603 = vmatprep.subr.bf16.mxu0 %v8052_v15 }
 0x2a3   : > { %7556 = vmatmul.mubr.bf16.gmra.mxu0 %v8050_v2 }
 0x2a4   : > { %7559 = vmatprep.mubr.bf16.mxu0 %v8053_v53  ;;  %7604 = vmatpush3.bf16.msra.mxu0 %v8052_v15  ;;  %v8092_v15 = vld [vmem:[#allocation10 + $0x198] sm:$0xff]   ;;  %v8095_v53 = vld [vmem:[#allocation10 + $0x190] sm:$0xff]  }
 0x2a5   : > { %7574 = vmatpush3.bf16.msra.mxu1 %v8051_v57  ;;  %7605 = vmatprep.subr.bf16.mxu0 %v8055_v44  ;;  %v8091_v57 = vld [vmem:[#allocation10 + $0x150] sm:$0xff]  }
 0x2a6   : > { %7575 = vmatprep.subr.bf16.mxu1 %v8054_v6 }
 0x2a8   : > { %7528 = vmatmul.mubr.bf16.gmra.mxu1 %v8056_v42  ;;  %7606 = vmatpush3.bf16.msra.mxu0 %v8055_v44  ;;  %v8090_v44 = vld [vmem:[#allocation3 + $0x70] sm:$0xff]   ;;  %v8093_v42 = vld [vmem:[#allocation3 + $0x78] sm:$0xff]  }
 0x2a9   : > { %7576 = vmatpush3.bf16.msra.mxu1 %v8054_v6  ;;  %7531 = vmatprep.mubr.bf16.mxu1 %v8057_v16 }
 0x2aa   : > { %7577 = vmatprep.subr.bf16.mxu1 %v8059_v54  ;;  %7607 = vmatprep.subr.bf16.mxu0 %v8060_v45 }
 0x2ab   : > { %7560 = vmatmul.mubr.bf16.gmra.mxu0 %v8058_v62 }
 0x2ac   : > { %7563 = vmatprep.mubr.bf16.mxu0 %v8061_v10  ;;  %7608 = vmatpush3.bf16.msra.mxu0 %v8060_v45 }
 0x2ad   : > { %7578 = vmatpush3.bf16.msra.mxu1 %v8059_v54  ;;  %7609 = vmatprep.subr.bf16.mxu0 %v8063_v25  ;;  %v8094_v54 = vld [vmem:[#allocation10 + $0x148] sm:$0xff]  }
 0x2ae   : > { %7579 = vmatprep.subr.bf16.mxu1 %v8062_v32 }
 0x2b0   : > { %7532 = vmatmul.mubr.bf16.gmra.mxu1 %v8064_v14  ;;  %7610 = vmatpush3.bf16.msra.mxu0 %v8063_v25  ;;  %v8096_v14 = vld [vmem:[#allocation2 + $0x80] sm:$0xff]  }
 0x2b1   : > { %7580 = vmatpush3.bf16.msra.mxu1 %v8062_v32  ;;  %7583 = vmatprep.mubr.bf16.mxu1 %v8065_v31 }
 0x2b2   : > { %7581 = vmatprep.subr.bf16.mxu1 %v8067_v40  ;;  %7611 = vmatprep.subr.bf16.mxu0 %v8068_v34  ;;  %v7201_v0 = vpop.f32.mrf.mxu1 }
 0x2b3   : > { %7564 = vmatmul.mubr.bf16.gmra.mxu0 %v8066_v29  ;;  %v8097_v29 = vld [vmem:[#allocation4 + $0x48] sm:$0xff]  }
 0x2b4   : > { %7612 = vmatpush3.bf16.msra.mxu0 %v8068_v34  ;;  %7615 = vmatprep.mubr.bf16.mxu0 %v8069_v63  ;;  %v1752_v48 = vpop.f32.mrf.mxu1  ;;  %v8100_v34 = vld [vmem:[#allocation10 + $0x188] sm:$0xff]  }
 0x2b5   : > { %7582 = vmatpush3.bf16.msra.mxu1 %v8067_v40  ;;  %7613 = vmatprep.subr.bf16.mxu0 %v8070_v23  ;;  %v7233_v1 = vpop.f32.mrf.mxu0  ;;  %v8099_v40 = vld [vmem:[#allocation10 + $0x140] sm:$0xff]  }
 0x2b6   : > { %7631 = vmatprep.subr.bf16.mxu1 %v8071_v37  ;;  %v9292_v52 = vadd.f32 %v7233_v1, %v7201_v0  ;;  %v7202_v27 = vpop.f32.mrf.mxu1  ;;  %v8098_v0 = vld [vmem:[#allocation3 + $0x80] sm:$0xff]  }
 0x2b7   : > { %v1945_v56 = vpop.f32.mrf.mxu0 }
 0x2b8   : > { %7584 = vmatmul.mubr.bf16.vlgmr.msra.gmra.mxu1 %v8072_v22  ;;  %7614 = vmatpush3.bf16.msra.mxu0 %v8070_v23  ;;  %v9294_v24 = vadd.f32 %v1945_v56, %v1752_v48  ;;  %v1755_v55 = vpop.f32.mrf.mxu1  ;;  %v8102_v48 = vld [vmem:[#allocation10 + $0x180] sm:$0xff]  }
 0x2b9   : > { %7632 = vmatpush3.bf16.msra.mxu1 %v8071_v37  ;;  %7587 = vmatprep.mubr.bf16.mxu1 %v8073_v49  ;;  %v7234_v50 = vpop.f32.mrf.mxu0 }
 0x2ba   : > { %7633 = vmatprep.subr.bf16.mxu1 %v8075_v19  ;;  %7663 = vmatprep.subr.bf16.mxu0 %v8076_v11  ;;  %v9296_v51 = vadd.f32 %v7234_v50, %v7202_v27  ;;  %v7205_v8 = vpop.f32.mrf.mxu1 }
 0x2bb   : > { %7616 = vmatmul.mubr.bf16.vlgmr.msra.gmra.mxu0 %v8074_v43  ;;  %v1948_v60 = vpop.f32.mrf.mxu0 }
 0x2bc   : > { %7619 = vmatprep.mubr.bf16.mxu0 %v8077_v58  ;;  %7664 = vmatpush3.bf16.msra.mxu0 %v8076_v11  ;;  %v9298_v36 = vadd.f32 %v1948_v60, %v1755_v55  ;;  %v1768_v4 = vpop.f32.mrf.mxu1  ;;  %v8103_v11 = vld [vmem:[#allocation10 + $0x1f8] sm:$0xff]   ;;  %v8107_v58 = vld [vmem:[#allocation10 + $0x1f0] sm:$0xff]   ;;  %v8105_v60 = vld [vmem:[#allocation4 + $0x58] sm:$0xff]  }
 0x2bd   : > { %7634 = vmatpush3.bf16.msra.mxu1 %v8075_v19  ;;  %7665 = vmatprep.subr.bf16.mxu0 %v8079_v13  ;;  %v7237_v41 = vpop.f32.mrf.mxu0  ;;  %v8101_v19 = vld [vmem:[#allocation2 + $0x50] sm:$0xff]  }
 0x2be   : > { %7635 = vmatprep.subr.bf16.mxu1 %v8078_v5  ;;  %v9300_v61 = vadd.f32 %v7237_v41, %v7205_v8  ;;  %v7206_v21 = vpop.f32.mrf.mxu1 }
 0x2bf   : > { %v1961_v3 = vpop.f32.mrf.mxu0 }
 0x2c0   : > { %7588 = vmatmul.mubr.bf16.gmra.mxu1 %v8080_v30  ;;  %7666 = vmatpush3.bf16.msra.mxu0 %v8079_v13  ;;  %v9302_v33 = vadd.f32 %v1961_v3, %v1768_v4  ;;  %v1771_v7 = vpop.f32.mrf.mxu1  ;;  %v8104_v13 = vld [vmem:[#allocation4 + $0x50] sm:$0xff]  }
 0x2c1   : > { %7636 = vmatpush3.bf16.msra.mxu1 %v8078_v5  ;;  %7591 = vmatprep.mubr.bf16.mxu1 %v8081_v9  ;;  %v7238_v38 = vpop.f32.mrf.mxu0  ;;  %v9320_v5 = vld [vmem:[#allocation10 + $0x238] sm:$0xff]   ;;  %v9325_v9 = vld [vmem:[#allocation10 + $0x230] sm:$0xff]  }
 0x2c2   : > { %7637 = vmatprep.subr.bf16.mxu1 %v8083_v28  ;;  %7667 = vmatprep.subr.bf16.mxu0 %v8084_v35  ;;  %v9304_v39 = vadd.f32 %v7238_v38, %v7206_v21  ;;  %v8110_v38 = vld [vmem:[#allocation10 + $0x1e8] sm:$0xff]  }
 0x2c3   : > { %7620 = vmatmul.mubr.bf16.gmra.mxu0 %v8082_v12  ;;  %v1964_v26 = vpop.f32.mrf.mxu0  ;;  %v8109_v12 = vld [vmem:[#allocation2 + $0x60] sm:$0xff]  }
 0x2c4   : > { %7623 = vmatprep.mubr.bf16.mxu0 %v8085_v20  ;;  %7668 = vmatpush3.bf16.msra.mxu0 %v8084_v35  ;;  %v9306_v18 = vadd.f32 %v1964_v26, %v1771_v7  ;;  %v8106_v35 = vld [vmem:[#allocation2 + $0x58] sm:$0xff]  }
 0x2c5   : > { %7638 = vmatpush3.bf16.msra.mxu1 %v8083_v28  ;;  %7669 = vmatprep.subr.bf16.mxu0 %v8087_v46 }
 0x2c6   : > { %7639 = vmatprep.subr.bf16.mxu1 %v8086_v17 }
 0x2c8   : > { %v7209_v2 = vpop.f32.mrf.mxu1  ;;  %7592 = vmatmul.mubr.bf16.gmra.mxu1 %v8088_v47  ;;  %7670 = vmatpush3.bf16.msra.mxu0 %v8087_v46 }
 0x2c9   : > { %7640 = vmatpush3.bf16.msra.mxu1 %v8086_v17  ;;  %7595 = vmatprep.mubr.bf16.mxu1 %v8089_v59  ;;  %v9338_v59 = vld [vmem:[#allocation10 + $0x228] sm:$0xff]  }
 0x2ca   : > { %v1784_v6 = vpop.f32.mrf.mxu1  ;;  %7641 = vmatprep.subr.bf16.mxu1 %v8091_v57  ;;  %7671 = vmatprep.subr.bf16.mxu0 %v8092_v15 }
 0x2cb   : > { %v7241_v45 = vpop.f32.mrf.mxu0  ;;  %7624 = vmatmul.mubr.bf16.gmra.mxu0 %v8090_v44 }
 0x2cc   : > { %v9308_v16 = vadd.f32 %v7241_v45, %v7209_v2  ;;  %v7210_v62 = vpop.f32.mrf.mxu1  ;;  %7627 = vmatprep.mubr.bf16.mxu0 %v8093_v42  ;;  %7672 = vmatpush3.bf16.msra.mxu0 %v8092_v15  ;;  %v8112_v15 = vld [vmem:[#allocation4 + $0x60] sm:$0xff]   ;;  %v8114_v45 = vld [vmem:[#allocation2 + $0x68] sm:$0xff]  }
 0x2cd   : > { %7642 = vmatpush3.bf16.msra.mxu1 %v8091_v57  ;;  %v1977_v25 = vpop.f32.mrf.mxu0  ;;  %7673 = vmatprep.subr.bf16.mxu0 %v8095_v53 }
 0x2ce   : > { %v9310_v10 = vadd.f32 %v1977_v25, %v1784_v6  ;;  %v1787_v32 = vpop.f32.mrf.mxu1  ;;  %7643 = vmatprep.subr.bf16.mxu1 %v8094_v54 }
 0x2cf   : > { %v7242_v31 = vpop.f32.mrf.mxu0 }
 0x2d0   : > { %v9312_v23 = vadd.f32 %v7242_v31, %v7210_v62  ;;  %v7213_v63 = vpop.f32.mrf.mxu1  ;;  %7596 = vmatmul.mubr.bf16.gmra.mxu1 %v8096_v14  ;;  %7674 = vmatpush3.bf16.msra.mxu0 %v8095_v53  ;;  %v8113_v53 = vld [vmem:[#allocation4 + $0x68] sm:$0xff]   ;;  %v9345_v62 = vld [vmem:[#allocation10 + $0x220] sm:$0xff]  }
 0x2d1   : > { %7644 = vmatpush3.bf16.msra.mxu1 %v8094_v54  ;;  %v1980_v37 = vpop.f32.mrf.mxu0  ;;  %7647 = vmatprep.mubr.bf16.mxu1 %v8097_v29  ;;  %v8118_v14 = vld [vmem:[#allocation10 + $0x1d8] sm:$0xff]  }
 0x2d2   : > { %v9314_v1 = vadd.f32 %v1980_v37, %v1787_v32  ;;  %v1800_v22 = vpop.f32.mrf.mxu1  ;;  %7645 = vmatprep.subr.bf16.mxu1 %v8099_v40  ;;  %7675 = vmatprep.subr.bf16.mxu0 %v8100_v34 }
 0x2d3   : > { %v7245_v27 = vpop.f32.mrf.mxu0  ;;  %7628 = vmatmul.mubr.bf16.gmra.mxu0 %v8098_v0 }
 0x2d4   : > { %v9316_v49 = vadd.f32 %v7245_v27, %v7213_v63  ;;  %v7214_v56 = vpop.f32.mrf.mxu1  ;;  %7676 = vmatpush3.bf16.msra.mxu0 %v8100_v34  ;;  %7679 = vmatprep.mubr.bf16.mxu0 %v8101_v19  ;;  %v8121_v27 = vld [vmem:[#allocation4 + $0x78] sm:$0xff]  }
 0x2d5   : > { %7646 = vmatpush3.bf16.msra.mxu1 %v8099_v40  ;;  %v1993_v55 = vpop.f32.mrf.mxu0  ;;  %7677 = vmatprep.subr.bf16.mxu0 %v8102_v48 }
 0x2d6   : > { %v9318_v43 = vadd.f32 %v1993_v55, %v1800_v22  ;;  %v1803_v50 = vpop.f32.mrf.mxu1  ;;  %7695 = vmatprep.subr.bf16.mxu1 %v8103_v11  ;;  %v9358_v22 = vld [vmem:[#allocation10 + $0x218] sm:$0xff]  }
 0x2d7   : > { %v7246_v8 = vpop.f32.mrf.mxu0 }
 0x2d8   : > { %v9322_v4 = vadd.f32 %v7246_v8, %v7214_v56  ;;  %v7265_v41 = vpop.f32.mrf.mxu1  ;;  %7648 = vmatmul.mubr.bf16.vlgmr.msra.gmra.mxu1 %v8104_v13  ;;  %7678 = vmatpush3.bf16.msra.mxu0 %v8102_v48  ;;  %v8120_v48 = vld [vmem:[#allocation4 + $0x70] sm:$0xff]   ;;  %v8122_v13 = vld [vmem:[#allocation2 + $0x78] sm:$0xff]  }
 0x2d9   : > { %v2236_v30 = vadd.f32 %v7265_v41, %v9292_v52  ;;  %7696 = vmatpush3.bf16.msra.mxu1 %v8103_v11  ;;  %v1996_v28 = vpop.f32.mrf.mxu0  ;;  %7651 = vmatprep.mubr.bf16.mxu1 %v8105_v60  ;;  %v8126_v41 = vld [vmem:[#allocation10 + $0x1c8] sm:$0xff]  }
 0x2da   : > { %v9327_v21 = vadd.f32 %v1996_v28, %v1803_v50  ;;  %v2171_v3 = vpop.f32.mrf.mxu1  ;;  %7697 = vmatprep.subr.bf16.mxu1 %v8107_v58  ;;  %7727 = vmatprep.subr.bf16.mxu0 %v9320_v5 }
 0x2db   : > { %v2234_v46 = vadd.f32 %v2171_v3, %v9294_v24  ;;  %v7297_v20 = vpop.f32.mrf.mxu0  ;;  %7680 = vmatmul.mubr.bf16.vlgmr.msra.gmra.mxu0 %v8106_v35  ;;  %v8115_v24 = vld [vmem:[#allocation10 + $0x1e0] sm:$0xff]  }
 0x2dc   : > { %v9331_v17 = vadd.f32 %v7297_v20, %v2236_v30  ;;  %v7266_v52 = vpop.f32.mrf.mxu1  ;;  %7683 = vmatprep.mubr.bf16.mxu0 %v8109_v12  ;;  %7728 = vmatpush3.bf16.msra.mxu0 %v9320_v5  ;;  %v8128_v20 = vld [vmem:[#allocation4 + $0x80] sm:$0xff]  }
 0x2dd   : > { %v2237_v7 = vadd.f32 %v7266_v52, %v9296_v51  ;;  %7698 = vmatpush3.bf16.msra.mxu1 %v8107_v58  ;;  %v2413_v26 = vpop.f32.mrf.mxu0  ;;  %7729 = vmatprep.subr.bf16.mxu0 %v9325_v9  ;;  %v9365_v58 = vld [vmem:[#allocation10 + $0x210] sm:$0xff]   ;;  %v9378_v52 = vld [vmem:[#allocation10 + $0x208] sm:$0xff]  }
 0x2de   : > { %v9336_v47 = vadd.f32 %v2413_v26, %v2234_v46  ;;  %v2174_v57 = vpop.f32.mrf.mxu1  ;;  %7699 = vmatprep.subr.bf16.mxu1 %v8110_v38 }
 0x2df   : > { %v2235_v2 = vadd.f32 %v2174_v57, %v9298_v36  ;;  %v7298_v44 = vpop.f32.mrf.mxu0  ;;  %v8117_v36 = vld [vmem:[#allocation2 + $0x70] sm:$0xff]   ;;  %v8129_v57 = vld [vmem:[#allocation3 + $0x50] sm:$0xff]  }
 0x2e0   : > { %v9341_v6 = vadd.f32 %v7298_v44, %v2237_v7  ;;  %v7269_v42 = vpop.f32.mrf.mxu1  ;;  %7652 = vmatmul.mubr.bf16.gmra.mxu1 %v8112_v15  ;;  %7730 = vmatpush3.bf16.msra.mxu0 %v9325_v9  ;;  %v8130_v15 = vld [vmem:[#allocation2 + $0x88] sm:$0xff]  }
 0x2e1   : > { %v2240_v51 = vadd.f32 %v7269_v42, %v9300_v61  ;;  %7700 = vmatpush3.bf16.msra.mxu1 %v8110_v38  ;;  %v2416_v54 = vpop.f32.mrf.mxu0  ;;  %7655 = vmatprep.mubr.bf16.mxu1 %v8113_v53  ;;  %v9385_v53 = vld [vmem:[#allocation10 + $0x200] sm:$0xff]  }
 0x2e2   : > { %v9347_v25 = vadd.f32 %v2416_v54, %v2235_v2  ;;  %v2187_v32 = vpop.f32.mrf.mxu1  ;;  %7701 = vmatprep.subr.bf16.mxu1 %v8115_v24  ;;  %7731 = vmatprep.subr.bf16.mxu0 %v9338_v59 }
 0x2e3   : > { %v2238_v40 = vadd.f32 %v2187_v32, %v9302_v33  ;;  %v7301_v34 = vpop.f32.mrf.mxu0  ;;  %7684 = vmatmul.mubr.bf16.gmra.mxu0 %v8114_v45  ;;  %v8123_v33 = vld [vmem:[#allocation10 + $0x1d0] sm:$0xff]  }
 0x2e4   : > { %v9351_v31 = vadd.f32 %v7301_v34, %v2240_v51  ;;  %v7270_v61 = vpop.f32.mrf.mxu1  ;;  %7687 = vmatprep.mubr.bf16.mxu0 %v8117_v36  ;;  %7732 = vmatpush3.bf16.msra.mxu0 %v9338_v59 }
 0x2e5   : > { %v2241_v29 = vadd.f32 %v7270_v61, %v9304_v39  ;;  %7702 = vmatpush3.bf16.msra.mxu1 %v8115_v24  ;;  %v2429_v63 = vpop.f32.mrf.mxu0  ;;  %7733 = vmatprep.subr.bf16.mxu0 %v9345_v62 }
 0x2e6   : > { %v9356_v37 = vadd.f32 %v2429_v63, %v2238_v40  ;;  %v2190_v0 = vpop.f32.mrf.mxu1  ;;  %7703 = vmatprep.subr.bf16.mxu1 %v8118_v14  ;;  %v8136_v63 = vld [vmem:[#allocation3 + $0x60] sm:$0xff]  }
 0x2e7   : > { %v2239_v19 = vadd.f32 %v2190_v0, %v9306_v18  ;;  %v7302_v11 = vpop.f32.mrf.mxu0  ;;  %v8125_v18 = vld [vmem:[#allocation2 + $0x80] sm:$0xff]  }
 0x2e8   : > { %v9361_v56 = vadd.f32 %v7302_v11, %v2241_v29  ;;  %v7273_v55 = vpop.f32.mrf.mxu1  ;;  %7656 = vmatmul.mubr.bf16.gmra.mxu1 %v8120_v48  ;;  %7734 = vmatpush3.bf16.msra.mxu0 %v9345_v62 }
 0x2e9   : > { %v2244_v39 = vadd.f32 %v7273_v55, %v9308_v16  ;;  %7704 = vmatpush3.bf16.msra.mxu1 %v8118_v14  ;;  %v2432_v50 = vpop.f32.mrf.mxu0  ;;  %7659 = vmatprep.mubr.bf16.mxu1 %v8121_v27 }
 0x2ea   : > { %v9367_v8 = vadd.f32 %v2432_v50, %v2239_v19  ;;  %v2203_v60 = vpop.f32.mrf.mxu1  ;;  %7705 = vmatprep.subr.bf16.mxu1 %v8123_v33  ;;  %7735 = vmatprep.subr.bf16.mxu0 %v9358_v22  ;;  %v8139_v50 = vld [vmem:[#allocation3 + $0x68] sm:$0xff]  }
 0x2eb   : > { %v2242_v30 = vadd.f32 %v2203_v60, %v9310_v10  ;;  %v7305_v28 = vpop.f32.mrf.mxu0  ;;  %7688 = vmatmul.mubr.bf16.gmra.mxu0 %v8122_v13  ;;  %v8131_v10 = vld [vmem:[#allocation10 + $0x1c0] sm:$0xff]   ;;  %v8140_v60 = vld [vmem:[#allocation3 + $0x70] sm:$0xff]  }
 0x2ec   : > { %v9371_v35 = vadd.f32 %v7305_v28, %v2244_v39  ;;  %v7274_v16 = vpop.f32.mrf.mxu1  ;;  %7691 = vmatprep.mubr.bf16.mxu0 %v8125_v18  ;;  %7736 = vmatpush3.bf16.msra.mxu0 %v9358_v22 }
 0x2ed   : > { %v2245_v3 = vadd.f32 %v7274_v16, %v9312_v23  ;;  %7706 = vmatpush3.bf16.msra.mxu1 %v8123_v33  ;;  %v2445_v12 = vpop.f32.mrf.mxu0  ;;  %7737 = vmatprep.subr.bf16.mxu0 %v9365_v58  ;;  %v8137_v33 = vld [vmem:[#allocation4 + $0x58] sm:$0xff]  }
 0x2ee   : > { %v9376_v38 = vadd.f32 %v2445_v12, %v2242_v30  ;;  %v2206_v46 = vpop.f32.mrf.mxu1  ;;  %7707 = vmatprep.subr.bf16.mxu1 %v8126_v41  ;;  %v8141_v30 = vld [vmem:[#allocation4 + $0x68] sm:$0xff]  }
 0x2ef   : > { %v2243_v7 = vadd.f32 %v2206_v46, %v9314_v1  ;;  %v7306_v26 = vpop.f32.mrf.mxu0  ;;  %v8133_v1 = vld [vmem:[#allocation4 + $0x50] sm:$0xff]  }
 0x2f0   : > { %v9381_v24 = vadd.f32 %v7306_v26, %v2245_v3  ;;  %v7277_v23 = vpop.f32.mrf.mxu1  ;;  %7660 = vmatmul.mubr.bf16.gmra.mxu1 %v8128_v20  ;;  %7738 = vmatpush3.bf16.msra.mxu0 %v9365_v58  ;;  %v8143_v20 = vld [vmem:[#allocation3 + $0x80] sm:$0xff]  }
 0x2f1   : > { %v2248_v2 = vadd.f32 %v7277_v23, %v9316_v49  ;;  %7708 = vmatpush3.bf16.msra.mxu1 %v8126_v41  ;;  %v2448_v44 = vpop.f32.mrf.mxu0  ;;  %7711 = vmatprep.mubr.bf16.mxu1 %v8129_v57 }
 0x2f2   : > { %v9387_v42 = vadd.f32 %v2448_v44, %v2243_v7  ;;  %v2219_v51 = vpop.f32.mrf.mxu1  ;;  %7709 = vmatprep.subr.bf16.mxu1 %v8131_v10  ;;  %7739 = vmatprep.subr.bf16.mxu0 %v9378_v52  ;;  %v8145_v44 = vld [vmem:[#allocation4 + $0x70] sm:$0xff]  }
 0x2f3   : > { %v2246_v54 = vadd.f32 %v2219_v51, %v9318_v43  ;;  %v7309_v45 = vpop.f32.mrf.mxu0  ;;  %7692 = vmatmul.mubr.bf16.gmra.mxu0 %v8130_v15  ;;  %v8135_v43 = vld [vmem:[#allocation3 + $0x58] sm:$0xff]   ;;  %v8144_v15 = vld [vmem:[#allocation3 + $0x88] sm:$0xff]  }
 0x2f4   : > { %v9391_v32 = vadd.f32 %v7309_v45, %v2248_v2  ;;  %v7278_v36 = vpop.f32.mrf.mxu1  ;;  %7740 = vmatpush3.bf16.msra.mxu0 %v9378_v52  ;;  %7743 = vmatprep.mubr.bf16.mxu0 %v8133_v1 }
 0x2f5   : > { %v2249_v49 = vadd.f32 %v7278_v36, %v9322_v4  ;;  %7710 = vmatpush3.bf16.msra.mxu1 %v8131_v10  ;;  %v2461_v14 = vpop.f32.mrf.mxu0  ;;  %7741 = vmatprep.subr.bf16.mxu0 %v9385_v53 }
 0x2f6   : > { %v9396_v40 = vadd.f32 %v2461_v14, %v2246_v54  ;;  %v2222_v34 = vpop.f32.mrf.mxu1  ;;  %7759 = vmatprep.subr.bf16.mxu1 %v9320_v5  ;;  %v8146_v14 = vld [vmem:[#allocation4 + $0x78] sm:$0xff]  }
 0x2f7   : > { %v2247_v61 = vadd.f32 %v2222_v34, %v9327_v21  ;;  %v7310_v29 = vpop.f32.mrf.mxu0  ;;  %v8138_v21 = vld [vmem:[#allocation4 + $0x60] sm:$0xff]  }
 0x2f8   : > { %9987 = vst [vmem:[#allocation20_spill] sm:$0xff] %v9396_v40  ;;  %v9400_v0 = vadd.f32 %v7310_v29, %v2249_v49  ;;  %v9402_v48 = vpop.f32.mrf.mxu1  ;;  %7712 = vmatmul.mubr.bf16.vlgmr.msra.gmra.mxu1 %v8135_v43  ;;  %7742 = vmatpush3.bf16.msra.mxu0 %v9385_v53 }
 0x2f9   : > { %7767 = vmatpush3.bf16.msra.mxu1 %v9320_v5  ;;  %v2464_v4 = vpop.f32.mrf.mxu0  ;;  %7715 = vmatprep.mubr.bf16.mxu1 %v8136_v63 }
 0x2fa   : > { %9988 = vst [vmem:[#allocation23_spill] sm:$0xff] %v9400_v0  ;;  %v9406_v19 = vadd.f32 %v2464_v4, %v2247_v61  ;;  %v9408_v11 = vpop.f32.mrf.mxu1  ;;  %7760 = vmatprep.subr.bf16.mxu1 %v9325_v9 }
 0x2fb   : > { %v9411_v27 = vpop.f32.mrf.mxu0  ;;  %7744 = vmatmul.mubr.bf16.vlgmr.msra.gmra.mxu0 %v8137_v33  ;;  %v8148_v33 = vld [vmem:[#allocation4 + $0x88] sm:$0xff]  }
 0x2fc   : > { %9989 = vst [vmem:[#allocation24_spill] sm:$0xff] %v9406_v19  ;;  %v9413_v55 = vpop.f32.mrf.mxu1  ;;  %7747 = vmatprep.mubr.bf16.mxu0 %v8138_v21 }
 0x2fd   : > { %7768 = vmatpush3.bf16.msra.mxu1 %v9325_v9  ;;  %v9416_v39 = vpop.f32.mrf.mxu0 }
 0x2fe   : > { %v9418_v5 = vpop.f32.mrf.mxu1  ;;  %7761 = vmatprep.subr.bf16.mxu1 %v9338_v59 }
 0x2ff   : > { %v9421_v13 = vpop.f32.mrf.mxu0 }
 0x300   : > { %v9423_v18 = vpop.f32.mrf.mxu1  ;;  %7716 = vmatmul.mubr.bf16.gmra.mxu1 %v8139_v50 }
 0x301   : > { %7769 = vmatpush3.bf16.msra.mxu1 %v9338_v59  ;;  %v9426_v41 = vpop.f32.mrf.mxu0  ;;  %7719 = vmatprep.mubr.bf16.mxu1 %v8140_v60  ;;  %v8142_v59 = vld [vmem:[#allocation3 + $0x78] sm:$0xff]  }
 0x302   : > { %v9428_v9 = vpop.f32.mrf.mxu1  ;;  %7762 = vmatprep.subr.bf16.mxu1 %v9345_v62 }
 0x303   : > { %v9431_v28 = vpop.f32.mrf.mxu0  ;;  %7748 = vmatmul.mubr.bf16.gmra.mxu0 %v8141_v30 }
 0x304   : > { %v9433_v16 = vpop.f32.mrf.mxu1 }
 0x305   : > { %7770 = vmatpush3.bf16.msra.mxu1 %v9345_v62  ;;  %v9436_v3 = vpop.f32.mrf.mxu0 }
 0x306   : > { %v9438_v12 = vpop.f32.mrf.mxu1  ;;  %7763 = vmatprep.subr.bf16.mxu1 %v9358_v22 }
 0x307   : > { %v9441_v46 = vpop.f32.mrf.mxu0 }
 0x308   : > { %v9443_v10 = vpop.f32.mrf.mxu1  ;;  %7720 = vmatmul.mubr.bf16.gmra.mxu1 %v8142_v59 }
 0x309   : > { %7771 = vmatpush3.bf16.msra.mxu1 %v9358_v22  ;;  %v9446_v7 = vpop.f32.mrf.mxu0  ;;  %7723 = vmatprep.mubr.bf16.mxu1 %v8143_v20 }
 0x30a   : > { %v9448_v26 = vpop.f32.mrf.mxu1  ;;  %7764 = vmatprep.subr.bf16.mxu1 %v9365_v58 }
 0x30b   : > { %v9451_v62 = vpop.f32.mrf.mxu0 }
 0x30c   : > { %v9453_v57 = vpop.f32.mrf.mxu1 }
 0x30d   : > { %7772 = vmatpush3.bf16.msra.mxu1 %v9365_v58  ;;  %v9456_v23 = vpop.f32.mrf.mxu0 }
 0x30e   : > { %v9458_v2 = vpop.f32.mrf.mxu1  ;;  %7765 = vmatprep.subr.bf16.mxu1 %v9378_v52 }
 0x30f   : > { %v9461_v22 = vpop.f32.mrf.mxu0 }
 0x310   : > { %v9463_v51 = vpop.f32.mrf.mxu1  ;;  %7724 = vmatmul.mubr.bf16.gmra.mxu1 %v8144_v15 }
 0x311   : > { %7773 = vmatpush3.bf16.msra.mxu1 %v9378_v52  ;;  %v9466_v1 = vpop.f32.mrf.mxu0  ;;  %7751 = vmatprep.mubr.bf16.mxu1 %v8145_v44  ;;  %v8147_v52 = vld [vmem:[#allocation4 + $0x80] sm:$0xff]  }
 0x312   : > { %9990 = vst [vmem:[#allocation21_spill] sm:$0xff] %v9466_v1  ;;  %v9468_v54 = vpop.f32.mrf.mxu1  ;;  %7766 = vmatprep.subr.bf16.mxu1 %v9385_v53 }
 0x313   : > { %9991 = vst [vmem:[#allocation22_spill] sm:$0xff] %v9468_v54  ;;  %v9471_v58 = vpop.f32.mrf.mxu0 }
 0x314   : > { %9992 = vst [vmem:[#allocation18_spill] sm:$0xff] %v9471_v58  ;;  %v9473_v45 = vpop.f32.mrf.mxu1  ;;  %v2718_v58 = vadd.f32 %v9408_v11, %v9336_v47 }
 0x315   : > { %9993 = vst [vmem:[#allocation19_spill] sm:$0xff] %v9473_v45  ;;  %7774 = vmatpush3.bf16.msra.mxu1 %v9385_v53  ;;  %v9476_v36 = vpop.f32.mrf.mxu0 }
 0x316   : > { %9994 = vst [vmem:[#allocation25_spill] sm:$0xff] %v9476_v36  ;;  %v9478_v49 = vpop.f32.mrf.mxu1  ;;  %v2720_v36 = vadd.f32 %v9402_v48, %v9331_v17  ;;  %v2960_v17 = vadd.f32 %v9416_v39, %v2718_v58  ;;  %v2719_v48 = vadd.f32 %v9418_v5, %v9347_v25 }
 0x317   : > { %9995 = vst [vmem:[#allocation26_spill] sm:$0xff] %v9478_v49  ;;  %v9480_v34 = vpop.f32.mrf.mxu0 }
 0x318   : > { %9996 = vst [vmem:[#allocation27_spill] sm:$0xff] %v9480_v34  ;;  %v7393_v43 = vpop.f32.mrf.mxu1  ;;  %7752 = vmatmul.mubr.bf16.vlgmr.msra.gmra.mxu1 %v8146_v14  ;;  %v2962_v1 = vadd.f32 %v9411_v27, %v2720_v36  ;;  %v2724_v27 = vadd.f32 %v9423_v18, %v9351_v31  ;;  %v2722_v36 = vadd.f32 %v9428_v9, %v9356_v37 }
 0x319   : > { %v9482_v61 = vpop.f32.mrf.mxu0  ;;  %7755 = vmatprep.mubr.bf16.mxu1 %v8147_v52  ;;  %v2961_v25 = vadd.f32 %v9426_v41, %v2719_v48 }
 0x31a   : > { %9997 = vst [vmem:[#allocation28_spill] sm:$0xff] %v9482_v61  ;;  %v3140_v29 = vpop.f32.mrf.mxu1  ;;  %v2966_v18 = vadd.f32 %v9431_v28, %v2724_v27  ;;  %v2964_v41 = vadd.f32 %v9436_v3, %v2722_v36 }
 0x31b   : > { %v7425_v63 = vpop.f32.mrf.mxu0 }
 0x31c   : > { %v7394_v4 = vpop.f32.mrf.mxu1 }
 0x31d   : > { %v3383_v21 = vpop.f32.mrf.mxu0 }
 0x31e   : > { %v3143_v50 = vpop.f32.mrf.mxu1 }
 0x31f   : > { %v7426_v53 = vpop.f32.mrf.mxu0 }
 0x320   : > { %v7397_v60 = vpop.f32.mrf.mxu1  ;;  %7756 = vmatmul.mubr.bf16.gmra.mxu1 %v8148_v33 }
 0x321   : > { %v3386_v30 = vpop.f32.mrf.mxu0 }
 0x322   : > { %v3156_v59 = vpop.f32.mrf.mxu1 }
 0x323   : > { %v9484_v20 = vpop.f32.mrf.mxu0  ;;  %v3207_v27 = vadd.f32 %v3156_v59, %v2964_v41  ;;  %v10004_v41 = vld [vmem:[#allocation21_spill] sm:$0xff] }
 0x324   : > { %v9486_v15 = vpop.f32.mrf.mxu1 }
 0x325   : > { %v9488_v44 = vpop.f32.mrf.mxu0 }
 0x326   : > { %v9490_v14 = vpop.f32.mrf.mxu1 }
 0x327   : > { %v9492_v52 = vpop.f32.mrf.mxu0 }
 0x328   : > { %v9494_v61 = vpop.f32.mrf.mxu1 }
 0x329   : > { %v9496_v34 = vpop.f32.mrf.mxu0 }
 0x32a   : > { %v9498_v49 = vpop.f32.mrf.mxu1 }
 0x32b   : > { %9998 = vst [vmem:[#allocation29_spill] sm:$0xff] %v9498_v49  ;;  %v9500_v19 = vpop.f32.mrf.mxu0 }
 0x32c   : > { %9999 = vst [vmem:[#allocation30_spill] sm:$0xff] %v9500_v19  ;;  %v9502_v33 = vpop.f32.mrf.mxu1  ;;  %v2721_v19 = vadd.f32 %v9413_v55, %v9341_v6  ;;  %v3203_v6 = vadd.f32 %v3140_v29, %v2960_v17  ;;  %v3204_v29 = vadd.f32 %v3143_v50, %v2961_v25 }
 0x32d   : > { %10000 = vst [vmem:[#allocation31_spill] sm:$0xff] %v9502_v33  ;;  %v9506_v45 = vpop.f32.mrf.mxu0 }
 0x32e   : > { %v9508_v0 = vpop.f32.mrf.mxu1  ;;  %v3447_v48 = vadd.f32 %v3386_v30, %v3204_v29 }
 0x32f   : > { %10001 = vst [vmem:[#allocation32_spill] sm:$0xff] %v9508_v0  ;;  %v9512_v54 = vpop.f32.mrf.mxu0  ;;  %v3205_v0 = vadd.f32 %v7393_v43, %v2962_v1  ;;  %v3446_v43 = vadd.f32 %v3383_v21, %v3203_v6  ;;  %v2728_v21 = vadd.f32 %v9443_v10, %v9371_v35  ;;  %v2726_v35 = vadd.f32 %v9448_v26, %v9376_v38 }
 0x330   : > { %v9514_v40 = vpop.f32.mrf.mxu1  ;;  %v3450_v38 = vadd.f32 %v9488_v44, %v3207_v27  ;;  %v10010_v27 = vld [vmem:[#allocation23_spill] sm:$0xff] }
 0x331   : > { %10002 = vst [vmem:[#allocation33_spill] sm:$0xff] %v9514_v40  ;;  %v9519_v33 = vpop.f32.mrf.mxu0  ;;  %v2963_v40 = vadd.f32 %v9421_v13, %v2721_v19  ;;  %v3448_v5 = vadd.f32 %v7425_v63, %v3205_v0  ;;  %v2725_v19 = vadd.f32 %v9433_v16, %v9361_v56  ;;  %v9544_v13 = vld [vmem:[#allocation11] ss:$0 sm:$0xff]  ;;  %v2970_v36 = vadd.f32 %v9451_v62, %v2728_v21 }
 0x332   : > { %v9521_v49 = vpop.f32.mrf.mxu1  ;;  %v2727_v62 = vadd.f32 %v9458_v2, %v9387_v42  ;;  %v10003_v2 = vld [vmem:[#allocation29_spill] sm:$0xff] }
 0x333   : > { %v9526_v47 = vpop.f32.mrf.mxu0  ;;  %v3206_v1 = vadd.f32 %v7394_v4, %v2963_v40  ;;  %v2723_v40 = vadd.f32 %v9438_v12, %v9367_v8  ;;  %v3209_v4 = vadd.f32 %v7397_v60, %v2966_v18  ;;  %v2967_v28 = vadd.f32 %v9441_v46, %v2725_v19 }
 0x334   : > { %v9528_v11 = vpop.f32.mrf.mxu1 }
 0x335   : > { %v9533_v55 = vpop.f32.mrf.mxu0  ;;  %v3449_v63 = vadd.f32 %v7426_v53, %v3206_v1  ;;  %v2965_v46 = vadd.f32 %v9446_v7, %v2723_v40  ;;  %v3452_v53 = vadd.f32 %v9484_v20, %v3209_v4  ;;  %v3210_v60 = vadd.f32 %v9486_v15, %v2967_v28 }
 0x336   : > { %v9537_v39 = vpop.f32.mrf.mxu1  ;;  %v2729_v7 = vadd.f32 %v9453_v57, %v9381_v24  ;;  %v2968_v1 = vadd.f32 %v9456_v23, %v2726_v35  ;;  %v3213_v57 = vadd.f32 %v9494_v61, %v2970_v36  ;;  %v2732_v23 = vadd.f32 %v9463_v51, %v9391_v32  ;;  %v10008_v51 = vld [vmem:[#allocation31_spill] sm:$0xff]  ;;  %v10013_v36 = vld [vmem:[#allocation25_spill] sm:$0xff] }
 0x337   : > { %v9540_v58 = vpop.f32.mrf.mxu0  ;;  %v3208_v26 = vadd.f32 %v9490_v14, %v2965_v46  ;;  %v3453_v24 = vadd.f32 %v9492_v52, %v3210_v60  ;;  %v2969_v40 = vadd.f32 %v10004_v41, %v2727_v62 }
 0x338   : > { %v7457_v31 = vpop.f32.mrf.mxu1  ;;  %v2971_v18 = vadd.f32 %v9461_v22, %v2729_v7  ;;  %v3211_v29 = vadd.f32 %v10003_v2, %v2968_v1  ;;  %v10016_v1 = vld [vmem:[#allocation33_spill] sm:$0xff]  ;;  %v10018_v2 = vld [vmem:[#allocation28_spill] sm:$0xff] }
 0x339   : > { %v3691_v37 = vadd.f32 %v7457_v31, %v3448_v5  ;;  %v9547_v9 = vpop.f32.mrf.mxu0  ;;  %v3451_v42 = vadd.f32 %v9496_v34, %v3208_v26 }
 0x33a   : > { %v3626_v0 = vpop.f32.mrf.mxu1  ;;  %v3454_v35 = vadd.f32 %v9506_v45, %v3211_v29 }
 0x33b   : > { %v3713_v56 = vadd.f32 %v9544_v13, %v3691_v37  ;;  %v3689_v16 = vadd.f32 %v3626_v0, %v3446_v43  ;;  %v9553_v17 = vpop.f32.mrf.mxu0  ;;  %v10005_v0 = vld [vmem:[#allocation20_spill] sm:$0xff] }
 0x33c   : > { %v7458_v50 = vpop.f32.mrf.mxu1 }
 0x33d   : > { %3729 = vst [vmem:[%s9560_s15 + $0x10] sm:$0xff] %v3713_v56  ;;  %v3711_v8 = vadd.f32 %v9544_v13, %v3689_v16  ;;  %v3692_v3 = vadd.f32 %v7458_v50, %v3449_v63  ;;  %v9564_v12 = vpop.f32.mrf.mxu0  ;;  %v10006_v63 = vld [vmem:[#allocation22_spill] sm:$0xff]  ;;  %v3214_v16 = vadd.f32 %v10008_v51, %v2971_v18 }
 0x33e   : > { %v3629_v10 = vpop.f32.mrf.mxu1  ;;  %v2730_v22 = vadd.f32 %v10006_v63, %v10005_v0  ;;  %v10007_v56 = vld [vmem:[#allocation30_spill] sm:$0xff] }
 0x33f   : > { %3727 = vst [vmem:[%s9560_s15] sm:$0xff] %v3711_v8  ;;  %v3714_v30 = vadd.f32 %v9544_v13, %v3692_v3  ;;  %v3690_v59 = vadd.f32 %v3629_v10, %v3447_v48  ;;  %v9573_v6 = vpop.f32.mrf.mxu0  ;;  %v3456_v32 = vadd.f32 %v10007_v56, %v3213_v57  ;;  %v10009_v50 = vld [vmem:[#allocation18_spill] sm:$0xff]  ;;  %v10011_v8 = vld [vmem:[#allocation19_spill] sm:$0xff]  ;;  %v10012_v10 = vld [vmem:[#allocation32_spill] sm:$0xff] }
 0x340   : > { %v7461_v25 = vpop.f32.mrf.mxu1  ;;  %v2974_v48 = vadd.f32 %v10009_v50, %v2732_v23  ;;  %v2733_v3 = vadd.f32 %v10011_v8, %v10010_v27  ;;  %v2972_v7 = vadd.f32 %v10013_v36, %v2730_v22  ;;  %v10017_v57 = vld [vmem:[#allocation27_spill] sm:$0xff] }
 0x341   : > { %3730 = vst [vmem:[%s9560_s15 + $0x18] sm:$0xff] %v3714_v30  ;;  %v3712_v20 = vadd.f32 %v9544_v13, %v3690_v59  ;;  %v3695_v15 = vadd.f32 %v7461_v25, %v3452_v53  ;;  %v9582_v5 = vpop.f32.mrf.mxu0  ;;  %v3212_v53 = vadd.f32 %v10012_v10, %v2969_v40  ;;  %v10014_v25 = vld [vmem:[#allocation24_spill] sm:$0xff] }
 0x342   : > { %v3642_v19 = vpop.f32.mrf.mxu1  ;;  %v3217_v62 = vadd.f32 %v10016_v1, %v2974_v48  ;;  %v3215_v23 = vadd.f32 %v9521_v49, %v2972_v7 }
 0x343   : > { %3728 = vst [vmem:[%s9560_s15 + $0x8] sm:$0xff] %v3712_v20  ;;  %v3717_v44 = vadd.f32 %v9544_v13, %v3695_v15  ;;  %v3693_v14 = vadd.f32 %v3642_v19, %v3450_v38  ;;  %v9591_v31 = vpop.f32.mrf.mxu0  ;;  %v10015_v38 = vld [vmem:[#allocation26_spill] sm:$0xff]  ;;  %v3457_v15 = vadd.f32 %v9512_v54, %v3214_v16  ;;  %v3455_v18 = vadd.f32 %v9519_v33, %v3212_v53 }
 0x344   : > { %v7462_v43 = vpop.f32.mrf.mxu1  ;;  %v2731_v26 = vadd.f32 %v10015_v38, %v10014_v25  ;;  %v3458_v63 = vadd.f32 %v9533_v55, %v3215_v23 }
 0x345   : > { %3733 = vst [vmem:[%s9560_s15 + $0x30] sm:$0xff] %v3717_v44  ;;  %v3715_v61 = vadd.f32 %v9544_v13, %v3693_v14  ;;  %v3696_v52 = vadd.f32 %v7462_v43, %v3453_v24  ;;  %v9600_v37 = vpop.f32.mrf.mxu0  ;;  %v2975_v44 = vadd.f32 %v10017_v57, %v2733_v3 }
 0x346   : > { %v3645_v4 = vpop.f32.mrf.mxu1  ;;  %v2973_v29 = vadd.f32 %v10018_v2, %v2731_v26 }
 0x347   : > { %3731 = vst [vmem:[%s9560_s15 + $0x20] sm:$0xff] %v3715_v61  ;;  %v3718_v34 = vadd.f32 %v9544_v13, %v3696_v52  ;;  %v3694_v28 = vadd.f32 %v3645_v4, %v3451_v42  ;;  %v9609_v21 = vpop.f32.mrf.mxu0  ;;  %v3460_v52 = vadd.f32 %v9526_v47, %v3217_v62  ;;  %v3218_v41 = vadd.f32 %v9528_v11, %v2975_v44 }
 0x348   : > { %v7465_v46 = vpop.f32.mrf.mxu1  ;;  %v3216_v22 = vadd.f32 %v9537_v39, %v2973_v29 }
 0x349   : > { %3734 = vst [vmem:[%s9560_s15 + $0x38] sm:$0xff] %v3718_v34  ;;  %v3716_v60 = vadd.f32 %v9544_v13, %v3694_v28  ;;  %v3699_v30 = vadd.f32 %v7465_v46, %v3456_v32  ;;  %v9618_v59 = vpop.f32.mrf.mxu0  ;;  %v3461_v32 = vadd.f32 %v9540_v58, %v3218_v41 }
 0x34a   : > { %v3658_v20 = vpop.f32.mrf.mxu1  ;;  %v3459_v39 = vadd.f32 %v9547_v9, %v3216_v22 }
 0x34b   : > { %3732 = vst [vmem:[%s9560_s15 + $0x28] sm:$0xff] %v3716_v60  ;;  %v3721_v45 = vadd.f32 %v9544_v13, %v3699_v30  ;;  %v3697_v19 = vadd.f32 %v3658_v20, %v3454_v35  ;;  %v9627_v24 = vpop.f32.mrf.mxu0 }
 0x34c   : > { %v7466_v14 = vpop.f32.mrf.mxu1 }
 0x34d   : > { %3737 = vst [vmem:[%s9560_s15 + $0x50] sm:$0xff] %v3721_v45  ;;  %v3719_v54 = vadd.f32 %v9544_v13, %v3697_v19  ;;  %v3700_v43 = vadd.f32 %v7466_v14, %v3457_v15  ;;  %v9634_v42 = vpop.f32.mrf.mxu0 }
 0x34e   : > { %v3661_v61 = vpop.f32.mrf.mxu1 }
 0x34f   : > { %3735 = vst [vmem:[%s9560_s15 + $0x40] sm:$0xff] %v3719_v54  ;;  %v3722_v33 = vadd.f32 %v9544_v13, %v3700_v43  ;;  %v3698_v40 = vadd.f32 %v3661_v61, %v3455_v18  ;;  %v9641_v49 = vpop.f32.mrf.mxu0 }
 0x350   : > { %v7469_v0 = vpop.f32.mrf.mxu1 }
 0x351   : > { %3738 = vst [vmem:[%s9560_s15 + $0x58] sm:$0xff] %v3722_v33  ;;  %v3720_v4 = vadd.f32 %v9544_v13, %v3698_v40  ;;  %v3703_v56 = vadd.f32 %v7469_v0, %v3460_v52  ;;  %v9647_v47 = vpop.f32.mrf.mxu0 }
 0x352   : > { %v3674_v11 = vpop.f32.mrf.mxu1 }
 0x353   : > { %3736 = vst [vmem:[%s9560_s15 + $0x48] sm:$0xff] %v3720_v4  ;;  %v3725_v51 = vadd.f32 %v9544_v13, %v3703_v56  ;;  %v3701_v16 = vadd.f32 %v3674_v11, %v3458_v63  ;;  %v9652_v34 = vpop.f32.mrf.mxu0 }
 0x354   : > { %v7470_v55 = vpop.f32.mrf.mxu1 }
 0x355   : > { %3741 = vst [vmem:[%s9560_s15 + $0x70] sm:$0xff] %v3725_v51  ;;  %v3723_v28 = vadd.f32 %v9544_v13, %v3701_v16  ;;  %v3704_v50 = vadd.f32 %v7470_v55, %v3461_v32  ;;  %v3987_v48 = vpop.f32.mrf.mxu0 }
 0x356   : > { %v3677_v27 = vpop.f32.mrf.mxu1 }
 0x357   : > { %3739 = vst [vmem:[%s9560_s15 + $0x60] sm:$0xff] %v3723_v28  ;;  %v3726_v58 = vadd.f32 %v9544_v13, %v3704_v50  ;;  %v3702_v8 = vadd.f32 %v3677_v27, %v3459_v39  ;;  %v7502_v3 = vpop.f32.mrf.mxu0 }
 0x358   : > { %v7521_v46 = vpop.f32.mrf.mxu1 }
 0x359   : > { %3742 = vst [vmem:[%s9560_s15 + $0x78] sm:$0xff] %v3726_v58  ;;  %v3724_v35 = vadd.f32 %v9544_v13, %v3702_v8  ;;  %v4141_v10 = vadd.f32 %v7521_v46, %v9553_v17  ;;  %v3990_v53 = vpop.f32.mrf.mxu0 }
 0x35a   : > { %v4132_v9 = vpop.f32.mrf.mxu1 }
 0x35b   : > { %3740 = vst [vmem:[%s9560_s15 + $0x68] sm:$0xff] %v3724_v35  ;;  %v4133_v60 = vadd.f32 %v4132_v9, %v9564_v12  ;;  %v7553_v30 = vpop.f32.mrf.mxu0 }
 0x35c   : > { %v9664_v36 = vadd.f32 %v7553_v30, %v4141_v10  ;;  %v7522_v7 = vpop.f32.mrf.mxu1 }
 0x35d   : > { %v4144_v25 = vadd.f32 %v7522_v7, %v9573_v6  ;;  %v4358_v38 = vpop.f32.mrf.mxu0 }
 0x35e   : > { %v9667_v26 = vadd.f32 %v4358_v38, %v4133_v60  ;;  %v4135_v20 = vpop.f32.mrf.mxu1 }
 0x35f   : > { %v4136_v15 = vadd.f32 %v4135_v20, %v9582_v5  ;;  %v7554_v1 = vpop.f32.mrf.mxu0 }
 0x360   : > { %v9670_v62 = vadd.f32 %v7554_v1, %v4144_v25  ;;  %v7525_v17 = vpop.f32.mrf.mxu1 }
 0x361   : > { %v4157_v45 = vadd.f32 %v7525_v17, %v9591_v31  ;;  %v4361_v19 = vpop.f32.mrf.mxu0 }
 0x362   : > { %v9673_v12 = vadd.f32 %v4361_v19, %v4136_v15  ;;  %v4148_v57 = vpop.f32.mrf.mxu1 }
 0x363   : > { %v4149_v44 = vadd.f32 %v4148_v57, %v9600_v37  ;;  %v7557_v14 = vpop.f32.mrf.mxu0 }
 0x364   : > { %v9676_v6 = vadd.f32 %v7557_v14, %v4157_v45  ;;  %v7526_v18 = vpop.f32.mrf.mxu1 }
 0x365   : > { %v4160_v23 = vadd.f32 %v7526_v18, %v9609_v21  ;;  %v4374_v54 = vpop.f32.mrf.mxu0 }
 0x366   : > { %v9679_v5 = vadd.f32 %v4374_v54, %v4149_v44  ;;  %v4151_v43 = vpop.f32.mrf.mxu1 }
 0x367   : > { %v4152_v2 = vadd.f32 %v4151_v43, %v9618_v59  ;;  %v7558_v29 = vpop.f32.mrf.mxu0 }
 0x368   : > { %v9682_v31 = vadd.f32 %v7558_v29, %v4160_v23  ;;  %v7529_v61 = vpop.f32.mrf.mxu1 }
 0x369   : > { %v4173_v52 = vadd.f32 %v7529_v61, %v9627_v24  ;;  %v4377_v41 = vpop.f32.mrf.mxu0 }
 0x36a   : > { %v9685_v37 = vadd.f32 %v4377_v41, %v4152_v2  ;;  %v4164_v33 = vpop.f32.mrf.mxu1 }
 0x36b   : > { %v4165_v40 = vadd.f32 %v4164_v33, %v9634_v42  ;;  %v7561_v0 = vpop.f32.mrf.mxu0 }
 0x36c   : > { %v4431_v21 = vadd.f32 %v7561_v0, %v4173_v52  ;;  %v7530_v63 = vpop.f32.mrf.mxu1 }
 0x36d   : > { %v4176_v22 = vadd.f32 %v7530_v63, %v9641_v49  ;;  %v4390_v4 = vpop.f32.mrf.mxu0 }
 0x36e   : > { %v4429_v56 = vadd.f32 %v4390_v4, %v4165_v40  ;;  %v4167_v59 = vpop.f32.mrf.mxu1 }
 0x36f   : > { %v4168_v11 = vadd.f32 %v4167_v59, %v9647_v47  ;;  %v7562_v32 = vpop.f32.mrf.mxu0 }
 0x370   : > { %v4432_v51 = vadd.f32 %v7562_v32, %v4176_v22  ;;  %v7533_v16 = vpop.f32.mrf.mxu1 }
 0x371   : > { %v4189_v24 = vadd.f32 %v7533_v16, %v9652_v34  ;;  %v4393_v55 = vpop.f32.mrf.mxu0 }
 0x372   : > { %v4430_v39 = vadd.f32 %v4393_v55, %v4168_v11  ;;  %v4180_v28 = vpop.f32.mrf.mxu1 }
 0x373   : > { %v4181_v50 = vadd.f32 %v4180_v28, %v3987_v48  ;;  %v7565_v42 = vpop.f32.mrf.mxu0 }
 0x374   : > { %v4435_v27 = vadd.f32 %v7565_v42, %v4189_v24  ;;  %v7534_v58 = vpop.f32.mrf.mxu1 }
 0x375   : > { %v4192_v8 = vadd.f32 %v7534_v58, %v7502_v3  ;;  %v4406_v46 = vpop.f32.mrf.mxu0 }
 0x376   : > { %v4433_v49 = vadd.f32 %v4406_v46, %v4181_v50  ;;  %v4183_v35 = vpop.f32.mrf.mxu1 }
 0x377   : > { %v4184_v10 = vadd.f32 %v4183_v35, %v3990_v53  ;;  %v7566_v9 = vpop.f32.mrf.mxu0 }
 0x378   : > { %v4436_v60 = vadd.f32 %v7566_v9, %v4192_v8  ;;  %v9691_v47 = vpop.f32.mrf.mxu1 }
 0x379   : > { %v4409_v30 = vpop.f32.mrf.mxu0 }
 0x37a   : > { %v4434_v7 = vadd.f32 %v4409_v30, %v4184_v10  ;;  %v9693_v25 = vpop.f32.mrf.mxu1 }
 0x37b   : > { %v9695_v34 = vpop.f32.mrf.mxu0 }
 0x37c   : > { %v9697_v38 = vpop.f32.mrf.mxu1 }
 0x37d   : > { %v9699_v48 = vpop.f32.mrf.mxu0 }
 0x37e   : > { %v9701_v20 = vpop.f32.mrf.mxu1 }
 0x37f   : > { %v9703_v3 = vpop.f32.mrf.mxu0 }
 0x380   : > { %v9705_v15 = vpop.f32.mrf.mxu1 }
 0x381   : > { %v9707_v53 = vpop.f32.mrf.mxu0 }
 0x382   : > { %v9709_v1 = vpop.f32.mrf.mxu1 }
 0x383   : > { %v9711_v17 = vpop.f32.mrf.mxu0 }
 0x384   : > { %v9713_v45 = vpop.f32.mrf.mxu1 }
 0x385   : > { %v9715_v19 = vpop.f32.mrf.mxu0 }
 0x386   : > { %v9717_v57 = vpop.f32.mrf.mxu1 }
 0x387   : > { %v9719_v44 = vpop.f32.mrf.mxu0 }
 0x388   : > { %v7593_v14 = vpop.f32.mrf.mxu1 }
 0x389   : > { %v4673_v18 = vadd.f32 %v7593_v14, %v4431_v21  ;;  %v9721_v23 = vpop.f32.mrf.mxu0 }
 0x38a   : > { %v4632_v54 = vpop.f32.mrf.mxu1 }
 0x38b   : > { %v4671_v43 = vadd.f32 %v4632_v54, %v4429_v56  ;;  %v7625_v2 = vpop.f32.mrf.mxu0 }
 0x38c   : > { %v9723_v29 = vadd.f32 %v7625_v2, %v4673_v18  ;;  %v7594_v61 = vpop.f32.mrf.mxu1 }
 0x38d   : > { %v4674_v52 = vadd.f32 %v7594_v61, %v4432_v51  ;;  %v4874_v41 = vpop.f32.mrf.mxu0 }
 0x38e   : > { %v9725_v33 = vadd.f32 %v4874_v41, %v4671_v43  ;;  %v4635_v40 = vpop.f32.mrf.mxu1 }
 0x38f   : > { %v4672_v0 = vadd.f32 %v4635_v40, %v4430_v39  ;;  %v7626_v63 = vpop.f32.mrf.mxu0 }
 0x390   : > { %v9727_v22 = vadd.f32 %v7626_v63, %v4674_v52  ;;  %v7597_v4 = vpop.f32.mrf.mxu1 }
 0x391   : > { %v4677_v59 = vadd.f32 %v7597_v4, %v4435_v27  ;;  %v4877_v21 = vpop.f32.mrf.mxu0 }
 0x392   : > { %v9729_v11 = vadd.f32 %v4877_v21, %v4672_v0  ;;  %v4648_v32 = vpop.f32.mrf.mxu1  ;;  %v4665_v21 = vadd.f32 %v9691_v47, %v9664_v36  ;;  %v4664_v47 = vadd.f32 %v9701_v20, %v9673_v12 }
 0x393   : > { %v4675_v56 = vadd.f32 %v4648_v32, %v4433_v49  ;;  %v7629_v16 = vpop.f32.mrf.mxu0 }
 0x394   : > { %v9731_v24 = vadd.f32 %v7629_v16, %v4677_v59  ;;  %v7598_v55 = vpop.f32.mrf.mxu1  ;;  %v4663_v16 = vadd.f32 %v9693_v25, %v9667_v26  ;;  %v4669_v25 = vadd.f32 %v9705_v15, %v9676_v6  ;;  %v4906_v12 = vadd.f32 %v9707_v53, %v4664_v47 }
 0x395   : > { %v4678_v51 = vadd.f32 %v7598_v55, %v4436_v60  ;;  %v4890_v28 = vpop.f32.mrf.mxu0  ;;  %v4668_v53 = vadd.f32 %v9717_v57, %v9685_v37 }
 0x396   : > { %v9733_v50 = vadd.f32 %v4890_v28, %v4675_v56  ;;  %v4651_v42 = vpop.f32.mrf.mxu1  ;;  %v4907_v28 = vadd.f32 %v9695_v34, %v4665_v21  ;;  %v4905_v36 = vadd.f32 %v9699_v48, %v4663_v16  ;;  %v4667_v21 = vadd.f32 %v9709_v1, %v9679_v5 }
 0x397   : > { %v4676_v39 = vadd.f32 %v4651_v42, %v4434_v7  ;;  %v7630_v58 = vpop.f32.mrf.mxu0  ;;  %v4666_v42 = vadd.f32 %v9697_v38, %v9670_v62  ;;  %v4911_v6 = vadd.f32 %v9711_v17, %v4669_v25  ;;  %v4910_v37 = vadd.f32 %v9721_v23, %v4668_v53 }
 0x398   : > { %v9735_v8 = vadd.f32 %v7630_v58, %v4678_v51  ;;  %v7649_v46 = vpop.f32.mrf.mxu1  ;;  %v4909_v5 = vadd.f32 %v9715_v19, %v4667_v21 }
 0x399   : > { %v4893_v27 = vpop.f32.mrf.mxu0  ;;  %v4908_v34 = vadd.f32 %v9703_v3, %v4666_v42  ;;  %v4670_v3 = vadd.f32 %v9713_v45, %v9682_v31 }
 0x39a   : > { %v9737_v35 = vadd.f32 %v4893_v27, %v4676_v39  ;;  %v5084_v10 = vpop.f32.mrf.mxu1  ;;  %v5149_v27 = vadd.f32 %v7649_v46, %v4907_v28 }
 0x39b   : > { %v7681_v9 = vpop.f32.mrf.mxu0  ;;  %v5147_v62 = vadd.f32 %v5084_v10, %v4905_v36  ;;  %v4912_v31 = vadd.f32 %v9719_v44, %v4670_v3 }
 0x39c   : > { %10019 = vst [vmem:[#allocation29_spill] sm:$0xff] %v9737_v35  ;;  %v7650_v49 = vpop.f32.mrf.mxu1  ;;  %v5391_v20 = vadd.f32 %v7681_v9, %v5149_v27 }
 0x39d   : > { %v5326_v30 = vpop.f32.mrf.mxu0  ;;  %v5150_v46 = vadd.f32 %v7650_v49, %v4908_v34 }
 0x39e   : > { %v5087_v14 = vpop.f32.mrf.mxu1  ;;  %v5389_v10 = vadd.f32 %v5326_v30, %v5147_v62 }
 0x39f   : > { %v7682_v18 = vpop.f32.mrf.mxu0  ;;  %v5148_v28 = vadd.f32 %v5087_v14, %v4906_v12 }
 0x3a0   : > { %v7653_v54 = vpop.f32.mrf.mxu1  ;;  %v5392_v9 = vadd.f32 %v7682_v18, %v5150_v46 }
 0x3a1   : > { %v5329_v60 = vpop.f32.mrf.mxu0  ;;  %v5153_v49 = vadd.f32 %v7653_v54, %v4911_v6 }
 0x3a2   : > { %v5100_v43 = vpop.f32.mrf.mxu1  ;;  %v5390_v45 = vadd.f32 %v5329_v60, %v5148_v28 }
 0x3a3   : > { %v7685_v2 = vpop.f32.mrf.mxu0  ;;  %v5151_v30 = vadd.f32 %v5100_v43, %v4909_v5 }
 0x3a4   : > { %v7654_v61 = vpop.f32.mrf.mxu1  ;;  %v5395_v57 = vadd.f32 %v7685_v2, %v5153_v49 }
 0x3a5   : > { %v9739_v52 = vpop.f32.mrf.mxu0  ;;  %v5154_v18 = vadd.f32 %v7654_v61, %v4912_v31 }
 0x3a6   : > { %v9741_v7 = vpop.f32.mrf.mxu1  ;;  %v5393_v43 = vadd.f32 %v9739_v52, %v5151_v30 }
 0x3a7   : > { %v9743_v41 = vpop.f32.mrf.mxu0  ;;  %v5152_v46 = vadd.f32 %v9741_v7, %v4910_v37 }
 0x3a8   : > { %v9745_v40 = vpop.f32.mrf.mxu1  ;;  %v5396_v3 = vadd.f32 %v9743_v41, %v5154_v18 }
 0x3a9   : > { %v9747_v0 = vpop.f32.mrf.mxu0  ;;  %v5157_v37 = vadd.f32 %v9745_v40, %v9723_v29 }
 0x3aa   : > { %v9749_v63 = vpop.f32.mrf.mxu1  ;;  %v5394_v7 = vadd.f32 %v9747_v0, %v5152_v46 }
 0x3ab   : > { %v9751_v4 = vpop.f32.mrf.mxu0  ;;  %v5155_v18 = vadd.f32 %v9749_v63, %v9725_v33 }
 0x3ac   : > { %v9753_v59 = vpop.f32.mrf.mxu1 }
 0x3ad   : > { %v9757_v32 = vpop.f32.mrf.mxu0 }
 0x3ae   : > { %v9759_v56 = vpop.f32.mrf.mxu1 }
 0x3af   : > { %v9763_v55 = vpop.f32.mrf.mxu0 }
 0x3b0   : > { %v9765_v51 = vpop.f32.mrf.mxu1 }
 0x3b1   : > { %v9770_v39 = vpop.f32.mrf.mxu0  ;;  %v5161_v29 = vadd.f32 %v9765_v51, %v9731_v24 }
 0x3b2   : > { %v9772_v58 = vpop.f32.mrf.mxu1 }
 0x3b3   : > { %v9777_v26 = vpop.f32.mrf.mxu0 }
 0x3b4   : > { %v9781_v35 = vpop.f32.mrf.mxu1 }
 0x3b5   : > { %v9784_v38 = vpop.f32.mrf.mxu0  ;;  %v5162_v24 = vadd.f32 %v9781_v35, %v9735_v8 }
 0x3b6   : > { %v9788_v48 = vpop.f32.mrf.mxu1 }
 0x3b7   : > { %v9791_v16 = vpop.f32.mrf.mxu0 }
 0x3b8   : > { %v7713_v15 = vpop.f32.mrf.mxu1  ;;  %v5404_v8 = vadd.f32 %v9791_v16, %v5162_v24 }
 0x3b9   : > { %v5633_v42 = vadd.f32 %v7713_v15, %v5391_v20  ;;  %v9796_v36 = vpop.f32.mrf.mxu0 }
 0x3ba   : > { %v5568_v1 = vpop.f32.mrf.mxu1 }
 0x3bb   : > { %v5631_v47 = vadd.f32 %v5568_v1, %v5389_v10  ;;  %v7745_v27 = vpop.f32.mrf.mxu0 }
 0x3bc   : > { %v5875_v17 = vadd.f32 %v7745_v27, %v5633_v42  ;;  %v7714_v25 = vpop.f32.mrf.mxu1 }
 0x3bd   : > { %v5634_v14 = vadd.f32 %v7714_v25, %v5392_v9  ;;  %v5810_v34 = vpop.f32.mrf.mxu0 }
 0x3be   : > { %v5891_v62 = vadd.f32 %v9544_v13, %v5875_v17  ;;  %v5873_v19 = vadd.f32 %v5810_v34, %v5631_v47  ;;  %v5571_v21 = vpop.f32.mrf.mxu1 }
 0x3bf   : > { %v5632_v54 = vadd.f32 %v5571_v21, %v5390_v45  ;;  %v7746_v12 = vpop.f32.mrf.mxu0 }
 0x3c0   : > { %6441 = vst [vmem:[%s9560_s15 + $0x90] sm:$0xff] %v5891_v62  ;;  %v5889_v20 = vadd.f32 %v9544_v13, %v5873_v19  ;;  %v5876_v44 = vadd.f32 %v7746_v12, %v5634_v14  ;;  %v7717_v60 = vpop.f32.mrf.mxu1  ;;  %v5399_v12 = vadd.f32 %v9751_v4, %v5157_v37  ;;  %v5159_v4 = vadd.f32 %v9772_v58, %v9733_v50 }
 0x3c1   : > { %v5637_v6 = vadd.f32 %v7717_v60, %v5395_v57  ;;  %v5813_v15 = vpop.f32.mrf.mxu0  ;;  %v5397_v60 = vadd.f32 %v9757_v32, %v5155_v18 }
 0x3c2   : > { %6439 = vst [vmem:[%s9560_s15 + $0x80] sm:$0xff] %v5889_v20  ;;  %v5892_v23 = vadd.f32 %v9544_v13, %v5876_v44  ;;  %v5874_v2 = vadd.f32 %v5813_v15, %v5632_v54  ;;  %v5584_v61 = vpop.f32.mrf.mxu1  ;;  %v5158_v20 = vadd.f32 %v9753_v59, %v9727_v22  ;;  %v5403_v15 = vadd.f32 %v9777_v26, %v5161_v29 }
 0x3c3   : > { %v5635_v10 = vadd.f32 %v5584_v61, %v5393_v43  ;;  %v7749_v28 = vpop.f32.mrf.mxu0  ;;  %v5156_v43 = vadd.f32 %v9759_v56, %v9729_v11  ;;  %v5401_v58 = vadd.f32 %v9784_v38, %v5159_v4 }
 0x3c4   : > { %6442 = vst [vmem:[%s9560_s15 + $0x98] sm:$0xff] %v5892_v23  ;;  %v5890_v42 = vadd.f32 %v9544_v13, %v5874_v2  ;;  %v5879_v5 = vadd.f32 %v7749_v28, %v5637_v6  ;;  %v7718_v52 = vpop.f32.mrf.mxu1  ;;  %v5400_v33 = vadd.f32 %v9763_v55, %v5158_v20  ;;  %v10020_v2 = vld [vmem:[#allocation29_spill] sm:$0xff] }
 0x3c5   : > { %v5638_v1 = vadd.f32 %v7718_v52, %v5396_v3  ;;  %v5826_v53 = vpop.f32.mrf.mxu0  ;;  %v5398_v59 = vadd.f32 %v9770_v39, %v5156_v43  ;;  %v5160_v61 = vadd.f32 %v9788_v48, %v10020_v2 }
 0x3c6   : > { %6440 = vst [vmem:[%s9560_s15 + $0x88] sm:$0xff] %v5890_v42  ;;  %v5895_v9 = vadd.f32 %v9544_v13, %v5879_v5  ;;  %v5877_v49 = vadd.f32 %v5826_v53, %v5635_v10  ;;  %v5587_v41 = vpop.f32.mrf.mxu1 }
 0x3c7   : > { %v5636_v47 = vadd.f32 %v5587_v41, %v5394_v7  ;;  %v7750_v27 = vpop.f32.mrf.mxu0  ;;  %v5402_v48 = vadd.f32 %v9796_v36, %v5160_v61 }
 0x3c8   : > { %6445 = vst [vmem:[%s9560_s15 + $0xb0] sm:$0xff] %v5895_v9  ;;  %v5893_v17 = vadd.f32 %v9544_v13, %v5877_v49  ;;  %v5880_v25 = vadd.f32 %v7750_v27, %v5638_v1  ;;  %v7721_v31 = vpop.f32.mrf.mxu1 }
 0x3c9   : > { %v5829_v45 = vpop.f32.mrf.mxu0  ;;  %v5641_v46 = vadd.f32 %v7721_v31, %v5399_v12 }
 0x3ca   : > { %6443 = vst [vmem:[%s9560_s15 + $0xa0] sm:$0xff] %v5893_v17  ;;  %v5896_v0 = vadd.f32 %v9544_v13, %v5880_v25  ;;  %v5878_v30 = vadd.f32 %v5829_v45, %v5636_v47  ;;  %v5600_v14 = vpop.f32.mrf.mxu1 }
 0x3cb   : > { %v5639_v63 = vadd.f32 %v5600_v14, %v5397_v60 }
 0x3cc   : > { %6446 = vst [vmem:[%s9560_s15 + $0xb8] sm:$0xff] %v5896_v0  ;;  %v5894_v34 = vadd.f32 %v9544_v13, %v5878_v30  ;;  %v7722_v62 = vpop.f32.mrf.mxu1 }
 0x3cd   : > { %v5642_v32 = vadd.f32 %v7722_v62, %v5400_v33 }
 0x3ce   : > { %6444 = vst [vmem:[%s9560_s15 + $0xa8] sm:$0xff] %v5894_v34  ;;  %v5603_v19 = vpop.f32.mrf.mxu1 }
 0x3cf   : > { %v5640_v55 = vadd.f32 %v5603_v19, %v5398_v59 }
 0x3d0   : > { %v7725_v21 = vpop.f32.mrf.mxu1 }
 0x3d1   : > { %v5645_v3 = vadd.f32 %v7725_v21, %v5403_v15 }
 0x3d2   : > { %v5616_v57 = vpop.f32.mrf.mxu1 }
 0x3d3   : > { %v5643_v35 = vadd.f32 %v5616_v57, %v5401_v58 }
 0x3d4   : > { %v7726_v54 = vpop.f32.mrf.mxu1 }
 0x3d5   : > { %v5646_v52 = vadd.f32 %v7726_v54, %v5404_v8 }
 0x3d6   : > { %v5619_v44 = vpop.f32.mrf.mxu1 }
 0x3d7   : > { %v5644_v16 = vadd.f32 %v5619_v44, %v5402_v48 }
 0x3d8   : > { %v7753_v40 = vpop.f32.mrf.mxu1 }
 0x3d9   : > { %v5883_v6 = vadd.f32 %v7753_v40, %v5641_v46 }
 0x3da   : > { %v5842_v22 = vpop.f32.mrf.mxu1 }
 0x3db   : > { %v5899_v11 = vadd.f32 %v9544_v13, %v5883_v6  ;;  %v5881_v56 = vadd.f32 %v5842_v22, %v5639_v63 }
 0x3dc   : > { %v7754_v23 = vpop.f32.mrf.mxu1 }
 0x3dd   : > { %6449 = vst [vmem:[%s9560_s15 + $0xd0] sm:$0xff] %v5899_v11  ;;  %v5897_v51 = vadd.f32 %v9544_v13, %v5881_v56  ;;  %v5884_v50 = vadd.f32 %v7754_v23, %v5642_v32 }
 0x3de   : > { %v5845_v39 = vpop.f32.mrf.mxu1 }
 0x3df   : > { %6447 = vst [vmem:[%s9560_s15 + $0xc0] sm:$0xff] %v5897_v51  ;;  %v5900_v26 = vadd.f32 %v9544_v13, %v5884_v50  ;;  %v5882_v10 = vadd.f32 %v5845_v39, %v5640_v55 }
 0x3e0   : > { %v7757_v28 = vpop.f32.mrf.mxu1 }
 0x3e1   : > { %6450 = vst [vmem:[%s9560_s15 + $0xd8] sm:$0xff] %v5900_v26  ;;  %v5898_v38 = vadd.f32 %v9544_v13, %v5882_v10  ;;  %v5887_v42 = vadd.f32 %v7757_v28, %v5645_v3 }
 0x3e2   : > { %v5858_v5 = vpop.f32.mrf.mxu1 }
 0x3e3   : > { %6448 = vst [vmem:[%s9560_s15 + $0xc8] sm:$0xff] %v5898_v38  ;;  %v5903_v7 = vadd.f32 %v9544_v13, %v5887_v42  ;;  %v5885_v1 = vadd.f32 %v5858_v5, %v5643_v35 }
 0x3e4   : > { %v7758_v53 = vpop.f32.mrf.mxu1 }
 0x3e5   : > { %6453 = vst [vmem:[%s9560_s15 + $0xf0] sm:$0xff] %v5903_v7  ;;  %v5901_v9 = vadd.f32 %v9544_v13, %v5885_v1  ;;  %v5888_v49 = vadd.f32 %v7758_v53, %v5646_v52 }
 0x3e6   : > { %v5861_v41 = vpop.f32.mrf.mxu1 }
 0x3e7   : > { %6451 = vst [vmem:[%s9560_s15 + $0xe0] sm:$0xff] %v5901_v9  ;;  %v5904_v36 = vadd.f32 %v9544_v13, %v5888_v49  ;;  %v5886_v47 = vadd.f32 %v5861_v41, %v5644_v16 }
 0x3e9   : > { %6454 = vst [vmem:[%s9560_s15 + $0xf8] sm:$0xff] %v5904_v36  ;;  %v5902_v27 = vadd.f32 %v9544_v13, %v5886_v47 }
 0x3eb   : > { %6452 = vst [vmem:[%s9560_s15 + $0xe8] sm:$0xff] %v5902_v27 }
 0x3ec   : > { %8418 = shalt.err (!%p8415_p9)
}
 0x3ed   : > { %s8419_s27 = scalar_lea.hbm %s9865_s16, 4096  ;;  %s8423_s10 = scalar_lea.hbm %s9919_s6, 8192 }
 0x3ee   : > { %p8420_p1 = scmp.ne.s32.totalorder %s9865_s16, %s8419_s27  ;;  %p8424_p8 = scmp.lt.s32.totalorder %s9865_s16, %s9919_s6 }
 0x3ef   : > { %p8425_p3 = scmp.lt.s32.totalorder %s8423_s10, %s8419_s27 }
 0x3f0   : > { %p8421_p4 = pnand %p8420_p1, %p10021_p12 }
 0x3f1   : > { %p8426_p11 = por %p8425_p3, %p8424_p8 }
 0x3f2   : > { %p8422_p6 = pneg %p8421_p4 }
 0x3f4   : > { %p8427_p7 = pnand %p8426_p11, %p8422_p6 }
 0x3f6   : > { %8430 = shalt.err (!%p8427_p7)
}
 0x3f7   : > { %s8491_s18 = smov 128   ;;  %s8492_s19 = smov 8  }
 0x3f8   : > { %7789 = dma.vmem_to_hbm [thread:$0]  (%p10021_p12), %s9867_s11, 4096, %s9865_s16, %s5923_s25, %s8491_s18, %s8491_s18, %s8492_s19  }
 0x3f9 PF: > { %s5951_s26 = sand.u32 1, %s8465_s21   ;;  %p10022_p13 = scmp.ne.s32.totalorder %s9936_s28, 0 }
 0x3fa   : > { %p10023_p0 = scmp.ge.s32.totalorder %s8477_s24, 2  ;;  %s5952_s13 = scalar_lea.sflag [#allocation7], %s5951_s26 }
 0x3fc   : > { %p7806_p5 = pnand %p10023_p0, %p10022_p13 }
 0x3fe   : > { %p7807_p10 = pneg %p7806_p5 }
 0x400   : > { %8460 = dma.done.wait (%p7807_p10), %s5952_s13, 4096  }
 0x401   : > { %8462 = vsyncadd (%p7807_p10), %s5952_s13, 4294963200  ;;  %p21_p2 = scmp.ge.s32.totalorder %s8603_s7, 4   ;;  %s10024_s21 = smov %s8469_s22 }
 0x402   : > { %s10025_s22 = smov %s8473_s23  ;;  %s10026_s23 = smov %s8621_s8 }
 0x403   : > { %s10027_s24 = smov %s8603_s7  ;;  %23 = sbr.rel (!%p21_p2) target bundleno = 7 (0x7), region = 128 }
 0x408   :  { %5957 = vsyncpa [#allocation6], 1 }
 0x409   :  { %5959 = vsyncpa [#allocation6 + $0x1], 1 }
 0x40a   :  { %5960 = vsyncpa [#allocation9], 1 }
 0x40b   :  { %5961 = vsyncpa [#allocation12], 1 }
 0x40c   :  { %5962 = vsyncpa [#allocation7], 1 }
 0x40d   :  { %5964 = vsyncpa [#allocation7 + $0x1], 1 }

</bundles_post_ra>
